<compile_context>
chip_gen: v6e
topology: v6e:2x2x1
jax: 0.10.0
libtpu: 0.0.40
codegen_flags: <defaults>
</compile_context>

<pallas_src>
import functools

import numpy as np
import jax
import jax.numpy as jnp
from jax.experimental import pallas as pl
from jax.experimental.pallas import tpu as pltpu

CIN = 3
COUT = 3
K = 3


def conv3x3_kernel(w_ref, b_ref, wcol_ref, x_ref, o_ref, *, H, W, NB):
    # w_ref   : SMEM (COUT*CIN*K*K,) flat weights, OIHW order
    # b_ref   : SMEM (COUT,)
    # wcol_ref: VMEM (1, H*W) int32, column index (p % W) of each flat position
    # x_ref   : VMEM (NB, CIN, H*W) flattened input block
    # o_ref   : VMEM (NB, COUT, H*W) flattened output block
    HW = H * W

    # Hoist all scalar parameter reads out of the tap loops (SMEM -> sregs).
    wv = [[[[w_ref[co * (CIN * K * K) + ci * (K * K) + kh * K + kw]
             for kw in range(K)]
            for kh in range(K)]
           for ci in range(CIN)]
          for co in range(COUT)]
    bv = [b_ref[co] for co in range(COUT)]

    # Border-validity masks implementing the implicit zero padding (padding=1).
    col = jax.lax.broadcasted_iota(jnp.int32, (1, HW), 1)   # flat position p
    wcol = wcol_ref[...]                                    # p % W (precomputed)
    valid_h = {-1: col >= W, 0: None, 1: col < HW - W}
    valid_w = {-1: wcol >= 1, 0: None, 1: wcol <= W - 2}

    def tap_mask(dh, dw):
        mh, mw = valid_h[dh], valid_w[dw]
        if mh is None:
            return mw
        if mw is None:
            return mh
        return jnp.logical_and(mh, mw)

    for n in range(NB):
        # Build the 27 shifted+masked input taps once; reused for all COUT.
        taps = []
        for ci in range(CIN):
            xc = x_ref[n, ci:ci + 1, :].astype(jnp.float32)   # (1, HW)
            rows = []
            for kh in range(K):
                row = []
                for kw in range(K):
                    dh, dw = kh - 1, kw - 1
                    s = dh * W + dw                 # flat source offset
                    if s == 0:
                        shifted = xc
                    else:
                        shifted = pltpu.roll(xc, shift=(-s) % HW, axis=1)
                    m = tap_mask(dh, dw)
                    row.append(shifted if m is None
                               else jnp.where(m, shifted, 0.0))
                rows.append(row)
            taps.append(rows)

        for co in range(COUT):
            acc = jnp.full((1, HW), bv[co], dtype=jnp.float32)
            for ci in range(CIN):
                for kh in range(K):
                    for kw in range(K):
                        acc = acc + wv[co][ci][kh][kw] * taps[ci][kh][kw]
            o_ref[n, co:co + 1, :] = acc.astype(o_ref.dtype)


def highpass_net_forward(x, weight, bias):
    """x: (N, 3, H, W) f32; weight: (3, 3, 3, 3) OIHW; bias: (3,). -> (N, 3, H, W)."""
    N, C, H, W = x.shape
    assert C == CIN
    HW = H * W

    x_flat = x.reshape(N, CIN, HW)      # free reshape: NCHW -> NC(HW), lane-dense
    w_flat = weight.reshape(-1)

    # Column index of every flattened position, baked at trace time (lets the
    # kernel build the padding masks without vector integer div/mod).
    wcol = jnp.asarray((np.arange(HW) % W).astype(np.int32)).reshape(1, HW)

    # Fold small batches into a single grid step; otherwise one step per image.
    NB = N if N <= 8 else 1
    grid = (N // NB,)
    kernel = functools.partial(conv3x3_kernel, H=H, W=W, NB=NB)

    out_flat = pl.pallas_call(
        kernel,
        out_shape=jax.ShapeDtypeStruct((N, COUT, HW), x.dtype),
        grid=grid,
        in_specs=[
            pl.BlockSpec(memory_space=pltpu.MemorySpace.SMEM),    # weights
            pl.BlockSpec(memory_space=pltpu.MemorySpace.SMEM),    # bias
            pl.BlockSpec((1, HW), lambda i: (0, 0)),              # column idx
            pl.BlockSpec((NB, CIN, HW), lambda i: (i, 0, 0)),     # input
        ],
        out_specs=pl.BlockSpec((NB, COUT, HW), lambda i: (i, 0, 0)),
        compiler_params=pltpu.CompilerParams(
            dimension_semantics=("parallel",)),
    )(w_flat, bias, wcol, x_flat)

    return out_flat.reshape(N, COUT, H, W)


if __name__ == "__main__":
    key = jax.random.PRNGKey(0)
    k_w, k_b, k_x = jax.random.split(key, 3)

    # Deterministic parameter init matching PyTorch's default Conv2d init
    # (uniform in +-1/sqrt(fan_in), fan_in = 3*3*3 = 27).
    bound = float(1.0 / np.sqrt(CIN * K * K))
    weight = jax.random.uniform(k_w, (COUT, CIN, K, K), jnp.float32, -bound, bound)
    bias = jax.random.uniform(k_b, (COUT,), jnp.float32, -bound, bound)

    # Small example input consistent with the module: (N=2, C=3, H=16, W=16).
    x = jax.random.normal(k_x, (2, CIN, 16, 16), jnp.float32)

    out = jax.block_until_ready(highpass_net_forward(x, weight, bias))

    # Reference: XLA conv (NCHW / OIHW), same padding=1 semantics as nn.Conv2d.
    ref = jax.lax.conv_general_dilated(
        x, weight, window_strides=(1, 1), padding=((1, 1), (1, 1)),
        dimension_numbers=("NCHW", "OIHW", "NCHW")) + bias[None, :, None, None]

    assert out.shape == (2, COUT, 16, 16)
    assert jnp.allclose(out, ref, atol=1e-5, rtol=1e-5)
    print("KERNEL_OK")
</pallas_src>

<mosaic_0001>
module attributes {stable_mosaic.version = 11 : i64} {
  func.func @conv3x3_kernel(%arg0: i32, %arg1: memref<81xf32, #tpu.memory_space<smem>>, %arg2: memref<3xf32, #tpu.memory_space<smem>>, %arg3: memref<1x256xi32, #tpu.memory_space<vmem>>, %arg4: memref<2x3x256xf32, #tpu.memory_space<vmem>>, %arg5: memref<2x3x256xf32, #tpu.memory_space<vmem>>) attributes {dimension_semantics = [#tpu.dimension_semantics<parallel>], iteration_bounds = array<i64: 1>, scalar_prefetch = 0 : i64, scratch_operands = 0 : i64, tpu.core_type = #tpu.core_type<tc>, window_params = [{transform_indices = @transform_0, window_bounds = array<i64: 81>}, {transform_indices = @transform_1, window_bounds = array<i64: 3>}, {pipeline_mode = #tpu.pipeline_mode<synchronous>, transform_indices = @transform_2, window_bounds = array<i64: 1, 256>}, {transform_indices = @transform_3, window_bounds = array<i64: 2, 3, 256>}, {transform_indices = @transform_4, window_bounds = array<i64: 2, 3, 256>}]} {
    %c0 = arith.constant 0 : index
    %0 = memref.load %arg1[%c0] : memref<81xf32, #tpu.memory_space<smem>>
    %c1 = arith.constant 1 : index
    %1 = memref.load %arg1[%c1] : memref<81xf32, #tpu.memory_space<smem>>
    %c2 = arith.constant 2 : index
    %2 = memref.load %arg1[%c2] : memref<81xf32, #tpu.memory_space<smem>>
    %c3 = arith.constant 3 : index
    %3 = memref.load %arg1[%c3] : memref<81xf32, #tpu.memory_space<smem>>
    %c4 = arith.constant 4 : index
    %4 = memref.load %arg1[%c4] : memref<81xf32, #tpu.memory_space<smem>>
    %c5 = arith.constant 5 : index
    %5 = memref.load %arg1[%c5] : memref<81xf32, #tpu.memory_space<smem>>
    %c6 = arith.constant 6 : index
    %6 = memref.load %arg1[%c6] : memref<81xf32, #tpu.memory_space<smem>>
    %c7 = arith.constant 7 : index
    %7 = memref.load %arg1[%c7] : memref<81xf32, #tpu.memory_space<smem>>
    %c8 = arith.constant 8 : index
    %8 = memref.load %arg1[%c8] : memref<81xf32, #tpu.memory_space<smem>>
    %c9 = arith.constant 9 : index
    %9 = memref.load %arg1[%c9] : memref<81xf32, #tpu.memory_space<smem>>
    %c10 = arith.constant 10 : index
    %10 = memref.load %arg1[%c10] : memref<81xf32, #tpu.memory_space<smem>>
    %c11 = arith.constant 11 : index
    %11 = memref.load %arg1[%c11] : memref<81xf32, #tpu.memory_space<smem>>
    %c12 = arith.constant 12 : index
    %12 = memref.load %arg1[%c12] : memref<81xf32, #tpu.memory_space<smem>>
    %c13 = arith.constant 13 : index
    %13 = memref.load %arg1[%c13] : memref<81xf32, #tpu.memory_space<smem>>
    %c14 = arith.constant 14 : index
    %14 = memref.load %arg1[%c14] : memref<81xf32, #tpu.memory_space<smem>>
    %c15 = arith.constant 15 : index
    %15 = memref.load %arg1[%c15] : memref<81xf32, #tpu.memory_space<smem>>
    %c16 = arith.constant 16 : index
    %16 = memref.load %arg1[%c16] : memref<81xf32, #tpu.memory_space<smem>>
    %c17 = arith.constant 17 : index
    %17 = memref.load %arg1[%c17] : memref<81xf32, #tpu.memory_space<smem>>
    %c18 = arith.constant 18 : index
    %18 = memref.load %arg1[%c18] : memref<81xf32, #tpu.memory_space<smem>>
    %c19 = arith.constant 19 : index
    %19 = memref.load %arg1[%c19] : memref<81xf32, #tpu.memory_space<smem>>
    %c20 = arith.constant 20 : index
    %20 = memref.load %arg1[%c20] : memref<81xf32, #tpu.memory_space<smem>>
    %c21 = arith.constant 21 : index
    %21 = memref.load %arg1[%c21] : memref<81xf32, #tpu.memory_space<smem>>
    %c22 = arith.constant 22 : index
    %22 = memref.load %arg1[%c22] : memref<81xf32, #tpu.memory_space<smem>>
    %c23 = arith.constant 23 : index
    %23 = memref.load %arg1[%c23] : memref<81xf32, #tpu.memory_space<smem>>
    %c24 = arith.constant 24 : index
    %24 = memref.load %arg1[%c24] : memref<81xf32, #tpu.memory_space<smem>>
    %c25 = arith.constant 25 : index
    %25 = memref.load %arg1[%c25] : memref<81xf32, #tpu.memory_space<smem>>
    %c26 = arith.constant 26 : index
    %26 = memref.load %arg1[%c26] : memref<81xf32, #tpu.memory_space<smem>>
    %c27 = arith.constant 27 : index
    %27 = memref.load %arg1[%c27] : memref<81xf32, #tpu.memory_space<smem>>
    %c28 = arith.constant 28 : index
    %28 = memref.load %arg1[%c28] : memref<81xf32, #tpu.memory_space<smem>>
    %c29 = arith.constant 29 : index
    %29 = memref.load %arg1[%c29] : memref<81xf32, #tpu.memory_space<smem>>
    %c30 = arith.constant 30 : index
    %30 = memref.load %arg1[%c30] : memref<81xf32, #tpu.memory_space<smem>>
    %c31 = arith.constant 31 : index
    %31 = memref.load %arg1[%c31] : memref<81xf32, #tpu.memory_space<smem>>
    %c32 = arith.constant 32 : index
    %32 = memref.load %arg1[%c32] : memref<81xf32, #tpu.memory_space<smem>>
    %c33 = arith.constant 33 : index
    %33 = memref.load %arg1[%c33] : memref<81xf32, #tpu.memory_space<smem>>
    %c34 = arith.constant 34 : index
    %34 = memref.load %arg1[%c34] : memref<81xf32, #tpu.memory_space<smem>>
    %c35 = arith.constant 35 : index
    %35 = memref.load %arg1[%c35] : memref<81xf32, #tpu.memory_space<smem>>
    %c36 = arith.constant 36 : index
    %36 = memref.load %arg1[%c36] : memref<81xf32, #tpu.memory_space<smem>>
    %c37 = arith.constant 37 : index
    %37 = memref.load %arg1[%c37] : memref<81xf32, #tpu.memory_space<smem>>
    %c38 = arith.constant 38 : index
    %38 = memref.load %arg1[%c38] : memref<81xf32, #tpu.memory_space<smem>>
    %c39 = arith.constant 39 : index
    %39 = memref.load %arg1[%c39] : memref<81xf32, #tpu.memory_space<smem>>
    %c40 = arith.constant 40 : index
    %40 = memref.load %arg1[%c40] : memref<81xf32, #tpu.memory_space<smem>>
    %c41 = arith.constant 41 : index
    %41 = memref.load %arg1[%c41] : memref<81xf32, #tpu.memory_space<smem>>
    %c42 = arith.constant 42 : index
    %42 = memref.load %arg1[%c42] : memref<81xf32, #tpu.memory_space<smem>>
    %c43 = arith.constant 43 : index
    %43 = memref.load %arg1[%c43] : memref<81xf32, #tpu.memory_space<smem>>
    %c44 = arith.constant 44 : index
    %44 = memref.load %arg1[%c44] : memref<81xf32, #tpu.memory_space<smem>>
    %c45 = arith.constant 45 : index
    %45 = memref.load %arg1[%c45] : memref<81xf32, #tpu.memory_space<smem>>
    %c46 = arith.constant 46 : index
    %46 = memref.load %arg1[%c46] : memref<81xf32, #tpu.memory_space<smem>>
    %c47 = arith.constant 47 : index
    %47 = memref.load %arg1[%c47] : memref<81xf32, #tpu.memory_space<smem>>
    %c48 = arith.constant 48 : index
    %48 = memref.load %arg1[%c48] : memref<81xf32, #tpu.memory_space<smem>>
    %c49 = arith.constant 49 : index
    %49 = memref.load %arg1[%c49] : memref<81xf32, #tpu.memory_space<smem>>
    %c50 = arith.constant 50 : index
    %50 = memref.load %arg1[%c50] : memref<81xf32, #tpu.memory_space<smem>>
    %c51 = arith.constant 51 : index
    %51 = memref.load %arg1[%c51] : memref<81xf32, #tpu.memory_space<smem>>
    %c52 = arith.constant 52 : index
    %52 = memref.load %arg1[%c52] : memref<81xf32, #tpu.memory_space<smem>>
    %c53 = arith.constant 53 : index
    %53 = memref.load %arg1[%c53] : memref<81xf32, #tpu.memory_space<smem>>
    %c54 = arith.constant 54 : index
    %54 = memref.load %arg1[%c54] : memref<81xf32, #tpu.memory_space<smem>>
    %c55 = arith.constant 55 : index
    %55 = memref.load %arg1[%c55] : memref<81xf32, #tpu.memory_space<smem>>
    %c56 = arith.constant 56 : index
    %56 = memref.load %arg1[%c56] : memref<81xf32, #tpu.memory_space<smem>>
    %c57 = arith.constant 57 : index
    %57 = memref.load %arg1[%c57] : memref<81xf32, #tpu.memory_space<smem>>
    %c58 = arith.constant 58 : index
    %58 = memref.load %arg1[%c58] : memref<81xf32, #tpu.memory_space<smem>>
    %c59 = arith.constant 59 : index
    %59 = memref.load %arg1[%c59] : memref<81xf32, #tpu.memory_space<smem>>
    %c60 = arith.constant 60 : index
    %60 = memref.load %arg1[%c60] : memref<81xf32, #tpu.memory_space<smem>>
    %c61 = arith.constant 61 : index
    %61 = memref.load %arg1[%c61] : memref<81xf32, #tpu.memory_space<smem>>
    %c62 = arith.constant 62 : index
    %62 = memref.load %arg1[%c62] : memref<81xf32, #tpu.memory_space<smem>>
    %c63 = arith.constant 63 : index
    %63 = memref.load %arg1[%c63] : memref<81xf32, #tpu.memory_space<smem>>
    %c64 = arith.constant 64 : index
    %64 = memref.load %arg1[%c64] : memref<81xf32, #tpu.memory_space<smem>>
    %c65 = arith.constant 65 : index
    %65 = memref.load %arg1[%c65] : memref<81xf32, #tpu.memory_space<smem>>
    %c66 = arith.constant 66 : index
    %66 = memref.load %arg1[%c66] : memref<81xf32, #tpu.memory_space<smem>>
    %c67 = arith.constant 67 : index
    %67 = memref.load %arg1[%c67] : memref<81xf32, #tpu.memory_space<smem>>
    %c68 = arith.constant 68 : index
    %68 = memref.load %arg1[%c68] : memref<81xf32, #tpu.memory_space<smem>>
    %c69 = arith.constant 69 : index
    %69 = memref.load %arg1[%c69] : memref<81xf32, #tpu.memory_space<smem>>
    %c70 = arith.constant 70 : index
    %70 = memref.load %arg1[%c70] : memref<81xf32, #tpu.memory_space<smem>>
    %c71 = arith.constant 71 : index
    %71 = memref.load %arg1[%c71] : memref<81xf32, #tpu.memory_space<smem>>
    %c72 = arith.constant 72 : index
    %72 = memref.load %arg1[%c72] : memref<81xf32, #tpu.memory_space<smem>>
    %c73 = arith.constant 73 : index
    %73 = memref.load %arg1[%c73] : memref<81xf32, #tpu.memory_space<smem>>
    %c74 = arith.constant 74 : index
    %74 = memref.load %arg1[%c74] : memref<81xf32, #tpu.memory_space<smem>>
    %c75 = arith.constant 75 : index
    %75 = memref.load %arg1[%c75] : memref<81xf32, #tpu.memory_space<smem>>
    %c76 = arith.constant 76 : index
    %76 = memref.load %arg1[%c76] : memref<81xf32, #tpu.memory_space<smem>>
    %c77 = arith.constant 77 : index
    %77 = memref.load %arg1[%c77] : memref<81xf32, #tpu.memory_space<smem>>
    %c78 = arith.constant 78 : index
    %78 = memref.load %arg1[%c78] : memref<81xf32, #tpu.memory_space<smem>>
    %c79 = arith.constant 79 : index
    %79 = memref.load %arg1[%c79] : memref<81xf32, #tpu.memory_space<smem>>
    %c80 = arith.constant 80 : index
    %80 = memref.load %arg1[%c80] : memref<81xf32, #tpu.memory_space<smem>>
    %c0_0 = arith.constant 0 : index
    %81 = memref.load %arg2[%c0_0] : memref<3xf32, #tpu.memory_space<smem>>
    %c1_1 = arith.constant 1 : index
    %82 = memref.load %arg2[%c1_1] : memref<3xf32, #tpu.memory_space<smem>>
    %c2_2 = arith.constant 2 : index
    %83 = memref.load %arg2[%c2_2] : memref<3xf32, #tpu.memory_space<smem>>
    %84 = tpu.iota {dimensions = array<i32: 1>} : vector<1x256xi32>
    %c0_3 = arith.constant 0 : index
    %c0_4 = arith.constant 0 : index
    %85 = vector.load %arg3[%c0_3, %c0_4] : memref<1x256xi32, #tpu.memory_space<vmem>>, vector<1x256xi32>
    %c16_i32 = arith.constant 16 : i32
    %86 = vector.broadcast %c16_i32 : i32 to vector<1x256xi32>
    %87 = arith.cmpi sge, %84, %86 : vector<1x256xi32>
    %c240_i32 = arith.constant 240 : i32
    %88 = vector.broadcast %c240_i32 : i32 to vector<1x256xi32>
    %89 = arith.cmpi slt, %84, %88 : vector<1x256xi32>
    %c1_i32 = arith.constant 1 : i32
    %90 = vector.broadcast %c1_i32 : i32 to vector<1x256xi32>
    %91 = arith.cmpi sge, %85, %90 : vector<1x256xi32>
    %c14_i32 = arith.constant 14 : i32
    %92 = vector.broadcast %c14_i32 : i32 to vector<1x256xi32>
    %93 = arith.cmpi sle, %85, %92 : vector<1x256xi32>
    %c0_5 = arith.constant 0 : index
    %c0_6 = arith.constant 0 : index
    %c0_7 = arith.constant 0 : index
    %94 = vector.load %arg4[%c0_5, %c0_6, %c0_7] : memref<2x3x256xf32, #tpu.memory_space<vmem>>, vector<1x1x256xf32>
    %95 = vector.shape_cast %94 : vector<1x1x256xf32> to vector<1x256xf32>
    %c17_i32 = arith.constant 17 : i32
    %96 = tpu.dynamic_rotate %95 by %c17_i32 dim 1 : vector<1x256xf32>, i32 -> vector<1x256xf32>
    %97 = arith.andi %87, %91 : vector<1x256xi1>
    %cst = arith.constant 0.000000e+00 : f32
    %98 = vector.broadcast %cst : f32 to vector<1x256xf32>
    %99 = arith.select %97, %96, %98 : vector<1x256xi1>, vector<1x256xf32>
    %c16_i32_8 = arith.constant 16 : i32
    %100 = tpu.dynamic_rotate %95 by %c16_i32_8 dim 1 : vector<1x256xf32>, i32 -> vector<1x256xf32>
    %cst_9 = arith.constant 0.000000e+00 : f32
    %101 = vector.broadcast %cst_9 : f32 to vector<1x256xf32>
    %102 = arith.select %87, %100, %101 : vector<1x256xi1>, vector<1x256xf32>
    %c15_i32 = arith.constant 15 : i32
    %103 = tpu.dynamic_rotate %95 by %c15_i32 dim 1 : vector<1x256xf32>, i32 -> vector<1x256xf32>
    %104 = arith.andi %87, %93 : vector<1x256xi1>
    %cst_10 = arith.constant 0.000000e+00 : f32
    %105 = vector.broadcast %cst_10 : f32 to vector<1x256xf32>
    %106 = arith.select %104, %103, %105 : vector<1x256xi1>, vector<1x256xf32>
    %c1_i32_11 = arith.constant 1 : i32
    %107 = tpu.dynamic_rotate %95 by %c1_i32_11 dim 1 : vector<1x256xf32>, i32 -> vector<1x256xf32>
    %cst_12 = arith.constant 0.000000e+00 : f32
    %108 = vector.broadcast %cst_12 : f32 to vector<1x256xf32>
    %109 = arith.select %91, %107, %108 : vector<1x256xi1>, vector<1x256xf32>
    %c255_i32 = arith.constant 255 : i32
    %110 = tpu.dynamic_rotate %95 by %c255_i32 dim 1 : vector<1x256xf32>, i32 -> vector<1x256xf32>
    %cst_13 = arith.constant 0.000000e+00 : f32
    %111 = vector.broadcast %cst_13 : f32 to vector<1x256xf32>
    %112 = arith.select %93, %110, %111 : vector<1x256xi1>, vector<1x256xf32>
    %c241_i32 = arith.constant 241 : i32
    %113 = tpu.dynamic_rotate %95 by %c241_i32 dim 1 : vector<1x256xf32>, i32 -> vector<1x256xf32>
    %114 = arith.andi %89, %91 : vector<1x256xi1>
    %cst_14 = arith.constant 0.000000e+00 : f32
    %115 = vector.broadcast %cst_14 : f32 to vector<1x256xf32>
    %116 = arith.select %114, %113, %115 : vector<1x256xi1>, vector<1x256xf32>
    %c240_i32_15 = arith.constant 240 : i32
    %117 = tpu.dynamic_rotate %95 by %c240_i32_15 dim 1 : vector<1x256xf32>, i32 -> vector<1x256xf32>
    %cst_16 = arith.constant 0.000000e+00 : f32
    %118 = vector.broadcast %cst_16 : f32 to vector<1x256xf32>
    %119 = arith.select %89, %117, %118 : vector<1x256xi1>, vector<1x256xf32>
    %c239_i32 = arith.constant 239 : i32
    %120 = tpu.dynamic_rotate %95 by %c239_i32 dim 1 : vector<1x256xf32>, i32 -> vector<1x256xf32>
    %121 = arith.andi %89, %93 : vector<1x256xi1>
    %cst_17 = arith.constant 0.000000e+00 : f32
    %122 = vector.broadcast %cst_17 : f32 to vector<1x256xf32>
    %123 = arith.select %121, %120, %122 : vector<1x256xi1>, vector<1x256xf32>
    %c0_18 = arith.constant 0 : index
    %c1_19 = arith.constant 1 : index
    %c0_20 = arith.constant 0 : index
    %124 = vector.load %arg4[%c0_18, %c1_19, %c0_20] : memref<2x3x256xf32, #tpu.memory_space<vmem>>, vector<1x1x256xf32>
    %125 = vector.shape_cast %124 : vector<1x1x256xf32> to vector<1x256xf32>
    %c17_i32_21 = arith.constant 17 : i32
    %126 = tpu.dynamic_rotate %125 by %c17_i32_21 dim 1 : vector<1x256xf32>, i32 -> vector<1x256xf32>
    %127 = arith.andi %87, %91 : vector<1x256xi1>
    %cst_22 = arith.constant 0.000000e+00 : f32
    %128 = vector.broadcast %cst_22 : f32 to vector<1x256xf32>
    %129 = arith.select %127, %126, %128 : vector<1x256xi1>, vector<1x256xf32>
    %c16_i32_23 = arith.constant 16 : i32
    %130 = tpu.dynamic_rotate %125 by %c16_i32_23 dim 1 : vector<1x256xf32>, i32 -> vector<1x256xf32>
    %cst_24 = arith.constant 0.000000e+00 : f32
    %131 = vector.broadcast %cst_24 : f32 to vector<1x256xf32>
    %132 = arith.select %87, %130, %131 : vector<1x256xi1>, vector<1x256xf32>
    %c15_i32_25 = arith.constant 15 : i32
    %133 = tpu.dynamic_rotate %125 by %c15_i32_25 dim 1 : vector<1x256xf32>, i32 -> vector<1x256xf32>
    %134 = arith.andi %87, %93 : vector<1x256xi1>
    %cst_26 = arith.constant 0.000000e+00 : f32
    %135 = vector.broadcast %cst_26 : f32 to vector<1x256xf32>
    %136 = arith.select %134, %133, %135 : vector<1x256xi1>, vector<1x256xf32>
    %c1_i32_27 = arith.constant 1 : i32
    %137 = tpu.dynamic_rotate %125 by %c1_i32_27 dim 1 : vector<1x256xf32>, i32 -> vector<1x256xf32>
    %cst_28 = arith.constant 0.000000e+00 : f32
    %138 = vector.broadcast %cst_28 : f32 to vector<1x256xf32>
    %139 = arith.select %91, %137, %138 : vector<1x256xi1>, vector<1x256xf32>
    %c255_i32_29 = arith.constant 255 : i32
    %140 = tpu.dynamic_rotate %125 by %c255_i32_29 dim 1 : vector<1x256xf32>, i32 -> vector<1x256xf32>
    %cst_30 = arith.constant 0.000000e+00 : f32
    %141 = vector.broadcast %cst_30 : f32 to vector<1x256xf32>
    %142 = arith.select %93, %140, %141 : vector<1x256xi1>, vector<1x256xf32>
    %c241_i32_31 = arith.constant 241 : i32
    %143 = tpu.dynamic_rotate %125 by %c241_i32_31 dim 1 : vector<1x256xf32>, i32 -> vector<1x256xf32>
    %144 = arith.andi %89, %91 : vector<1x256xi1>
    %cst_32 = arith.constant 0.000000e+00 : f32
    %145 = vector.broadcast %cst_32 : f32 to vector<1x256xf32>
    %146 = arith.select %144, %143, %145 : vector<1x256xi1>, vector<1x256xf32>
    %c240_i32_33 = arith.constant 240 : i32
    %147 = tpu.dynamic_rotate %125 by %c240_i32_33 dim 1 : vector<1x256xf32>, i32 -> vector<1x256xf32>
    %cst_34 = arith.constant 0.000000e+00 : f32
    %148 = vector.broadcast %cst_34 : f32 to vector<1x256xf32>
    %149 = arith.select %89, %147, %148 : vector<1x256xi1>, vector<1x256xf32>
    %c239_i32_35 = arith.constant 239 : i32
    %150 = tpu.dynamic_rotate %125 by %c239_i32_35 dim 1 : vector<1x256xf32>, i32 -> vector<1x256xf32>
    %151 = arith.andi %89, %93 : vector<1x256xi1>
    %cst_36 = arith.constant 0.000000e+00 : f32
    %152 = vector.broadcast %cst_36 : f32 to vector<1x256xf32>
    %153 = arith.select %151, %150, %152 : vector<1x256xi1>, vector<1x256xf32>
    %c0_37 = arith.constant 0 : index
    %c2_38 = arith.constant 2 : index
    %c0_39 = arith.constant 0 : index
    %154 = vector.load %arg4[%c0_37, %c2_38, %c0_39] : memref<2x3x256xf32, #tpu.memory_space<vmem>>, vector<1x1x256xf32>
    %155 = vector.shape_cast %154 : vector<1x1x256xf32> to vector<1x256xf32>
    %c17_i32_40 = arith.constant 17 : i32
    %156 = tpu.dynamic_rotate %155 by %c17_i32_40 dim 1 : vector<1x256xf32>, i32 -> vector<1x256xf32>
    %157 = arith.andi %87, %91 : vector<1x256xi1>
    %cst_41 = arith.constant 0.000000e+00 : f32
    %158 = vector.broadcast %cst_41 : f32 to vector<1x256xf32>
    %159 = arith.select %157, %156, %158 : vector<1x256xi1>, vector<1x256xf32>
    %c16_i32_42 = arith.constant 16 : i32
    %160 = tpu.dynamic_rotate %155 by %c16_i32_42 dim 1 : vector<1x256xf32>, i32 -> vector<1x256xf32>
    %cst_43 = arith.constant 0.000000e+00 : f32
    %161 = vector.broadcast %cst_43 : f32 to vector<1x256xf32>
    %162 = arith.select %87, %160, %161 : vector<1x256xi1>, vector<1x256xf32>
    %c15_i32_44 = arith.constant 15 : i32
    %163 = tpu.dynamic_rotate %155 by %c15_i32_44 dim 1 : vector<1x256xf32>, i32 -> vector<1x256xf32>
    %164 = arith.andi %87, %93 : vector<1x256xi1>
    %cst_45 = arith.constant 0.000000e+00 : f32
    %165 = vector.broadcast %cst_45 : f32 to vector<1x256xf32>
    %166 = arith.select %164, %163, %165 : vector<1x256xi1>, vector<1x256xf32>
    %c1_i32_46 = arith.constant 1 : i32
    %167 = tpu.dynamic_rotate %155 by %c1_i32_46 dim 1 : vector<1x256xf32>, i32 -> vector<1x256xf32>
    %cst_47 = arith.constant 0.000000e+00 : f32
    %168 = vector.broadcast %cst_47 : f32 to vector<1x256xf32>
    %169 = arith.select %91, %167, %168 : vector<1x256xi1>, vector<1x256xf32>
    %c255_i32_48 = arith.constant 255 : i32
    %170 = tpu.dynamic_rotate %155 by %c255_i32_48 dim 1 : vector<1x256xf32>, i32 -> vector<1x256xf32>
    %cst_49 = arith.constant 0.000000e+00 : f32
    %171 = vector.broadcast %cst_49 : f32 to vector<1x256xf32>
    %172 = arith.select %93, %170, %171 : vector<1x256xi1>, vector<1x256xf32>
    %c241_i32_50 = arith.constant 241 : i32
    %173 = tpu.dynamic_rotate %155 by %c241_i32_50 dim 1 : vector<1x256xf32>, i32 -> vector<1x256xf32>
    %174 = arith.andi %89, %91 : vector<1x256xi1>
    %cst_51 = arith.constant 0.000000e+00 : f32
    %175 = vector.broadcast %cst_51 : f32 to vector<1x256xf32>
    %176 = arith.select %174, %173, %175 : vector<1x256xi1>, vector<1x256xf32>
    %c240_i32_52 = arith.constant 240 : i32
    %177 = tpu.dynamic_rotate %155 by %c240_i32_52 dim 1 : vector<1x256xf32>, i32 -> vector<1x256xf32>
    %cst_53 = arith.constant 0.000000e+00 : f32
    %178 = vector.broadcast %cst_53 : f32 to vector<1x256xf32>
    %179 = arith.select %89, %177, %178 : vector<1x256xi1>, vector<1x256xf32>
    %c239_i32_54 = arith.constant 239 : i32
    %180 = tpu.dynamic_rotate %155 by %c239_i32_54 dim 1 : vector<1x256xf32>, i32 -> vector<1x256xf32>
    %181 = arith.andi %89, %93 : vector<1x256xi1>
    %cst_55 = arith.constant 0.000000e+00 : f32
    %182 = vector.broadcast %cst_55 : f32 to vector<1x256xf32>
    %183 = arith.select %181, %180, %182 : vector<1x256xi1>, vector<1x256xf32>
    %184 = vector.broadcast %81 : f32 to vector<1x256xf32>
    %185 = vector.broadcast %0 : f32 to vector<1x256xf32>
    %186 = arith.mulf %185, %99 : vector<1x256xf32>
    %187 = arith.addf %184, %186 : vector<1x256xf32>
    %188 = vector.broadcast %1 : f32 to vector<1x256xf32>
    %189 = arith.mulf %188, %102 : vector<1x256xf32>
    %190 = arith.addf %187, %189 : vector<1x256xf32>
    %191 = vector.broadcast %2 : f32 to vector<1x256xf32>
    %192 = arith.mulf %191, %106 : vector<1x256xf32>
    %193 = arith.addf %190, %192 : vector<1x256xf32>
    %194 = vector.broadcast %3 : f32 to vector<1x256xf32>
    %195 = arith.mulf %194, %109 : vector<1x256xf32>
    %196 = arith.addf %193, %195 : vector<1x256xf32>
    %197 = vector.broadcast %4 : f32 to vector<1x256xf32>
    %198 = arith.mulf %197, %95 : vector<1x256xf32>
    %199 = arith.addf %196, %198 : vector<1x256xf32>
    %200 = vector.broadcast %5 : f32 to vector<1x256xf32>
    %201 = arith.mulf %200, %112 : vector<1x256xf32>
    %202 = arith.addf %199, %201 : vector<1x256xf32>
    %203 = vector.broadcast %6 : f32 to vector<1x256xf32>
    %204 = arith.mulf %203, %116 : vector<1x256xf32>
    %205 = arith.addf %202, %204 : vector<1x256xf32>
    %206 = vector.broadcast %7 : f32 to vector<1x256xf32>
    %207 = arith.mulf %206, %119 : vector<1x256xf32>
    %208 = arith.addf %205, %207 : vector<1x256xf32>
    %209 = vector.broadcast %8 : f32 to vector<1x256xf32>
    %210 = arith.mulf %209, %123 : vector<1x256xf32>
    %211 = arith.addf %208, %210 : vector<1x256xf32>
    %212 = vector.broadcast %9 : f32 to vector<1x256xf32>
    %213 = arith.mulf %212, %129 : vector<1x256xf32>
    %214 = arith.addf %211, %213 : vector<1x256xf32>
    %215 = vector.broadcast %10 : f32 to vector<1x256xf32>
    %216 = arith.mulf %215, %132 : vector<1x256xf32>
    %217 = arith.addf %214, %216 : vector<1x256xf32>
    %218 = vector.broadcast %11 : f32 to vector<1x256xf32>
    %219 = arith.mulf %218, %136 : vector<1x256xf32>
    %220 = arith.addf %217, %219 : vector<1x256xf32>
    %221 = vector.broadcast %12 : f32 to vector<1x256xf32>
    %222 = arith.mulf %221, %139 : vector<1x256xf32>
    %223 = arith.addf %220, %222 : vector<1x256xf32>
    %224 = vector.broadcast %13 : f32 to vector<1x256xf32>
    %225 = arith.mulf %224, %125 : vector<1x256xf32>
    %226 = arith.addf %223, %225 : vector<1x256xf32>
    %227 = vector.broadcast %14 : f32 to vector<1x256xf32>
    %228 = arith.mulf %227, %142 : vector<1x256xf32>
    %229 = arith.addf %226, %228 : vector<1x256xf32>
    %230 = vector.broadcast %15 : f32 to vector<1x256xf32>
    %231 = arith.mulf %230, %146 : vector<1x256xf32>
    %232 = arith.addf %229, %231 : vector<1x256xf32>
    %233 = vector.broadcast %16 : f32 to vector<1x256xf32>
    %234 = arith.mulf %233, %149 : vector<1x256xf32>
    %235 = arith.addf %232, %234 : vector<1x256xf32>
    %236 = vector.broadcast %17 : f32 to vector<1x256xf32>
    %237 = arith.mulf %236, %153 : vector<1x256xf32>
    %238 = arith.addf %235, %237 : vector<1x256xf32>
    %239 = vector.broadcast %18 : f32 to vector<1x256xf32>
    %240 = arith.mulf %239, %159 : vector<1x256xf32>
    %241 = arith.addf %238, %240 : vector<1x256xf32>
    %242 = vector.broadcast %19 : f32 to vector<1x256xf32>
    %243 = arith.mulf %242, %162 : vector<1x256xf32>
    %244 = arith.addf %241, %243 : vector<1x256xf32>
    %245 = vector.broadcast %20 : f32 to vector<1x256xf32>
    %246 = arith.mulf %245, %166 : vector<1x256xf32>
    %247 = arith.addf %244, %246 : vector<1x256xf32>
    %248 = vector.broadcast %21 : f32 to vector<1x256xf32>
    %249 = arith.mulf %248, %169 : vector<1x256xf32>
    %250 = arith.addf %247, %249 : vector<1x256xf32>
    %251 = vector.broadcast %22 : f32 to vector<1x256xf32>
    %252 = arith.mulf %251, %155 : vector<1x256xf32>
    %253 = arith.addf %250, %252 : vector<1x256xf32>
    %254 = vector.broadcast %23 : f32 to vector<1x256xf32>
    %255 = arith.mulf %254, %172 : vector<1x256xf32>
    %256 = arith.addf %253, %255 : vector<1x256xf32>
    %257 = vector.broadcast %24 : f32 to vector<1x256xf32>
    %258 = arith.mulf %257, %176 : vector<1x256xf32>
    %259 = arith.addf %256, %258 : vector<1x256xf32>
    %260 = vector.broadcast %25 : f32 to vector<1x256xf32>
    %261 = arith.mulf %260, %179 : vector<1x256xf32>
    %262 = arith.addf %259, %261 : vector<1x256xf32>
    %263 = vector.broadcast %26 : f32 to vector<1x256xf32>
    %264 = arith.mulf %263, %183 : vector<1x256xf32>
    %265 = arith.addf %262, %264 : vector<1x256xf32>
    %c0_56 = arith.constant 0 : index
    %c0_57 = arith.constant 0 : index
    %c0_58 = arith.constant 0 : index
    %266 = vector.load %arg5[%c0_56, %c0_57, %c0_58] : memref<2x3x256xf32, #tpu.memory_space<vmem>>, vector<1x1x256xf32>
    %267 = vector.shape_cast %266 : vector<1x1x256xf32> to vector<1x256xf32>
    %268 = vector.shape_cast %265 : vector<1x256xf32> to vector<1x1x256xf32>
    tpu.vector_store %arg5[%c0_56, %c0_57, %c0_58], %268 {strides = array<i32>} : memref<2x3x256xf32, #tpu.memory_space<vmem>>, vector<1x1x256xf32>,
    %269 = vector.broadcast %82 : f32 to vector<1x256xf32>
    %270 = vector.broadcast %27 : f32 to vector<1x256xf32>
    %271 = arith.mulf %270, %99 : vector<1x256xf32>
    %272 = arith.addf %269, %271 : vector<1x256xf32>
    %273 = vector.broadcast %28 : f32 to vector<1x256xf32>
    %274 = arith.mulf %273, %102 : vector<1x256xf32>
    %275 = arith.addf %272, %274 : vector<1x256xf32>
    %276 = vector.broadcast %29 : f32 to vector<1x256xf32>
    %277 = arith.mulf %276, %106 : vector<1x256xf32>
    %278 = arith.addf %275, %277 : vector<1x256xf32>
    %279 = vector.broadcast %30 : f32 to vector<1x256xf32>
    %280 = arith.mulf %279, %109 : vector<1x256xf32>
    %281 = arith.addf %278, %280 : vector<1x256xf32>
    %282 = vector.broadcast %31 : f32 to vector<1x256xf32>
    %283 = arith.mulf %282, %95 : vector<1x256xf32>
    %284 = arith.addf %281, %283 : vector<1x256xf32>
    %285 = vector.broadcast %32 : f32 to vector<1x256xf32>
    %286 = arith.mulf %285, %112 : vector<1x256xf32>
    %287 = arith.addf %284, %286 : vector<1x256xf32>
    %288 = vector.broadcast %33 : f32 to vector<1x256xf32>
    %289 = arith.mulf %288, %116 : vector<1x256xf32>
    %290 = arith.addf %287, %289 : vector<1x256xf32>
    %291 = vector.broadcast %34 : f32 to vector<1x256xf32>
    %292 = arith.mulf %291, %119 : vector<1x256xf32>
    %293 = arith.addf %290, %292 : vector<1x256xf32>
    %294 = vector.broadcast %35 : f32 to vector<1x256xf32>
    %295 = arith.mulf %294, %123 : vector<1x256xf32>
    %296 = arith.addf %293, %295 : vector<1x256xf32>
    %297 = vector.broadcast %36 : f32 to vector<1x256xf32>
    %298 = arith.mulf %297, %129 : vector<1x256xf32>
    %299 = arith.addf %296, %298 : vector<1x256xf32>
    %300 = vector.broadcast %37 : f32 to vector<1x256xf32>
    %301 = arith.mulf %300, %132 : vector<1x256xf32>
    %302 = arith.addf %299, %301 : vector<1x256xf32>
    %303 = vector.broadcast %38 : f32 to vector<1x256xf32>
    %304 = arith.mulf %303, %136 : vector<1x256xf32>
    %305 = arith.addf %302, %304 : vector<1x256xf32>
    %306 = vector.broadcast %39 : f32 to vector<1x256xf32>
    %307 = arith.mulf %306, %139 : vector<1x256xf32>
    %308 = arith.addf %305, %307 : vector<1x256xf32>
    %309 = vector.broadcast %40 : f32 to vector<1x256xf32>
    %310 = arith.mulf %309, %125 : vector<1x256xf32>
    %311 = arith.addf %308, %310 : vector<1x256xf32>
    %312 = vector.broadcast %41 : f32 to vector<1x256xf32>
    %313 = arith.mulf %312, %142 : vector<1x256xf32>
    %314 = arith.addf %311, %313 : vector<1x256xf32>
    %315 = vector.broadcast %42 : f32 to vector<1x256xf32>
    %316 = arith.mulf %315, %146 : vector<1x256xf32>
    %317 = arith.addf %314, %316 : vector<1x256xf32>
    %318 = vector.broadcast %43 : f32 to vector<1x256xf32>
    %319 = arith.mulf %318, %149 : vector<1x256xf32>
    %320 = arith.addf %317, %319 : vector<1x256xf32>
    %321 = vector.broadcast %44 : f32 to vector<1x256xf32>
    %322 = arith.mulf %321, %153 : vector<1x256xf32>
    %323 = arith.addf %320, %322 : vector<1x256xf32>
    %324 = vector.broadcast %45 : f32 to vector<1x256xf32>
    %325 = arith.mulf %324, %159 : vector<1x256xf32>
    %326 = arith.addf %323, %325 : vector<1x256xf32>
    %327 = vector.broadcast %46 : f32 to vector<1x256xf32>
    %328 = arith.mulf %327, %162 : vector<1x256xf32>
    %329 = arith.addf %326, %328 : vector<1x256xf32>
    %330 = vector.broadcast %47 : f32 to vector<1x256xf32>
    %331 = arith.mulf %330, %166 : vector<1x256xf32>
    %332 = arith.addf %329, %331 : vector<1x256xf32>
    %333 = vector.broadcast %48 : f32 to vector<1x256xf32>
    %334 = arith.mulf %333, %169 : vector<1x256xf32>
    %335 = arith.addf %332, %334 : vector<1x256xf32>
    %336 = vector.broadcast %49 : f32 to vector<1x256xf32>
    %337 = arith.mulf %336, %155 : vector<1x256xf32>
    %338 = arith.addf %335, %337 : vector<1x256xf32>
    %339 = vector.broadcast %50 : f32 to vector<1x256xf32>
    %340 = arith.mulf %339, %172 : vector<1x256xf32>
    %341 = arith.addf %338, %340 : vector<1x256xf32>
    %342 = vector.broadcast %51 : f32 to vector<1x256xf32>
    %343 = arith.mulf %342, %176 : vector<1x256xf32>
    %344 = arith.addf %341, %343 : vector<1x256xf32>
    %345 = vector.broadcast %52 : f32 to vector<1x256xf32>
    %346 = arith.mulf %345, %179 : vector<1x256xf32>
    %347 = arith.addf %344, %346 : vector<1x256xf32>
    %348 = vector.broadcast %53 : f32 to vector<1x256xf32>
    %349 = arith.mulf %348, %183 : vector<1x256xf32>
    %350 = arith.addf %347, %349 : vector<1x256xf32>
    %c0_59 = arith.constant 0 : index
    %c1_60 = arith.constant 1 : index
    %c0_61 = arith.constant 0 : index
    %351 = vector.load %arg5[%c0_59, %c1_60, %c0_61] : memref<2x3x256xf32, #tpu.memory_space<vmem>>, vector<1x1x256xf32>
    %352 = vector.shape_cast %351 : vector<1x1x256xf32> to vector<1x256xf32>
    %353 = vector.shape_cast %350 : vector<1x256xf32> to vector<1x1x256xf32>
    tpu.vector_store %arg5[%c0_59, %c1_60, %c0_61], %353 {strides = array<i32>} : memref<2x3x256xf32, #tpu.memory_space<vmem>>, vector<1x1x256xf32>,
    %354 = vector.broadcast %83 : f32 to vector<1x256xf32>
    %355 = vector.broadcast %54 : f32 to vector<1x256xf32>
    %356 = arith.mulf %355, %99 : vector<1x256xf32>
    %357 = arith.addf %354, %356 : vector<1x256xf32>
    %358 = vector.broadcast %55 : f32 to vector<1x256xf32>
    %359 = arith.mulf %358, %102 : vector<1x256xf32>
    %360 = arith.addf %357, %359 : vector<1x256xf32>
    %361 = vector.broadcast %56 : f32 to vector<1x256xf32>
    %362 = arith.mulf %361, %106 : vector<1x256xf32>
    %363 = arith.addf %360, %362 : vector<1x256xf32>
    %364 = vector.broadcast %57 : f32 to vector<1x256xf32>
    %365 = arith.mulf %364, %109 : vector<1x256xf32>
    %366 = arith.addf %363, %365 : vector<1x256xf32>
    %367 = vector.broadcast %58 : f32 to vector<1x256xf32>
    %368 = arith.mulf %367, %95 : vector<1x256xf32>
    %369 = arith.addf %366, %368 : vector<1x256xf32>
    %370 = vector.broadcast %59 : f32 to vector<1x256xf32>
    %371 = arith.mulf %370, %112 : vector<1x256xf32>
    %372 = arith.addf %369, %371 : vector<1x256xf32>
    %373 = vector.broadcast %60 : f32 to vector<1x256xf32>
    %374 = arith.mulf %373, %116 : vector<1x256xf32>
    %375 = arith.addf %372, %374 : vector<1x256xf32>
    %376 = vector.broadcast %61 : f32 to vector<1x256xf32>
    %377 = arith.mulf %376, %119 : vector<1x256xf32>
    %378 = arith.addf %375, %377 : vector<1x256xf32>
    %379 = vector.broadcast %62 : f32 to vector<1x256xf32>
    %380 = arith.mulf %379, %123 : vector<1x256xf32>
    %381 = arith.addf %378, %380 : vector<1x256xf32>
    %382 = vector.broadcast %63 : f32 to vector<1x256xf32>
    %383 = arith.mulf %382, %129 : vector<1x256xf32>
    %384 = arith.addf %381, %383 : vector<1x256xf32>
    %385 = vector.broadcast %64 : f32 to vector<1x256xf32>
    %386 = arith.mulf %385, %132 : vector<1x256xf32>
    %387 = arith.addf %384, %386 : vector<1x256xf32>
    %388 = vector.broadcast %65 : f32 to vector<1x256xf32>
    %389 = arith.mulf %388, %136 : vector<1x256xf32>
    %390 = arith.addf %387, %389 : vector<1x256xf32>
    %391 = vector.broadcast %66 : f32 to vector<1x256xf32>
    %392 = arith.mulf %391, %139 : vector<1x256xf32>
    %393 = arith.addf %390, %392 : vector<1x256xf32>
    %394 = vector.broadcast %67 : f32 to vector<1x256xf32>
    %395 = arith.mulf %394, %125 : vector<1x256xf32>
    %396 = arith.addf %393, %395 : vector<1x256xf32>
    %397 = vector.broadcast %68 : f32 to vector<1x256xf32>
    %398 = arith.mulf %397, %142 : vector<1x256xf32>
    %399 = arith.addf %396, %398 : vector<1x256xf32>
    %400 = vector.broadcast %69 : f32 to vector<1x256xf32>
    %401 = arith.mulf %400, %146 : vector<1x256xf32>
    %402 = arith.addf %399, %401 : vector<1x256xf32>
    %403 = vector.broadcast %70 : f32 to vector<1x256xf32>
    %404 = arith.mulf %403, %149 : vector<1x256xf32>
    %405 = arith.addf %402, %404 : vector<1x256xf32>
    %406 = vector.broadcast %71 : f32 to vector<1x256xf32>
    %407 = arith.mulf %406, %153 : vector<1x256xf32>
    %408 = arith.addf %405, %407 : vector<1x256xf32>
    %409 = vector.broadcast %72 : f32 to vector<1x256xf32>
    %410 = arith.mulf %409, %159 : vector<1x256xf32>
    %411 = arith.addf %408, %410 : vector<1x256xf32>
    %412 = vector.broadcast %73 : f32 to vector<1x256xf32>
    %413 = arith.mulf %412, %162 : vector<1x256xf32>
    %414 = arith.addf %411, %413 : vector<1x256xf32>
    %415 = vector.broadcast %74 : f32 to vector<1x256xf32>
    %416 = arith.mulf %415, %166 : vector<1x256xf32>
    %417 = arith.addf %414, %416 : vector<1x256xf32>
    %418 = vector.broadcast %75 : f32 to vector<1x256xf32>
    %419 = arith.mulf %418, %169 : vector<1x256xf32>
    %420 = arith.addf %417, %419 : vector<1x256xf32>
    %421 = vector.broadcast %76 : f32 to vector<1x256xf32>
    %422 = arith.mulf %421, %155 : vector<1x256xf32>
    %423 = arith.addf %420, %422 : vector<1x256xf32>
    %424 = vector.broadcast %77 : f32 to vector<1x256xf32>
    %425 = arith.mulf %424, %172 : vector<1x256xf32>
    %426 = arith.addf %423, %425 : vector<1x256xf32>
    %427 = vector.broadcast %78 : f32 to vector<1x256xf32>
    %428 = arith.mulf %427, %176 : vector<1x256xf32>
    %429 = arith.addf %426, %428 : vector<1x256xf32>
    %430 = vector.broadcast %79 : f32 to vector<1x256xf32>
    %431 = arith.mulf %430, %179 : vector<1x256xf32>
    %432 = arith.addf %429, %431 : vector<1x256xf32>
    %433 = vector.broadcast %80 : f32 to vector<1x256xf32>
    %434 = arith.mulf %433, %183 : vector<1x256xf32>
    %435 = arith.addf %432, %434 : vector<1x256xf32>
    %c0_62 = arith.constant 0 : index
    %c2_63 = arith.constant 2 : index
    %c0_64 = arith.constant 0 : index
    %436 = vector.load %arg5[%c0_62, %c2_63, %c0_64] : memref<2x3x256xf32, #tpu.memory_space<vmem>>, vector<1x1x256xf32>
    %437 = vector.shape_cast %436 : vector<1x1x256xf32> to vector<1x256xf32>
    %438 = vector.shape_cast %435 : vector<1x256xf32> to vector<1x1x256xf32>
    tpu.vector_store %arg5[%c0_62, %c2_63, %c0_64], %438 {strides = array<i32>} : memref<2x3x256xf32, #tpu.memory_space<vmem>>, vector<1x1x256xf32>,
    %c1_65 = arith.constant 1 : index
    %c0_66 = arith.constant 0 : index
    %c0_67 = arith.constant 0 : index
    %439 = vector.load %arg4[%c1_65, %c0_66, %c0_67] : memref<2x3x256xf32, #tpu.memory_space<vmem>>, vector<1x1x256xf32>
    %440 = vector.shape_cast %439 : vector<1x1x256xf32> to vector<1x256xf32>
    %c17_i32_68 = arith.constant 17 : i32
    %441 = tpu.dynamic_rotate %440 by %c17_i32_68 dim 1 : vector<1x256xf32>, i32 -> vector<1x256xf32>
    %442 = arith.andi %87, %91 : vector<1x256xi1>
    %cst_69 = arith.constant 0.000000e+00 : f32
    %443 = vector.broadcast %cst_69 : f32 to vector<1x256xf32>
    %444 = arith.select %442, %441, %443 : vector<1x256xi1>, vector<1x256xf32>
    %c16_i32_70 = arith.constant 16 : i32
    %445 = tpu.dynamic_rotate %440 by %c16_i32_70 dim 1 : vector<1x256xf32>, i32 -> vector<1x256xf32>
    %cst_71 = arith.constant 0.000000e+00 : f32
    %446 = vector.broadcast %cst_71 : f32 to vector<1x256xf32>
    %447 = arith.select %87, %445, %446 : vector<1x256xi1>, vector<1x256xf32>
    %c15_i32_72 = arith.constant 15 : i32
    %448 = tpu.dynamic_rotate %440 by %c15_i32_72 dim 1 : vector<1x256xf32>, i32 -> vector<1x256xf32>
    %449 = arith.andi %87, %93 : vector<1x256xi1>
    %cst_73 = arith.constant 0.000000e+00 : f32
    %450 = vector.broadcast %cst_73 : f32 to vector<1x256xf32>
    %451 = arith.select %449, %448, %450 : vector<1x256xi1>, vector<1x256xf32>
    %c1_i32_74 = arith.constant 1 : i32
    %452 = tpu.dynamic_rotate %440 by %c1_i32_74 dim 1 : vector<1x256xf32>, i32 -> vector<1x256xf32>
    %cst_75 = arith.constant 0.000000e+00 : f32
    %453 = vector.broadcast %cst_75 : f32 to vector<1x256xf32>
    %454 = arith.select %91, %452, %453 : vector<1x256xi1>, vector<1x256xf32>
    %c255_i32_76 = arith.constant 255 : i32
    %455 = tpu.dynamic_rotate %440 by %c255_i32_76 dim 1 : vector<1x256xf32>, i32 -> vector<1x256xf32>
    %cst_77 = arith.constant 0.000000e+00 : f32
    %456 = vector.broadcast %cst_77 : f32 to vector<1x256xf32>
    %457 = arith.select %93, %455, %456 : vector<1x256xi1>, vector<1x256xf32>
    %c241_i32_78 = arith.constant 241 : i32
    %458 = tpu.dynamic_rotate %440 by %c241_i32_78 dim 1 : vector<1x256xf32>, i32 -> vector<1x256xf32>
    %459 = arith.andi %89, %91 : vector<1x256xi1>
    %cst_79 = arith.constant 0.000000e+00 : f32
    %460 = vector.broadcast %cst_79 : f32 to vector<1x256xf32>
    %461 = arith.select %459, %458, %460 : vector<1x256xi1>, vector<1x256xf32>
    %c240_i32_80 = arith.constant 240 : i32
    %462 = tpu.dynamic_rotate %440 by %c240_i32_80 dim 1 : vector<1x256xf32>, i32 -> vector<1x256xf32>
    %cst_81 = arith.constant 0.000000e+00 : f32
    %463 = vector.broadcast %cst_81 : f32 to vector<1x256xf32>
    %464 = arith.select %89, %462, %463 : vector<1x256xi1>, vector<1x256xf32>
    %c239_i32_82 = arith.constant 239 : i32
    %465 = tpu.dynamic_rotate %440 by %c239_i32_82 dim 1 : vector<1x256xf32>, i32 -> vector<1x256xf32>
    %466 = arith.andi %89, %93 : vector<1x256xi1>
    %cst_83 = arith.constant 0.000000e+00 : f32
    %467 = vector.broadcast %cst_83 : f32 to vector<1x256xf32>
    %468 = arith.select %466, %465, %467 : vector<1x256xi1>, vector<1x256xf32>
    %c1_84 = arith.constant 1 : index
    %c1_85 = arith.constant 1 : index
    %c0_86 = arith.constant 0 : index
    %469 = vector.load %arg4[%c1_84, %c1_85, %c0_86] : memref<2x3x256xf32, #tpu.memory_space<vmem>>, vector<1x1x256xf32>
    %470 = vector.shape_cast %469 : vector<1x1x256xf32> to vector<1x256xf32>
    %c17_i32_87 = arith.constant 17 : i32
    %471 = tpu.dynamic_rotate %470 by %c17_i32_87 dim 1 : vector<1x256xf32>, i32 -> vector<1x256xf32>
    %472 = arith.andi %87, %91 : vector<1x256xi1>
    %cst_88 = arith.constant 0.000000e+00 : f32
    %473 = vector.broadcast %cst_88 : f32 to vector<1x256xf32>
    %474 = arith.select %472, %471, %473 : vector<1x256xi1>, vector<1x256xf32>
    %c16_i32_89 = arith.constant 16 : i32
    %475 = tpu.dynamic_rotate %470 by %c16_i32_89 dim 1 : vector<1x256xf32>, i32 -> vector<1x256xf32>
    %cst_90 = arith.constant 0.000000e+00 : f32
    %476 = vector.broadcast %cst_90 : f32 to vector<1x256xf32>
    %477 = arith.select %87, %475, %476 : vector<1x256xi1>, vector<1x256xf32>
    %c15_i32_91 = arith.constant 15 : i32
    %478 = tpu.dynamic_rotate %470 by %c15_i32_91 dim 1 : vector<1x256xf32>, i32 -> vector<1x256xf32>
    %479 = arith.andi %87, %93 : vector<1x256xi1>
    %cst_92 = arith.constant 0.000000e+00 : f32
    %480 = vector.broadcast %cst_92 : f32 to vector<1x256xf32>
    %481 = arith.select %479, %478, %480 : vector<1x256xi1>, vector<1x256xf32>
    %c1_i32_93 = arith.constant 1 : i32
    %482 = tpu.dynamic_rotate %470 by %c1_i32_93 dim 1 : vector<1x256xf32>, i32 -> vector<1x256xf32>
    %cst_94 = arith.constant 0.000000e+00 : f32
    %483 = vector.broadcast %cst_94 : f32 to vector<1x256xf32>
    %484 = arith.select %91, %482, %483 : vector<1x256xi1>, vector<1x256xf32>
    %c255_i32_95 = arith.constant 255 : i32
    %485 = tpu.dynamic_rotate %470 by %c255_i32_95 dim 1 : vector<1x256xf32>, i32 -> vector<1x256xf32>
    %cst_96 = arith.constant 0.000000e+00 : f32
    %486 = vector.broadcast %cst_96 : f32 to vector<1x256xf32>
    %487 = arith.select %93, %485, %486 : vector<1x256xi1>, vector<1x256xf32>
    %c241_i32_97 = arith.constant 241 : i32
    %488 = tpu.dynamic_rotate %470 by %c241_i32_97 dim 1 : vector<1x256xf32>, i32 -> vector<1x256xf32>
    %489 = arith.andi %89, %91 : vector<1x256xi1>
    %cst_98 = arith.constant 0.000000e+00 : f32
    %490 = vector.broadcast %cst_98 : f32 to vector<1x256xf32>
    %491 = arith.select %489, %488, %490 : vector<1x256xi1>, vector<1x256xf32>
    %c240_i32_99 = arith.constant 240 : i32
    %492 = tpu.dynamic_rotate %470 by %c240_i32_99 dim 1 : vector<1x256xf32>, i32 -> vector<1x256xf32>
    %cst_100 = arith.constant 0.000000e+00 : f32
    %493 = vector.broadcast %cst_100 : f32 to vector<1x256xf32>
    %494 = arith.select %89, %492, %493 : vector<1x256xi1>, vector<1x256xf32>
    %c239_i32_101 = arith.constant 239 : i32
    %495 = tpu.dynamic_rotate %470 by %c239_i32_101 dim 1 : vector<1x256xf32>, i32 -> vector<1x256xf32>
    %496 = arith.andi %89, %93 : vector<1x256xi1>
    %cst_102 = arith.constant 0.000000e+00 : f32
    %497 = vector.broadcast %cst_102 : f32 to vector<1x256xf32>
    %498 = arith.select %496, %495, %497 : vector<1x256xi1>, vector<1x256xf32>
    %c1_103 = arith.constant 1 : index
    %c2_104 = arith.constant 2 : index
    %c0_105 = arith.constant 0 : index
    %499 = vector.load %arg4[%c1_103, %c2_104, %c0_105] : memref<2x3x256xf32, #tpu.memory_space<vmem>>, vector<1x1x256xf32>
    %500 = vector.shape_cast %499 : vector<1x1x256xf32> to vector<1x256xf32>
    %c17_i32_106 = arith.constant 17 : i32
    %501 = tpu.dynamic_rotate %500 by %c17_i32_106 dim 1 : vector<1x256xf32>, i32 -> vector<1x256xf32>
    %502 = arith.andi %87, %91 : vector<1x256xi1>
    %cst_107 = arith.constant 0.000000e+00 : f32
    %503 = vector.broadcast %cst_107 : f32 to vector<1x256xf32>
    %504 = arith.select %502, %501, %503 : vector<1x256xi1>, vector<1x256xf32>
    %c16_i32_108 = arith.constant 16 : i32
    %505 = tpu.dynamic_rotate %500 by %c16_i32_108 dim 1 : vector<1x256xf32>, i32 -> vector<1x256xf32>
    %cst_109 = arith.constant 0.000000e+00 : f32
    %506 = vector.broadcast %cst_109 : f32 to vector<1x256xf32>
    %507 = arith.select %87, %505, %506 : vector<1x256xi1>, vector<1x256xf32>
    %c15_i32_110 = arith.constant 15 : i32
    %508 = tpu.dynamic_rotate %500 by %c15_i32_110 dim 1 : vector<1x256xf32>, i32 -> vector<1x256xf32>
    %509 = arith.andi %87, %93 : vector<1x256xi1>
    %cst_111 = arith.constant 0.000000e+00 : f32
    %510 = vector.broadcast %cst_111 : f32 to vector<1x256xf32>
    %511 = arith.select %509, %508, %510 : vector<1x256xi1>, vector<1x256xf32>
    %c1_i32_112 = arith.constant 1 : i32
    %512 = tpu.dynamic_rotate %500 by %c1_i32_112 dim 1 : vector<1x256xf32>, i32 -> vector<1x256xf32>
    %cst_113 = arith.constant 0.000000e+00 : f32
    %513 = vector.broadcast %cst_113 : f32 to vector<1x256xf32>
    %514 = arith.select %91, %512, %513 : vector<1x256xi1>, vector<1x256xf32>
    %c255_i32_114 = arith.constant 255 : i32
    %515 = tpu.dynamic_rotate %500 by %c255_i32_114 dim 1 : vector<1x256xf32>, i32 -> vector<1x256xf32>
    %cst_115 = arith.constant 0.000000e+00 : f32
    %516 = vector.broadcast %cst_115 : f32 to vector<1x256xf32>
    %517 = arith.select %93, %515, %516 : vector<1x256xi1>, vector<1x256xf32>
    %c241_i32_116 = arith.constant 241 : i32
    %518 = tpu.dynamic_rotate %500 by %c241_i32_116 dim 1 : vector<1x256xf32>, i32 -> vector<1x256xf32>
    %519 = arith.andi %89, %91 : vector<1x256xi1>
    %cst_117 = arith.constant 0.000000e+00 : f32
    %520 = vector.broadcast %cst_117 : f32 to vector<1x256xf32>
    %521 = arith.select %519, %518, %520 : vector<1x256xi1>, vector<1x256xf32>
    %c240_i32_118 = arith.constant 240 : i32
    %522 = tpu.dynamic_rotate %500 by %c240_i32_118 dim 1 : vector<1x256xf32>, i32 -> vector<1x256xf32>
    %cst_119 = arith.constant 0.000000e+00 : f32
    %523 = vector.broadcast %cst_119 : f32 to vector<1x256xf32>
    %524 = arith.select %89, %522, %523 : vector<1x256xi1>, vector<1x256xf32>
    %c239_i32_120 = arith.constant 239 : i32
    %525 = tpu.dynamic_rotate %500 by %c239_i32_120 dim 1 : vector<1x256xf32>, i32 -> vector<1x256xf32>
    %526 = arith.andi %89, %93 : vector<1x256xi1>
    %cst_121 = arith.constant 0.000000e+00 : f32
    %527 = vector.broadcast %cst_121 : f32 to vector<1x256xf32>
    %528 = arith.select %526, %525, %527 : vector<1x256xi1>, vector<1x256xf32>
    %529 = vector.broadcast %81 : f32 to vector<1x256xf32>
    %530 = vector.broadcast %0 : f32 to vector<1x256xf32>
    %531 = arith.mulf %530, %444 : vector<1x256xf32>
    %532 = arith.addf %529, %531 : vector<1x256xf32>
    %533 = vector.broadcast %1 : f32 to vector<1x256xf32>
    %534 = arith.mulf %533, %447 : vector<1x256xf32>
    %535 = arith.addf %532, %534 : vector<1x256xf32>
    %536 = vector.broadcast %2 : f32 to vector<1x256xf32>
    %537 = arith.mulf %536, %451 : vector<1x256xf32>
    %538 = arith.addf %535, %537 : vector<1x256xf32>
    %539 = vector.broadcast %3 : f32 to vector<1x256xf32>
    %540 = arith.mulf %539, %454 : vector<1x256xf32>
    %541 = arith.addf %538, %540 : vector<1x256xf32>
    %542 = vector.broadcast %4 : f32 to vector<1x256xf32>
    %543 = arith.mulf %542, %440 : vector<1x256xf32>
    %544 = arith.addf %541, %543 : vector<1x256xf32>
    %545 = vector.broadcast %5 : f32 to vector<1x256xf32>
    %546 = arith.mulf %545, %457 : vector<1x256xf32>
    %547 = arith.addf %544, %546 : vector<1x256xf32>
    %548 = vector.broadcast %6 : f32 to vector<1x256xf32>
    %549 = arith.mulf %548, %461 : vector<1x256xf32>
    %550 = arith.addf %547, %549 : vector<1x256xf32>
    %551 = vector.broadcast %7 : f32 to vector<1x256xf32>
    %552 = arith.mulf %551, %464 : vector<1x256xf32>
    %553 = arith.addf %550, %552 : vector<1x256xf32>
    %554 = vector.broadcast %8 : f32 to vector<1x256xf32>
    %555 = arith.mulf %554, %468 : vector<1x256xf32>
    %556 = arith.addf %553, %555 : vector<1x256xf32>
    %557 = vector.broadcast %9 : f32 to vector<1x256xf32>
    %558 = arith.mulf %557, %474 : vector<1x256xf32>
    %559 = arith.addf %556, %558 : vector<1x256xf32>
    %560 = vector.broadcast %10 : f32 to vector<1x256xf32>
    %561 = arith.mulf %560, %477 : vector<1x256xf32>
    %562 = arith.addf %559, %561 : vector<1x256xf32>
    %563 = vector.broadcast %11 : f32 to vector<1x256xf32>
    %564 = arith.mulf %563, %481 : vector<1x256xf32>
    %565 = arith.addf %562, %564 : vector<1x256xf32>
    %566 = vector.broadcast %12 : f32 to vector<1x256xf32>
    %567 = arith.mulf %566, %484 : vector<1x256xf32>
    %568 = arith.addf %565, %567 : vector<1x256xf32>
    %569 = vector.broadcast %13 : f32 to vector<1x256xf32>
    %570 = arith.mulf %569, %470 : vector<1x256xf32>
    %571 = arith.addf %568, %570 : vector<1x256xf32>
    %572 = vector.broadcast %14 : f32 to vector<1x256xf32>
    %573 = arith.mulf %572, %487 : vector<1x256xf32>
    %574 = arith.addf %571, %573 : vector<1x256xf32>
    %575 = vector.broadcast %15 : f32 to vector<1x256xf32>
    %576 = arith.mulf %575, %491 : vector<1x256xf32>
    %577 = arith.addf %574, %576 : vector<1x256xf32>
    %578 = vector.broadcast %16 : f32 to vector<1x256xf32>
    %579 = arith.mulf %578, %494 : vector<1x256xf32>
    %580 = arith.addf %577, %579 : vector<1x256xf32>
    %581 = vector.broadcast %17 : f32 to vector<1x256xf32>
    %582 = arith.mulf %581, %498 : vector<1x256xf32>
    %583 = arith.addf %580, %582 : vector<1x256xf32>
    %584 = vector.broadcast %18 : f32 to vector<1x256xf32>
    %585 = arith.mulf %584, %504 : vector<1x256xf32>
    %586 = arith.addf %583, %585 : vector<1x256xf32>
    %587 = vector.broadcast %19 : f32 to vector<1x256xf32>
    %588 = arith.mulf %587, %507 : vector<1x256xf32>
    %589 = arith.addf %586, %588 : vector<1x256xf32>
    %590 = vector.broadcast %20 : f32 to vector<1x256xf32>
    %591 = arith.mulf %590, %511 : vector<1x256xf32>
    %592 = arith.addf %589, %591 : vector<1x256xf32>
    %593 = vector.broadcast %21 : f32 to vector<1x256xf32>
    %594 = arith.mulf %593, %514 : vector<1x256xf32>
    %595 = arith.addf %592, %594 : vector<1x256xf32>
    %596 = vector.broadcast %22 : f32 to vector<1x256xf32>
    %597 = arith.mulf %596, %500 : vector<1x256xf32>
    %598 = arith.addf %595, %597 : vector<1x256xf32>
    %599 = vector.broadcast %23 : f32 to vector<1x256xf32>
    %600 = arith.mulf %599, %517 : vector<1x256xf32>
    %601 = arith.addf %598, %600 : vector<1x256xf32>
    %602 = vector.broadcast %24 : f32 to vector<1x256xf32>
    %603 = arith.mulf %602, %521 : vector<1x256xf32>
    %604 = arith.addf %601, %603 : vector<1x256xf32>
    %605 = vector.broadcast %25 : f32 to vector<1x256xf32>
    %606 = arith.mulf %605, %524 : vector<1x256xf32>
    %607 = arith.addf %604, %606 : vector<1x256xf32>
    %608 = vector.broadcast %26 : f32 to vector<1x256xf32>
    %609 = arith.mulf %608, %528 : vector<1x256xf32>
    %610 = arith.addf %607, %609 : vector<1x256xf32>
    %c1_122 = arith.constant 1 : index
    %c0_123 = arith.constant 0 : index
    %c0_124 = arith.constant 0 : index
    %611 = vector.load %arg5[%c1_122, %c0_123, %c0_124] : memref<2x3x256xf32, #tpu.memory_space<vmem>>, vector<1x1x256xf32>
    %612 = vector.shape_cast %611 : vector<1x1x256xf32> to vector<1x256xf32>
    %613 = vector.shape_cast %610 : vector<1x256xf32> to vector<1x1x256xf32>
    tpu.vector_store %arg5[%c1_122, %c0_123, %c0_124], %613 {strides = array<i32>} : memref<2x3x256xf32, #tpu.memory_space<vmem>>, vector<1x1x256xf32>,
    %614 = vector.broadcast %82 : f32 to vector<1x256xf32>
    %615 = vector.broadcast %27 : f32 to vector<1x256xf32>
    %616 = arith.mulf %615, %444 : vector<1x256xf32>
    %617 = arith.addf %614, %616 : vector<1x256xf32>
    %618 = vector.broadcast %28 : f32 to vector<1x256xf32>
    %619 = arith.mulf %618, %447 : vector<1x256xf32>
    %620 = arith.addf %617, %619 : vector<1x256xf32>
    %621 = vector.broadcast %29 : f32 to vector<1x256xf32>
    %622 = arith.mulf %621, %451 : vector<1x256xf32>
    %623 = arith.addf %620, %622 : vector<1x256xf32>
    %624 = vector.broadcast %30 : f32 to vector<1x256xf32>
    %625 = arith.mulf %624, %454 : vector<1x256xf32>
    %626 = arith.addf %623, %625 : vector<1x256xf32>
    %627 = vector.broadcast %31 : f32 to vector<1x256xf32>
    %628 = arith.mulf %627, %440 : vector<1x256xf32>
    %629 = arith.addf %626, %628 : vector<1x256xf32>
    %630 = vector.broadcast %32 : f32 to vector<1x256xf32>
    %631 = arith.mulf %630, %457 : vector<1x256xf32>
    %632 = arith.addf %629, %631 : vector<1x256xf32>
    %633 = vector.broadcast %33 : f32 to vector<1x256xf32>
    %634 = arith.mulf %633, %461 : vector<1x256xf32>
    %635 = arith.addf %632, %634 : vector<1x256xf32>
    %636 = vector.broadcast %34 : f32 to vector<1x256xf32>
    %637 = arith.mulf %636, %464 : vector<1x256xf32>
    %638 = arith.addf %635, %637 : vector<1x256xf32>
    %639 = vector.broadcast %35 : f32 to vector<1x256xf32>
    %640 = arith.mulf %639, %468 : vector<1x256xf32>
    %641 = arith.addf %638, %640 : vector<1x256xf32>
    %642 = vector.broadcast %36 : f32 to vector<1x256xf32>
    %643 = arith.mulf %642, %474 : vector<1x256xf32>
    %644 = arith.addf %641, %643 : vector<1x256xf32>
    %645 = vector.broadcast %37 : f32 to vector<1x256xf32>
    %646 = arith.mulf %645, %477 : vector<1x256xf32>
    %647 = arith.addf %644, %646 : vector<1x256xf32>
    %648 = vector.broadcast %38 : f32 to vector<1x256xf32>
    %649 = arith.mulf %648, %481 : vector<1x256xf32>
    %650 = arith.addf %647, %649 : vector<1x256xf32>
    %651 = vector.broadcast %39 : f32 to vector<1x256xf32>
    %652 = arith.mulf %651, %484 : vector<1x256xf32>
    %653 = arith.addf %650, %652 : vector<1x256xf32>
    %654 = vector.broadcast %40 : f32 to vector<1x256xf32>
    %655 = arith.mulf %654, %470 : vector<1x256xf32>
    %656 = arith.addf %653, %655 : vector<1x256xf32>
    %657 = vector.broadcast %41 : f32 to vector<1x256xf32>
    %658 = arith.mulf %657, %487 : vector<1x256xf32>
    %659 = arith.addf %656, %658 : vector<1x256xf32>
    %660 = vector.broadcast %42 : f32 to vector<1x256xf32>
    %661 = arith.mulf %660, %491 : vector<1x256xf32>
    %662 = arith.addf %659, %661 : vector<1x256xf32>
    %663 = vector.broadcast %43 : f32 to vector<1x256xf32>
    %664 = arith.mulf %663, %494 : vector<1x256xf32>
    %665 = arith.addf %662, %664 : vector<1x256xf32>
    %666 = vector.broadcast %44 : f32 to vector<1x256xf32>
    %667 = arith.mulf %666, %498 : vector<1x256xf32>
    %668 = arith.addf %665, %667 : vector<1x256xf32>
    %669 = vector.broadcast %45 : f32 to vector<1x256xf32>
    %670 = arith.mulf %669, %504 : vector<1x256xf32>
    %671 = arith.addf %668, %670 : vector<1x256xf32>
    %672 = vector.broadcast %46 : f32 to vector<1x256xf32>
    %673 = arith.mulf %672, %507 : vector<1x256xf32>
    %674 = arith.addf %671, %673 : vector<1x256xf32>
    %675 = vector.broadcast %47 : f32 to vector<1x256xf32>
    %676 = arith.mulf %675, %511 : vector<1x256xf32>
    %677 = arith.addf %674, %676 : vector<1x256xf32>
    %678 = vector.broadcast %48 : f32 to vector<1x256xf32>
    %679 = arith.mulf %678, %514 : vector<1x256xf32>
    %680 = arith.addf %677, %679 : vector<1x256xf32>
    %681 = vector.broadcast %49 : f32 to vector<1x256xf32>
    %682 = arith.mulf %681, %500 : vector<1x256xf32>
    %683 = arith.addf %680, %682 : vector<1x256xf32>
    %684 = vector.broadcast %50 : f32 to vector<1x256xf32>
    %685 = arith.mulf %684, %517 : vector<1x256xf32>
    %686 = arith.addf %683, %685 : vector<1x256xf32>
    %687 = vector.broadcast %51 : f32 to vector<1x256xf32>
    %688 = arith.mulf %687, %521 : vector<1x256xf32>
    %689 = arith.addf %686, %688 : vector<1x256xf32>
    %690 = vector.broadcast %52 : f32 to vector<1x256xf32>
    %691 = arith.mulf %690, %524 : vector<1x256xf32>
    %692 = arith.addf %689, %691 : vector<1x256xf32>
    %693 = vector.broadcast %53 : f32 to vector<1x256xf32>
    %694 = arith.mulf %693, %528 : vector<1x256xf32>
    %695 = arith.addf %692, %694 : vector<1x256xf32>
    %c1_125 = arith.constant 1 : index
    %c1_126 = arith.constant 1 : index
    %c0_127 = arith.constant 0 : index
    %696 = vector.load %arg5[%c1_125, %c1_126, %c0_127] : memref<2x3x256xf32, #tpu.memory_space<vmem>>, vector<1x1x256xf32>
    %697 = vector.shape_cast %696 : vector<1x1x256xf32> to vector<1x256xf32>
    %698 = vector.shape_cast %695 : vector<1x256xf32> to vector<1x1x256xf32>
    tpu.vector_store %arg5[%c1_125, %c1_126, %c0_127], %698 {strides = array<i32>} : memref<2x3x256xf32, #tpu.memory_space<vmem>>, vector<1x1x256xf32>,
    %699 = vector.broadcast %83 : f32 to vector<1x256xf32>
    %700 = vector.broadcast %54 : f32 to vector<1x256xf32>
    %701 = arith.mulf %700, %444 : vector<1x256xf32>
    %702 = arith.addf %699, %701 : vector<1x256xf32>
    %703 = vector.broadcast %55 : f32 to vector<1x256xf32>
    %704 = arith.mulf %703, %447 : vector<1x256xf32>
    %705 = arith.addf %702, %704 : vector<1x256xf32>
    %706 = vector.broadcast %56 : f32 to vector<1x256xf32>
    %707 = arith.mulf %706, %451 : vector<1x256xf32>
    %708 = arith.addf %705, %707 : vector<1x256xf32>
    %709 = vector.broadcast %57 : f32 to vector<1x256xf32>
    %710 = arith.mulf %709, %454 : vector<1x256xf32>
    %711 = arith.addf %708, %710 : vector<1x256xf32>
    %712 = vector.broadcast %58 : f32 to vector<1x256xf32>
    %713 = arith.mulf %712, %440 : vector<1x256xf32>
    %714 = arith.addf %711, %713 : vector<1x256xf32>
    %715 = vector.broadcast %59 : f32 to vector<1x256xf32>
    %716 = arith.mulf %715, %457 : vector<1x256xf32>
    %717 = arith.addf %714, %716 : vector<1x256xf32>
    %718 = vector.broadcast %60 : f32 to vector<1x256xf32>
    %719 = arith.mulf %718, %461 : vector<1x256xf32>
    %720 = arith.addf %717, %719 : vector<1x256xf32>
    %721 = vector.broadcast %61 : f32 to vector<1x256xf32>
    %722 = arith.mulf %721, %464 : vector<1x256xf32>
    %723 = arith.addf %720, %722 : vector<1x256xf32>
    %724 = vector.broadcast %62 : f32 to vector<1x256xf32>
    %725 = arith.mulf %724, %468 : vector<1x256xf32>
    %726 = arith.addf %723, %725 : vector<1x256xf32>
    %727 = vector.broadcast %63 : f32 to vector<1x256xf32>
    %728 = arith.mulf %727, %474 : vector<1x256xf32>
    %729 = arith.addf %726, %728 : vector<1x256xf32>
    %730 = vector.broadcast %64 : f32 to vector<1x256xf32>
    %731 = arith.mulf %730, %477 : vector<1x256xf32>
    %732 = arith.addf %729, %731 : vector<1x256xf32>
    %733 = vector.broadcast %65 : f32 to vector<1x256xf32>
    %734 = arith.mulf %733, %481 : vector<1x256xf32>
    %735 = arith.addf %732, %734 : vector<1x256xf32>
    %736 = vector.broadcast %66 : f32 to vector<1x256xf32>
    %737 = arith.mulf %736, %484 : vector<1x256xf32>
    %738 = arith.addf %735, %737 : vector<1x256xf32>
    %739 = vector.broadcast %67 : f32 to vector<1x256xf32>
    %740 = arith.mulf %739, %470 : vector<1x256xf32>
    %741 = arith.addf %738, %740 : vector<1x256xf32>
    %742 = vector.broadcast %68 : f32 to vector<1x256xf32>
    %743 = arith.mulf %742, %487 : vector<1x256xf32>
    %744 = arith.addf %741, %743 : vector<1x256xf32>
    %745 = vector.broadcast %69 : f32 to vector<1x256xf32>
    %746 = arith.mulf %745, %491 : vector<1x256xf32>
    %747 = arith.addf %744, %746 : vector<1x256xf32>
    %748 = vector.broadcast %70 : f32 to vector<1x256xf32>
    %749 = arith.mulf %748, %494 : vector<1x256xf32>
    %750 = arith.addf %747, %749 : vector<1x256xf32>
    %751 = vector.broadcast %71 : f32 to vector<1x256xf32>
    %752 = arith.mulf %751, %498 : vector<1x256xf32>
    %753 = arith.addf %750, %752 : vector<1x256xf32>
    %754 = vector.broadcast %72 : f32 to vector<1x256xf32>
    %755 = arith.mulf %754, %504 : vector<1x256xf32>
    %756 = arith.addf %753, %755 : vector<1x256xf32>
    %757 = vector.broadcast %73 : f32 to vector<1x256xf32>
    %758 = arith.mulf %757, %507 : vector<1x256xf32>
    %759 = arith.addf %756, %758 : vector<1x256xf32>
    %760 = vector.broadcast %74 : f32 to vector<1x256xf32>
    %761 = arith.mulf %760, %511 : vector<1x256xf32>
    %762 = arith.addf %759, %761 : vector<1x256xf32>
    %763 = vector.broadcast %75 : f32 to vector<1x256xf32>
    %764 = arith.mulf %763, %514 : vector<1x256xf32>
    %765 = arith.addf %762, %764 : vector<1x256xf32>
    %766 = vector.broadcast %76 : f32 to vector<1x256xf32>
    %767 = arith.mulf %766, %500 : vector<1x256xf32>
    %768 = arith.addf %765, %767 : vector<1x256xf32>
    %769 = vector.broadcast %77 : f32 to vector<1x256xf32>
    %770 = arith.mulf %769, %517 : vector<1x256xf32>
    %771 = arith.addf %768, %770 : vector<1x256xf32>
    %772 = vector.broadcast %78 : f32 to vector<1x256xf32>
    %773 = arith.mulf %772, %521 : vector<1x256xf32>
    %774 = arith.addf %771, %773 : vector<1x256xf32>
    %775 = vector.broadcast %79 : f32 to vector<1x256xf32>
    %776 = arith.mulf %775, %524 : vector<1x256xf32>
    %777 = arith.addf %774, %776 : vector<1x256xf32>
    %778 = vector.broadcast %80 : f32 to vector<1x256xf32>
    %779 = arith.mulf %778, %528 : vector<1x256xf32>
    %780 = arith.addf %777, %779 : vector<1x256xf32>
    %c1_128 = arith.constant 1 : index
    %c2_129 = arith.constant 2 : index
    %c0_130 = arith.constant 0 : index
    %781 = vector.load %arg5[%c1_128, %c2_129, %c0_130] : memref<2x3x256xf32, #tpu.memory_space<vmem>>, vector<1x1x256xf32>
    %782 = vector.shape_cast %781 : vector<1x1x256xf32> to vector<1x256xf32>
    %783 = vector.shape_cast %780 : vector<1x256xf32> to vector<1x1x256xf32>
    tpu.vector_store %arg5[%c1_128, %c2_129, %c0_130], %783 {strides = array<i32>} : memref<2x3x256xf32, #tpu.memory_space<vmem>>, vector<1x1x256xf32>,
    return
  }
  func.func @transform_0(%arg0: i32) -> i32 {
    %c0_i32 = arith.constant 0 : i32
    %c0_i32_0 = arith.constant 0 : i32
    return %c0_i32 : i32
  }
  func.func @transform_1(%arg0: i32) -> i32 {
    %c0_i32 = arith.constant 0 : i32
    %c0_i32_0 = arith.constant 0 : i32
    return %c0_i32 : i32
  }
  func.func @transform_2(%arg0: i32) -> (i32, i32) {
    %c0_i32 = arith.constant 0 : i32
    %c0_i32_0 = arith.constant 0 : i32
    %c0_i32_1 = arith.constant 0 : i32
    return %c0_i32, %c0_i32_0 : i32, i32
  }
  func.func @transform_3(%arg0: i32) -> (i32, i32, i32) {
    %c0_i32 = arith.constant 0 : i32
    %c0_i32_0 = arith.constant 0 : i32
    %c0_i32_1 = arith.constant 0 : i32
    return %arg0, %c0_i32, %c0_i32_0 : i32, i32, i32
  }
  func.func @transform_4(%arg0: i32) -> (i32, i32, i32) {
    %c0_i32 = arith.constant 0 : i32
    %c0_i32_0 = arith.constant 0 : i32
    %c0_i32_1 = arith.constant 0 : i32
    return %arg0, %c0_i32, %c0_i32_0 : i32, i32, i32
  }
}

</mosaic_0001>

<bundles_post_ra>
// kernel: tpu_custom_call.1
= control target key start
LH: loop header
LB: loop body
LE: loop exit
PB: predicated region body
PF: predicated region fallthrough
CT: control target
= control target key end

     0   :  { %s4300_s0 = inlined_call_operand.vmem [shape: f32[81], index: 0, kind: input, shape index: {}]   ;;  %s4301_s1 = inlined_call_operand.vmem [shape: f32[3], index: 1, kind: input, shape index: {}]   ;;  %s4302_s2 = inlined_call_operand.vmem [shape: s32[1,256], index: 2, kind: input, shape index: {}]   ;;  %s4303_s3 = inlined_call_operand.vmem [shape: f32[2,3,256], index: 3, kind: input, shape index: {}]   ;;  %s4304_s4 = inlined_call_operand.vmem [shape: f32[2,3,256], index: 4, kind: output, shape index: {}]  }
   0x1   :  { %4456 = sst [smem:[#allocation82_spill]] %s4303_s3 }
   0x2   :  { %4457 = sst [smem:[#allocation83_spill]] %s4304_s4 }
   0x3   :  { %9 = vsyncpa [#allocation3], 0  ;;  %s17_s17 = sshll.u32 %s4300_s0, 4  ;;  %s18_s17 = int_to_ptr.vmem [resolvable:$true] %s17_s17 }
   0x4   :  { %10 = vsyncpa [#allocation5], 0  ;;  %s27_s20 = sshll.u32 %s4301_s1, 4  ;;  %s2350_s21 = scalar_lea.vmem %s18_s17, 16  ;;  %s28_s20 = int_to_ptr.vmem [resolvable:$true] %s27_s20 }
   0x5   :  { %p2351_p0 = scmp.ne.s32.totalorder %s18_s17, %s2350_s21  ;;  %p2355_p1 = scmp.lt.s32.totalorder %s18_s17, %s18_s17 }
   0x6   :  { %p2356_p2 = scmp.lt.s32.totalorder %s2350_s21, %s2350_s21 }
   0x8   :  { %p2357_p3 = por %p2356_p2, %p2355_p1 }
   0xa   :  { %p2358_p4 = pnand %p2357_p3, %p2351_p0 }
   0xc   :  { %2361 = shalt.err (!%p2358_p4)
}
   0xd   :  { %s2378_s22 = smov [#allocation2]   ;;  %s2362_s23 = scalar_lea.vmem %s28_s20, 16 }
   0xe   :  { %20 = dma.vmem_to_smem %s18_s17, 16, %s2378_s22, [#allocation3]  }
   0xf   :  { %p2363_p5 = scmp.ne.s32.totalorder %s28_s20, %s2362_s23  ;;  %p2367_p6 = scmp.lt.s32.totalorder %s28_s20, %s28_s20 }
  0x10   :  { %p2368_p7 = scmp.lt.s32.totalorder %s2362_s23, %s2362_s23 }
  0x12   :  { %p2369_p8 = por %p2368_p7, %p2367_p6 }
  0x14   :  { %p2370_p9 = pnand %p2369_p8, %p2363_p5 }
  0x16   :  { %2373 = shalt.err (!%p2370_p9)
}
  0x17   :  { %s2379_s0 = smov [#allocation4]  }
  0x18   :  { %30 = dma.vmem_to_smem %s28_s20, 16, %s2379_s0, [#allocation5]  }
  0x19   :  { %2374 = dma.done.wait [#allocation3], 16  }
  0x1a   :  { %2375 = vsyncadd [#allocation3], 4294967280 }
  0x1b   :  { %2376 = dma.done.wait [#allocation5], 16  }
  0x1c   :  { %2377 = vsyncadd [#allocation5], 4294967280 }
  0x1d   :  { %41 = sfence }
  0x1e   :  { %v4343_v0 = vlaneseq  ;;  %v2427_v2 = vld [vmem:[%s4303_s3] ss:$4 sm:$0x3]  ;;  %s4322_s25 = smov 16   ;;  %s4319_s26 = smov 17   ;;  %v2389_v20 = vmov 0  }
  0x1f   :  { %s4311_s27 = smov 15   ;;  %s4315_s28 = smov 1   ;;  %v2456_v7 = vld [vmem:[%s4303_s3 + $0x1] ss:$4 sm:$0x3] }
  0x20   :  { %v2422_v1 = vshrl.u32 %v4343_v0, 7  ;;  %s4313_s29 = smov 127   ;;  %s4309_s30 = smov 113   ;;  %v2327_v10 = vld [vmem:[%s4303_s3 + $0x2] ss:$4 sm:$0x3] }
  0x21   :  { %s4307_s5 = smov 112   ;;  %s4305_s8 = smov 111   ;;  %v2512_v13 = vld [vmem:[%s4303_s3 + $0x8] ss:$4 sm:$0x3]  ;;  %v2637_v26 = vand.u32 127, %v4343_v0 }
  0x22   :  { %v2430_v3 = vsub.s32 0, %v2422_v1  ;;  %v2433_v4 = vsub.s32 1, %v2422_v1  ;;  %s2474_s9 = sld [smem:[#allocation2 + $0x1]]  ;;  %v2587_v16 = vld [vmem:[%s4302_s2] sm:$0x3] }
  0x23   :  { %s2478_s10 = sld [smem:[#allocation2 + $0x1c]]  ;;  %vm4414_vm0 = vcmp.ge.s32.totalorder %v2587_v16, 1  ;;  %vm4411_vm1 = vcmp.le.s32.totalorder %v2587_v16, 14  ;;  %v2388_v17 = vmov 1966171168   ;;  %v2695_v44 = vadd.s32 128, %v2637_v26 }
  0x24   :  { %v141_v5 = vrot.slane %v2427_v2, %v2430_v3  ;;  %v145_v6 = vrot.slane %v2427_v2, %v2433_v4  ;;  %v294_v8 = vrot.slane %v2456_v7, %v2433_v4  ;;  %v290_v9 = vrot.slane %v2456_v7, %v2430_v3  ;;  %s2480_s11 = sld [smem:[#allocation2 + $0x37]]  ;;  %v2608_v19 = vld [vmem:[%s4303_s3 + $0x9] ss:$4 sm:$0x3] }
  0x25   :  { %s2482_s12 = sld [smem:[#allocation2]]  ;;  %v2502_v11 = vrot.slane %v2327_v10, %v2433_v4  ;;  %v2505_v12 = vrot.slane %v2327_v10, %v2430_v3  ;;  %v1257_v14 = vrot.slane %v2512_v13, %v2433_v4  ;;  %v1253_v15 = vrot.slane %v2512_v13, %v2430_v3  ;;  %v2332_v37 = vld [vmem:[%s4303_s3 + $0xa] ss:$4 sm:$0x3]  ;;  %4495 = vst [vmem:[#allocation39_spill] sm:$0xff] %v2695_v44 }
  0x26   :  { %170 = vrot.lane.b32.xlu1 %v141_v5, %s4322_s25  ;;  %148 = vrot.lane.b32.xlu0 %v141_v5, %s4319_s26  ;;  %s2484_s13 = sld [smem:[#allocation2 + $0x1b]]  ;;  %v212_v18 = vunpack.c.l.s4 %v2388_v17  ;;  %v2614_v21 = vsel %vm4414_vm0, 1, %v2389_v20  ;;  %v2620_v22 = vsel %vm4411_vm1, 1, %v2389_v20  ;;  %v2626_v23 = vrot.slane %v2608_v19, %v2433_v4 }
  0x27   :  { %s2488_s14 = sld [smem:[#allocation2 + $0x36]]  ;;  %v2634_v25 = vrot.slane %v2608_v19, %v2430_v3  ;;  %v159_v27 = vrot.slane %v2614_v21, %v2430_v3  ;;  %v163_v28 = vrot.slane %v2614_v21, %v2433_v4  ;;  %v190_v31 = vrot.slane %v2620_v22, %v2430_v3 }
  0x28   :  { %s2493_s17 = sld [smem:[#allocation4]]  ;;  %v213_v24 = vunpack.c.0.s8 %v212_v18  ;;  %v2646_v29 = vstv %s2474_s9  ;;  %v2714_v49 = vrot.slane %v2332_v37, %v2433_v4  ;;  %v2726_v53 = vrot.slane %v2332_v37, %v2430_v3 }
  0x29   :  { %s2495_s18 = sld [smem:[#allocation4 + $0x1]]  ;;  %4485 = vst [vmem:[#allocation30_spill] sm:$0xff] %v2646_v29  ;;  %v2649_v30 = vstv %s2478_s10  ;;  %vm4416_vm2 = vcmp.ge.s32.totalorder %v2637_v26, 16  ;;  %vm2778_vm3 = vcmp.ne.s32.totalorder %v159_v27, 0  ;;  %vm4419_vm4 = vcmp.lt.s32.totalorder %v2637_v26, 16 }
  0x2a   :  { %172 = vrot.lane.b32.xlu1 %v145_v6, %s4322_s25  ;;  %150 = vrot.lane.b32.xlu0 %v145_v6, %s4319_s26  ;;  %s2497_s19 = sld [smem:[#allocation4 + $0x2]]  ;;  %4486 = vst [vmem:[#allocation31_spill] sm:$0xff] %v2649_v30  ;;  %v2657_v33 = vstv %s2480_s11  ;;  %v2680_v41 = vsub.s32 %v213_v24, %v2422_v1  ;;  %vm4452_vm5 = vcmp.lt.s32.totalorder %v2637_v26, 17  ;;  %vm2845_vm6 = vcmp.ne.s32.totalorder %v163_v28, 0  ;;  %vm2945_vm10 = vmand %vm4416_vm2, %vm2778_vm3 }
  0x2b   :  { %s2507_s20 = sld [smem:[#allocation2 + $0x2]]  ;;  %4487 = vst [vmem:[#allocation32_spill] sm:$0xff] %v2657_v33  ;;  %v2660_v34 = vstv %s2482_s12  ;;  %s4492_s12 = smov 1   ;;  %vm2852_vm7 = vcmp.ne.s32.totalorder %v190_v31, 0  ;;  %vm4415_vm8 = vcmp.lt.s32.totalorder %v2637_v26, 15  ;;  %v4550_v35 = vrot.slane %v2620_v22, %v2433_v4 }
  0x2c   :  { %s2514_s23 = sld [smem:[#allocation2 + $0x1d]]  ;;  %4488 = vst [vmem:[#allocation33_spill] sm:$0xff] %v2660_v34  ;;  %v2674_v39 = vstv %s2484_s13  ;;  %vm4398_vm11 = vcmp.lt.s32.totalorder %v2637_v26, 1  ;;  %vm4397_vm12 = vcmp.lt.s32.totalorder %v2637_v26, 127  ;;  %vm2997_vm13 = vmand %vm4416_vm2, %vm2852_vm7  ;;  %vm133_vm14 = vcmp.lt.s32.totalorder %v2695_v44, 240 }
  0x2d   :  { %s2516_s0 = sld [smem:[#allocation2 + $0x38]]  ;;  %4490 = vst [vmem:[#allocation35_spill] sm:$0xff] %v2674_v39  ;;  %v2677_v40 = vstv %s2488_s14  ;;  %vm2900_vm9 = vcmp.ne.s32.totalorder %v4550_v35, 0  ;;  %vm257_vm15 = vcmp.lt.s32.totalorder %v2637_v26, 113 }
  0x2e   :  { %181 = vrot.lane.b32.xlu1 %v145_v6, %s4311_s27  ;;  %179 = vrot.lane.b32.xlu0 %v141_v5, %s4311_s27  ;;  %s2518_s1 = sld [smem:[#allocation2 + $0x3]]  ;;  %v2671_v38 = vstv %s2493_s17  ;;  %4491 = vst [vmem:[#allocation36_spill] sm:$0xff] %v2677_v40 }
  0x2f   :  { %s2528_s24 = sld [smem:[#allocation2 + $0x1e]]  ;;  %4489 = vst [vmem:[#allocation34_spill] sm:$0xff] %v2671_v38  ;;  %v2689_v42 = vstv %s2495_s18 }
  0x30   :  { %s2530_s6 = sld [smem:[#allocation2 + $0x39]]  ;;  %4493 = vst [vmem:[#allocation37_spill] sm:$0xff] %v2689_v42  ;;  %v2692_v43 = vstv %s2497_s19 }
  0x31   :  { %s2532_s7 = sld [smem:[#allocation2 + $0x5]]  ;;  %4494 = vst [vmem:[#allocation38_spill] sm:$0xff] %v2692_v43  ;;  %v2705_v46 = vstv %s2507_s20 }
  0x32   :  { %203 = vrot.lane.b32.xlu1 %v145_v6, %s4315_s28  ;;  %201 = vrot.lane.b32.xlu0 %v141_v5, %s4315_s28  ;;  %s2534_s15 = sld [smem:[#allocation2 + $0x20]]  ;;  %v2719_v50 = vstv %s2514_s23  ;;  %s4505_s23 = smov 17  }
  0x33   :  { %s2538_s16 = sld [smem:[#allocation2 + $0x3b]]  ;;  %v2722_v51 = vstv %s2516_s0 }
  0x34   :  { %s2540_s21 = sld [smem:[#allocation2 + $0x4]] }
  0x35   :  { %4458 = sst [smem:[#allocation8_spill]] %s2528_s24 }
  0x36   :  { %229 = vrot.lane.b32.xlu1 %v145_v6, %s4313_s29  ;;  %227 = vrot.lane.b32.xlu0 %v141_v5, %s4313_s29  ;;  %4459 = sst [smem:[#allocation9_spill]] %s2530_s6 }
  0x37   :  { %4460 = sst [smem:[#allocation10_spill]] %s2532_s7 }
  0x38   :  { %4461 = sst [smem:[#allocation11_spill]] %s2534_s15 }
  0x39   :  { %4462 = sst [smem:[#allocation12_spill]] %s2538_s16 }
  0x3a   :  { %255 = vrot.lane.b32.xlu1 %v145_v6, %s4309_s30  ;;  %253 = vrot.lane.b32.xlu0 %v141_v5, %s4309_s30  ;;  %s2542_s22 = sld [smem:[#allocation2 + $0x6]]  ;;  %v4348_v32 = vstv %s2540_s21 }
  0x3b   :  { %s2560_s4 = sld [smem:[#allocation2 + $0x3d]]  ;;  %v2700_v45 = vmul.f32 %v4348_v32, %v2427_v2 }
  0x3c   :  { %s2564_s16 = sld [smem:[#allocation2 + $0x23]] }
  0x3d   :  { %s2574_s15 = sld [smem:[#allocation2 + $0x3f]] }
  0x3e   :  { %266 = vrot.lane.b32.xlu1 %v145_v6, %s4307_s5  ;;  %264 = vrot.lane.b32.xlu0 %v141_v5, %s4307_s5  ;;  %s2601_s2 = sld [smem:[#allocation2 + $0x27]] }
  0x3f   :  { %s2682_s11 = sld [smem:[#allocation2 + $0x2a]] }
  0x40   :  { %4463 = sst [smem:[#allocation13_spill]] %s2542_s22 }
  0x41   :  { %4469 = sst [smem:[#allocation19_spill]] %s2560_s4 }
  0x42   :  { %275 = vrot.lane.b32.xlu1 %v145_v6, %s4305_s8  ;;  %273 = vrot.lane.b32.xlu0 %v141_v5, %s4305_s8  ;;  %s2562_s22 = sld [smem:[#allocation2 + $0x8]] }
  0x43   :  { %4471 = sst [smem:[#allocation21_spill]] %s2564_s16 }
  0x44   :  { %4475 = sst [smem:[#allocation24_spill]] %s2574_s15 }
  0x45   :  { %s2578_s4 = sld [smem:[#allocation2 + $0xa]] }
  0x46   :  { %299 = vrot.lane.b32.xlu1 %v294_v8, %s4319_s26  ;;  %297 = vrot.lane.b32.xlu0 %v290_v9, %s4319_s26  ;;  %s2582_s16 = sld [smem:[#allocation2 + $0x40]] }
  0x47   :  { %s2593_s15 = sld [smem:[#allocation2 + $0x26]] }
  0x48   :  { %4470 = sst [smem:[#allocation20_spill]] %s2562_s22 }
  0x49   :  { %s2580_s22 = sld [smem:[#allocation2 + $0x25]] }
  0x4a   :  { %307 = vrot.lane.b32.xlu1 %v294_v8, %s4322_s25  ;;  %305 = vrot.lane.b32.xlu0 %v290_v9, %s4322_s25  ;;  %s2702_s14 = sld [smem:[#allocation2 + $0x43]] }
  0x4b   :  { %s4498_s18 = sld [smem:[#allocation13_spill]]  ;;  %v2816_v63 = vstv %s2578_s4 }
  0x4c   :  { %s2716_s19 = sld [smem:[#allocation2 + $0x45]]  ;;  %4529 = vst [vmem:[#allocation52_spill] sm:$0xff] %v2816_v63  ;;  %v2830_v59 = vstv %s2582_s16  ;;  %s4557_s16 = smov 15  }
  0x4d   :  { %s2728_s9 = sld [smem:[#allocation2 + $0x10]]  ;;  %4532 = vst [vmem:[#allocation55_spill] sm:$0xff] %v2830_v59  ;;  %v2857_v54 = vstv %s2593_s15 }
  0x4e   :  { %315 = vrot.lane.b32.xlu1 %v294_v8, %s4311_s27  ;;  %313 = vrot.lane.b32.xlu0 %v290_v9, %s4311_s27  ;;  %s2552_s27 = sld [smem:[#allocation2 + $0x3c]]  ;;  %4541 = vst [vmem:[#allocation58_spill] sm:$0xff] %v2857_v54 }
  0x4f   :  { %4477 = sst [smem:[#allocation25_spill]] %s2580_s22 }
  0x50   :  { %s2598_s22 = sld [smem:[#allocation2 + $0xc]]  ;;  %v4350_v62 = vstv %s2702_s14 }
  0x51   :  { %s4506_s0 = sld [smem:[#allocation20_spill]]  ;;  %v2744_v60 = vstv %s4498_s18 }
  0x52   :  { %323 = vrot.lane.b32.xlu1 %v294_v8, %s4315_s28  ;;  %321 = vrot.lane.b32.xlu0 %v290_v9, %s4315_s28  ;;  %4499 = sst [smem:[#allocation13_spill]] %s2716_s19  ;;  %4507 = vst [vmem:[#allocation40_spill] sm:$0xff] %v2744_v60 }
  0x53   :  { %s2734_s19 = sld [smem:[#allocation2 + $0x2b]] }
  0x54   :  { %4466 = sst [smem:[#allocation16_spill]] %s2552_s27 }
  0x55   :  { %s2570_s27 = sld [smem:[#allocation2 + $0x9]] }
  0x56   :  { %348 = vrot.lane.b32.xlu1 %v294_v8, %s4313_s29  ;;  %346 = vrot.lane.b32.xlu0 %v290_v9, %s4313_s29  ;;  %s2554_s29 = sld [smem:[#allocation2 + $0x7]] }
  0x57   :  { %4480 = sst [smem:[#allocation27_spill]] %s2598_s22 }
  0x58   :  { %s2616_s22 = sld [smem:[#allocation2 + $0xd]] }
  0x59   :  { %s4501_s10 = sld [smem:[#allocation16_spill]] }
  0x5a   :  { %373 = vrot.lane.b32.xlu1 %v294_v8, %s4309_s30  ;;  %371 = vrot.lane.b32.xlu0 %v290_v9, %s4309_s30  ;;  %s2550_s30 = sld [smem:[#allocation2 + $0x3a]] }
  0x5b   :  { %4473 = sst [smem:[#allocation22_spill]] %s2570_s27 }
  0x5c   :  { %4467 = sst [smem:[#allocation17_spill]] %s2554_s29 }
  0x5d   :  { %s2572_s29 = sld [smem:[#allocation2 + $0x24]] }
  0x5e   :  { %381 = vrot.lane.b32.xlu1 %v294_v8, %s4307_s5  ;;  %379 = vrot.lane.b32.xlu0 %v290_v9, %s4307_s5  ;;  %s2548_s5 = sld [smem:[#allocation2 + $0x21]] }
  0x5f   :  { %s2589_s27 = sld [smem:[#allocation2 + $0xb]]  ;;  %v2761_v5 = vstv %s4501_s10 }
  0x60   :  { %v4346_v48 = vstv %s2550_s30  ;;  %s4502_s3 = sld [smem:[#allocation17_spill]]  ;;  %4510 = vst [vmem:[#allocation42_spill] sm:$0xff] %v2761_v5 }
  0x61   :  { %s4508_s13 = sld [smem:[#allocation21_spill]]  ;;  %v2749_v61 = vmul.f32 %v4346_v48, %v2427_v2  ;;  %v4548_v48 = vstv %s2540_s21 }
  0x62   :  { %389 = vrot.lane.b32.xlu1 %v294_v8, %s4305_s8  ;;  %387 = vrot.lane.b32.xlu0 %v290_v9, %s4305_s8  ;;  %s2544_s8 = sld [smem:[#allocation2 + $0x1f]]  ;;  %v4345_v9 = vstv %s2616_s22 }
  0x63   :  { %4474 = sst [smem:[#allocation23_spill]] %s2572_s29  ;;  %s4478_s29 = smov 113   ;;  %v2821_v20 = vmul.f32 %v2456_v7, %v4345_v9  ;;  %v2878_v9 = vmul.f32 %v2456_v7, %v4350_v62 }
  0x64   :  { %4465 = sst [smem:[#allocation15_spill]] %s2548_s5 }
  0x65   :  { %s2568_s5 = sld [smem:[#allocation2 + $0x3e]]  ;;  %4530 = vst [vmem:[#allocation53_spill] sm:$0xff] %v2821_v20  ;;  %v2833_v58 = vstv %s2589_s27  ;;  %s4543_s27 = smov 127   ;;  %4546 = vst [vmem:[#allocation61_spill] sm:$0xff] %v2878_v9  ;;  %v2913_v20 = vstv %s2734_s19 }
  0x66   :  { %410 = vrot.lane.b32.xlu1 %v2502_v11, %s4319_s26  ;;  %408 = vrot.lane.b32.xlu0 %v2505_v12, %s4319_s26  ;;  %s4500_s20 = sld [smem:[#allocation15_spill]]  ;;  %v2766_v6 = vstv %s4502_s3  ;;  %4533 = vst [vmem:[#allocation56_spill] sm:$0xff] %v2833_v58  ;;  %4556 = vst [vmem:[#allocation67_spill] sm:$0xff] %v2913_v20 }
  0x67   :  { %s2751_s7 = sld [smem:[#allocation2 + $0x46]]  ;;  %4511 = vst [vmem:[#allocation43_spill] sm:$0xff] %v2766_v6 }
  0x68   :  { %4464 = sst [smem:[#allocation14_spill]] %s2544_s8  ;;  %v4347_v36 = vstv %s2544_s8 }
  0x69   :  { %v2710_v47 = vmul.f32 %v4347_v36, %v2427_v2  ;;  %s4504_s8 = sld [smem:[#allocation19_spill]]  ;;  %v2895_v36 = vmul.f32 %v2512_v13, %v4548_v48 }
  0x6a   :  { %1286 = vrot.lane.b32.xlu1 %v1257_v14, %s4315_s28  ;;  %1284 = vrot.lane.b32.xlu0 %v1253_v15, %s4315_s28  ;;  %s2558_s28 = sld [smem:[#allocation2 + $0x22]] }
  0x6b   :  { %s2763_s18 = sld [smem:[#allocation2 + $0x11]]  ;;  %v2789_v17 = vstv %s2568_s5  ;;  %4549 = vst [vmem:[#allocation63_spill] sm:$0xff] %v2895_v36 }
  0x6c   :  { %v2758_v1 = vstv %s4500_s20  ;;  %s4515_s17 = sld [smem:[#allocation23_spill]]  ;;  %4521 = vst [vmem:[#allocation48_spill] sm:$0xff] %v2789_v17 }
  0x6d   :  { %4509 = vst [vmem:[#allocation41_spill] sm:$0xff] %v2758_v1  ;;  %s2775_s6 = sld [smem:[#allocation2 + $0x2c]]  ;;  %v2924_v48 = vstv %s2751_s7  ;;  %s4577_s7 = smov 1  }
  0x6e   :  { %1262 = vrot.lane.b32.xlu1 %v1257_v14, %s4319_s26  ;;  %1260 = vrot.lane.b32.xlu0 %v1253_v15, %s4319_s26  ;;  %s4472_s26 = smov 127   ;;  %s4516_s24 = sld [smem:[#allocation24_spill]]  ;;  %4559 = vst [vmem:[#allocation68_spill] sm:$0xff] %v2924_v48 }
  0x6f   :  { %v2772_v8 = vstv %s4504_s8  ;;  %s4522_s3 = sld [smem:[#allocation25_spill]] }
  0x70   :  { %4468 = sst [smem:[#allocation18_spill]] %s2558_s28  ;;  %s4483_s28 = smov 111   ;;  %4513 = vst [vmem:[#allocation45_spill] sm:$0xff] %v2772_v8 }
  0x71   :  { %s2792_s8 = sld [smem:[#allocation2 + $0x47]]  ;;  %v2927_v32 = vstv %s2763_s18 }
  0x72   :  { %1270 = vrot.lane.b32.xlu1 %v1257_v14, %s4322_s25  ;;  %1268 = vrot.lane.b32.xlu0 %v1253_v15, %s4322_s25  ;;  %s4476_s25 = smov 15   ;;  %v2808_v37 = vstv %s4515_s17  ;;  %s2810_s20 = sld [smem:[#allocation2 + $0x12]]  ;;  %4560 = vst [vmem:[#allocation69_spill] sm:$0xff] %v2927_v32 }
  0x73   :  { %4526 = vst [vmem:[#allocation50_spill] sm:$0xff] %v2808_v37  ;;  %s2824_s10 = sld [smem:[#allocation2 + $0x2d]] }
  0x74   :  { %v2813_v0 = vstv %s4516_s24  ;;  %s2840_s17 = sld [smem:[#allocation2 + $0x48]] }
  0x75   :  { %4528 = vst [vmem:[#allocation51_spill] sm:$0xff] %v2813_v0  ;;  %v2827_v24 = vstv %s4522_s3  ;;  %s4544_s15 = sld [smem:[#allocation13_spill]] }
  0x76   :  { %1311 = vrot.lane.b32.xlu1 %v1257_v14, %s4472_s26  ;;  %1309 = vrot.lane.b32.xlu0 %v1253_v15, %s4472_s26  ;;  %s4481_s26 = smov 112   ;;  %4531 = vst [vmem:[#allocation54_spill] sm:$0xff] %v2827_v24  ;;  %s4558_s21 = sld [smem:[#allocation14_spill]] }
  0x77   :  { %v2933_v20 = vstv %s2792_s8  ;;  %s4595_s19 = sld [smem:[#allocation12_spill]] }
  0x78   :  { %4562 = vst [vmem:[#allocation71_spill] sm:$0xff] %v2933_v20  ;;  %s3917_s18 = sld [smem:[#allocation2 + $0x17]] }
  0x79   :  { %s3941_s3 = sld [smem:[#allocation2 + $0x32]] }
  0x7a   :  { %1278 = vrot.lane.b32.xlu1 %v1257_v14, %s4476_s25  ;;  %1276 = vrot.lane.b32.xlu0 %v1253_v15, %s4476_s25  ;;  %s2595_s25 = sld [smem:[#allocation2 + $0x41]]  ;;  %v2950_v22 = vstv %s2840_s17 }
  0x7b   :  { %v2907_v62 = vstv %s4544_s15  ;;  %4567 = vst [vmem:[#allocation74_spill] sm:$0xff] %v2950_v22  ;;  %s3946_s8 = sld [smem:[#allocation2 + $0x4d]] }
  0x7c   :  { %4554 = vst [vmem:[#allocation65_spill] sm:$0xff] %v2907_v62  ;;  %v2939_v62 = vstv %s2824_s10  ;;  %v4568_v20 = vstv %s4558_s21  ;;  %s4060_s10 = sld [smem:[#allocation2 + $0x18]] }
  0x7d   :  { %4564 = vst [vmem:[#allocation73_spill] sm:$0xff] %v2939_v62  ;;  %v4570_v62 = vstv %s2550_s30  ;;  %s4572_s30 = smov 113   ;;  %s4088_s17 = sld [smem:[#allocation2 + $0x4c]] }
  0x7e   :  { %1336 = vrot.lane.b32.xlu1 %v1257_v14, %s4478_s29  ;;  %1334 = vrot.lane.b32.xlu0 %v1253_v15, %s4478_s29  ;;  %s2628_s29 = sld [smem:[#allocation2 + $0xe]]  ;;  %v2962_v32 = vmul.f32 %v2512_v13, %v4570_v62 }
  0x7f   :  { %s4768_s21 = sld [smem:[#allocation82_spill]] }
  0x80   :  { %4479 = sst [smem:[#allocation26_spill]] %s2595_s25  ;;  %4571 = vst [vmem:[#allocation76_spill] sm:$0xff] %v2962_v32 }
  0x81   :  { %s2610_s25 = sld [smem:[#allocation2 + $0x42]] }
  0x82   :  { %1344 = vrot.lane.b32.xlu1 %v1257_v14, %s4481_s26  ;;  %1342 = vrot.lane.b32.xlu0 %v1253_v15, %s4481_s26  ;;  %s2622_s26 = sld [smem:[#allocation2 + $0xf]] }
  0x83   :  { %s4525_s5 = sld [smem:[#allocation26_spill]] }
  0x84   :  { %4482 = sst [smem:[#allocation28_spill]] %s2628_s29 }
  0x85   :  { %s2643_s29 = sld [smem:[#allocation2 + $0x29]] }
  0x86   :  { %1352 = vrot.lane.b32.xlu1 %v1257_v14, %s4483_s28  ;;  %1350 = vrot.lane.b32.xlu0 %v1253_v15, %s4483_s28  ;;  %s2654_s28 = sld [smem:[#allocation2 + $0x44]]  ;;  %v2783_v14 = vstv %s4506_s0  ;;  %v2786_v15 = vstv %s4508_s13 }
  0x87   :  { %4519 = vst [vmem:[#allocation46_spill] sm:$0xff] %v2783_v14  ;;  %4520 = vst [vmem:[#allocation47_spill] sm:$0xff] %v2786_v15  ;;  %s4527_s13 = sld [smem:[#allocation27_spill]] }
  0x88   :  { %s4534_s4 = sld [smem:[#allocation28_spill]]  ;;  %v2873_v31 = vstv %s2622_s26  ;;  %s4580_s26 = smov 111  }
  0x89   :  { %v2860_v52 = vstv %s4525_s5  ;;  %4545 = vst [vmem:[#allocation60_spill] sm:$0xff] %v2873_v31  ;;  %v2910_v31 = vstv %s2728_s9  ;;  %s4596_s9 = smov 17   ;;  %s3891_s0 = sld [smem:[#allocation2 + $0x49]] }
  0x8a   :  { %1397 = vrot.lane.b32.xlu1 %v2626_v23, %s4492_s12  ;;  %1395 = vrot.lane.b32.xlu0 %v2634_v25, %s4492_s12  ;;  %s4503_s12 = sld [smem:[#allocation18_spill]]  ;;  %4542 = vst [vmem:[#allocation59_spill] sm:$0xff] %v2860_v52  ;;  %4555 = vst [vmem:[#allocation66_spill] sm:$0xff] %v2910_v31  ;;  %v2936_v31 = vstv %s2810_s20 }
  0x8b   :  { %4484 = sst [smem:[#allocation29_spill]] %s2643_s29  ;;  %4563 = vst [vmem:[#allocation72_spill] sm:$0xff] %v2936_v31  ;;  %v2957_v31 = vmul.f32 %v2512_v13, %v4568_v20 }
  0x8c   :  { %s2668_s29 = sld [smem:[#allocation2 + $0x28]] }
  0x8d   :  { %s4536_s24 = sld [smem:[#allocation29_spill]]  ;;  %4569 = vst [vmem:[#allocation75_spill] sm:$0xff] %v2957_v31 }
  0x8e   :  { %1373 = vrot.lane.b32.xlu1 %v2626_v23, %s4505_s23  ;;  %1371 = vrot.lane.b32.xlu0 %v2634_v25, %s4505_s23  ;;  %s4514_s23 = sld [smem:[#allocation22_spill]] }
  0x8f   :  { %s3981_s5 = sld [smem:[#allocation2 + $0x2f]] }
  0x90   :  { %v2769_v2 = vstv %s4503_s12  ;;  %s4523_s12 = smov 16   ;;  %s4051_s20 = sld [smem:[#allocation2 + $0x16]] }
  0x91   :  { %4512 = vst [vmem:[#allocation44_spill] sm:$0xff] %v2769_v2 }
  0x92   :  { %v4344_v18 = vstv %s2668_s29  ;;  %1381 = vrot.lane.b32.xlu1 %v2626_v23, %s4523_s12  ;;  %1379 = vrot.lane.b32.xlu0 %v2634_v25, %s4523_s12 }
  0x93   :  { %v2838_v57 = vmul.f32 %v2456_v7, %v4344_v18  ;;  %v2890_v7 = vstv %s2682_s11  ;;  %v4551_v18 = vmov 0  ;;  %s4593_s11 = sld [smem:[#allocation10_spill]] }
  0x94   :  { %v2805_v27 = vstv %s4514_s23  ;;  %4547 = vst [vmem:[#allocation62_spill] sm:$0xff] %v2890_v7  ;;  %v4552_v18 = vsel %vm2900_vm9, 4294967295, %v4551_v18  ;;  %s3887_s23 = sld [smem:[#allocation2 + $0x2e]] }
  0x95   :  { %4524 = vst [vmem:[#allocation49_spill] sm:$0xff] %v2805_v27  ;;  %4535 = vst [vmem:[#allocation57_spill] sm:$0xff] %v2838_v57  ;;  %v2930_v57 = vstv %s2775_s6  ;;  %s4576_s6 = smov 112  }
  0x96   :  { %1422 = vrot.lane.b32.xlu1 %v2626_v23, %s4543_s27  ;;  %1420 = vrot.lane.b32.xlu0 %v2634_v25, %s4543_s27  ;;  %4553 = vst [vmem:[#allocation64_spill] sm:$0xff] %v4552_v18  ;;  %4561 = vst [vmem:[#allocation70_spill] sm:$0xff] %v2930_v57 }
  0x98   :  { %v171_v21 = vpop.permute.xlu1 %170  ;;  %v149_v28 = vpop.permute.xlu0 %148 }
  0x9a   :  { %1389 = vrot.lane.b32.xlu1 %v2626_v23, %s4557_s16  ;;  %1387 = vrot.lane.b32.xlu0 %v2634_v25, %s4557_s16 }
  0x9c   :  { %v173_v7 = vpop.permute.xlu1 %172  ;;  %v151_v52 = vpop.permute.xlu0 %150 }
  0x9d   :  { %v175_v9 = vsel %vm4419_vm4, %v171_v21, %v173_v7  ;;  %v176_v48 = vsel %vm4419_vm4, %v173_v7, %v171_v21  ;;  %v153_v22 = vsel %vm4452_vm5, %v149_v28, %v151_v52  ;;  %v154_v57 = vsel %vm4452_vm5, %v151_v52, %v149_v28 }
  0x9e   :  { %v177_v20 = vsel %vm4416_vm2, %v176_v48, 0.0  ;;  %v514_v13 = vmul.f32 %v2646_v29, %v175_v9  ;;  %v763_v62 = vmul.f32 %v2649_v30, %v175_v9  ;;  %v1009_v54 = vmul.f32 %v2657_v33, %v175_v9  ;;  %1447 = vrot.lane.b32.xlu1 %v2626_v23, %s4572_s30  ;;  %1445 = vrot.lane.b32.xlu0 %v2634_v25, %s4572_s30 }
  0x9f   :  { %v513_v52 = vmul.f32 %v2646_v29, %v177_v20  ;;  %v762_v21 = vmul.f32 %v2649_v30, %v177_v20  ;;  %v1008_v28 = vmul.f32 %v2657_v33, %v177_v20  ;;  %v168_v7 = vsel %vm2945_vm10, %v154_v57, 0.0 }
  0xa0   :  { %v169_v9 = vsel %vm2845_vm6, %v153_v22, 0.0  ;;  %v508_v48 = vmul.f32 %v2660_v34, %v168_v7  ;;  %v757_v58 = vmul.f32 %v2674_v39, %v168_v7  ;;  %v1003_v59 = vmul.f32 %v2677_v40, %v168_v7  ;;  %v182_v24 = vpop.permute.xlu1 %181  ;;  %v180_v63 = vpop.permute.xlu0 %179 }
  0xa1   :  { %v4573_v20 = vmov 0  ;;  %v509_v57 = vmul.f32 %v2660_v34, %v169_v9  ;;  %v758_v22 = vmul.f32 %v2674_v39, %v169_v9  ;;  %v1004_v33 = vmul.f32 %v2677_v40, %v169_v9 }
  0xa2   :  { %v4574_v20 = vsel %vm2997_vm13, 4294967295, %v4573_v20  ;;  %v184_v7 = vsel %vm4415_vm8, %v180_v63, %v182_v24  ;;  %v510_v30 = vadd.f32 %v508_v48, %v2671_v38  ;;  %v759_v29 = vadd.f32 %v757_v58, %v2689_v42  ;;  %1455 = vrot.lane.b32.xlu1 %v2626_v23, %s4576_s6  ;;  %1453 = vrot.lane.b32.xlu0 %v2634_v25, %s4576_s6 }
  0xa3   :  { %4575 = vst [vmem:[#allocation77_spill] sm:$0xff] %v4574_v20  ;;  %v1005_v0 = vadd.f32 %v1003_v59, %v2692_v43  ;;  %v185_v37 = vsel %vm4415_vm8, %v182_v24, %v180_v63  ;;  %v511_v39 = vadd.f32 %v509_v57, %v2671_v38  ;;  %v760_v9 = vadd.f32 %v758_v22, %v2689_v42 }
  0xa4   :  { %v1006_v40 = vadd.f32 %v1004_v33, %v2692_v43  ;;  %v199_v48 = vsel %vm2997_vm13, %v185_v37, 0.0  ;;  %v200_v58 = vsel %vm2900_vm9, %v184_v7, 0.0  ;;  %v515_v59 = vadd.f32 %v513_v52, %v510_v30  ;;  %v204_v34 = vpop.permute.xlu1 %203  ;;  %v202_v27 = vpop.permute.xlu0 %201 }
  0xa5   :  { %v518_v63 = vmul.f32 %v2705_v46, %v199_v48  ;;  %v764_v24 = vadd.f32 %v762_v21, %v759_v29  ;;  %v516_v57 = vadd.f32 %v514_v13, %v511_v39  ;;  %v519_v22 = vmul.f32 %v2705_v46, %v200_v58 }
  0xa6   :  { %v765_v42 = vadd.f32 %v763_v62, %v760_v9  ;;  %v767_v33 = vmul.f32 %v2719_v50, %v199_v48  ;;  %v768_v43 = vmul.f32 %v2719_v50, %v200_v58  ;;  %v1010_v38 = vadd.f32 %v1008_v28, %v1005_v0  ;;  %434 = vrot.lane.b32.xlu1 %v2502_v11, %s4577_s7 }
  0xa7   :  { %v3027_v37 = vadd.f32 %v518_v63, %v515_v59  ;;  %v1011_v20 = vadd.f32 %v1009_v54, %v1006_v40  ;;  %v3032_v30 = vadd.f32 %v519_v22, %v516_v57  ;;  %v1013_v39 = vmul.f32 %v2722_v51, %v199_v48  ;;  %432 = vrot.lane.b32.xlu0 %v2505_v12, %s4577_s7 }
  0xa8   :  { %v3034_v29 = vadd.f32 %v767_v33, %v764_v24  ;;  %v1014_v13 = vmul.f32 %v2722_v51, %v200_v58  ;;  %v3040_v62 = vadd.f32 %v768_v43, %v765_v42  ;;  %v206_v0 = vsel %vm4398_vm11, %v202_v27, %v204_v34  ;;  %v230_v54 = vpop.permute.xlu1 %229  ;;  %v228_v52 = vpop.permute.xlu0 %227 }
  0xa9   :  { %v207_v40 = vsel %vm4398_vm11, %v204_v34, %v202_v27  ;;  %v4578_v21 = vstv %s2616_s22  ;;  %v3051_v7 = vadd.f32 %v1013_v39, %v1010_v38  ;;  %v232_v42 = vsel %vm4397_vm12, %v228_v52, %v230_v54  ;;  %s4588_s22 = sld [smem:[#allocation8_spill]] }
  0xaa   :  { %v3049_v28 = vmul.f32 %v2608_v19, %v4578_v21  ;;  %v3053_v9 = vadd.f32 %v1014_v13, %v1011_v20  ;;  %v210_v48 = vcombine.low %v207_v40, %v206_v0  ;;  %v233_v43 = vsel %vm4397_vm12, %v230_v54, %v228_v52  ;;  %1463 = vrot.lane.b32.xlu1 %v2626_v23, %s4580_s26  ;;  %vm3077_vm12 = vmand %vm133_vm14, %vm2845_vm6 }
  0xab   :  { %v4581_v27 = vstv %s2668_s29  ;;  %v236_v59 = vcombine.low %v232_v42, %v233_v43  ;;  %1461 = vrot.lane.b32.xlu0 %v2634_v25, %s4580_s26  ;;  %v4583_v23 = vmov 0  ;;  %v4586_v13 = vstv %s2702_s14  ;;  %s4589_s29 = sld [smem:[#allocation9_spill]] }
  0xac   :  { %4579 = vst [vmem:[#allocation78_spill] sm:$0xff] %v3049_v28  ;;  %v3068_v20 = vmul.f32 %v2608_v19, %v4581_v27  ;;  %v217_v58 = vrot.slane %v210_v48, %v2680_v41  ;;  %v4584_v23 = vsel %vm3077_vm12, 4294967295, %v4583_v23  ;;  %v256_v57 = vpop.permute.xlu1 %255  ;;  %v254_v22 = vpop.permute.xlu0 %253  ;;  %v3094_v0 = vmul.f32 %v2608_v19, %v4586_v13  ;;  %s4594_s14 = sld [smem:[#allocation11_spill]] }
  0xad   :  { %4585 = vst [vmem:[#allocation80_spill] sm:$0xff] %v4584_v23  ;;  %v243_v54 = vrot.slane %v236_v59, %v2680_v41  ;;  %v258_v52 = vsel %vm257_vm15, %v254_v22, %v256_v57  ;;  %v259_v21 = vsel %vm257_vm15, %v256_v57, %v254_v22  ;;  %vm268_vm11 = vcmp.lt.s32.totalorder %v2637_v26, 112 }
  0xae   :  { %4582 = vst [vmem:[#allocation79_spill] sm:$0xff] %v3068_v20  ;;  %4587 = vst [vmem:[#allocation81_spill] sm:$0xff] %v3094_v0  ;;  %v224_v40 = vrot.slane %v217_v58, %v2680_v41  ;;  %v262_v48 = vsel %vm2778_vm3, %v258_v52, 0.0  ;;  %v263_v19 = vsel %vm3077_vm12, %v259_v21, 0.0  ;;  %1508 = vrot.lane.b32.xlu1 %v2714_v49, %s4577_s7  ;;  %v4590_v22 = vstv %s2518_s1 }
  0xaf   :  { %v250_v58 = vrot.slane %v243_v54, %v2680_v41  ;;  %v568_v59 = vmul.f32 %v2744_v60, %v262_v48  ;;  %v569_v57 = vmul.f32 %v2744_v60, %v263_v19  ;;  %1506 = vrot.lane.b32.xlu0 %v2726_v53, %s4577_s7  ;;  %v4591_v52 = vstv %s4588_s22  ;;  %s4171_s7 = sld [smem:[#allocation2 + $0x19]] }
  0xb0   :  { %v226_v27 = vsel %vm4414_vm0, %v224_v40, 0.0  ;;  %v817_v43 = vmul.f32 %v2758_v1, %v262_v48  ;;  %v267_v40 = vpop.permute.xlu1 %266  ;;  %v265_v54 = vpop.permute.xlu0 %264  ;;  %v818_v33 = vmul.f32 %v2758_v1, %v263_v19  ;;  %v1063_v24 = vmul.f32 %v2761_v5, %v262_v48  ;;  %vm3203_vm0 = vmand %vm133_vm14, %vm2900_vm9 }
  0xb1   :  { %v523_v13 = vmul.f32 %v4590_v22, %v226_v27  ;;  %v772_v21 = vmul.f32 %v4591_v52, %v226_v27  ;;  %v4592_v42 = vstv %s4589_s29  ;;  %v252_v25 = vsel %vm4411_vm1, %v250_v58, 0.0 }
  0xb2   :  { %v1018_v39 = vmul.f32 %v4592_v42, %v226_v27  ;;  %v1064_v22 = vmul.f32 %v2761_v5, %v263_v19  ;;  %1484 = vrot.lane.b32.xlu1 %v2714_v49, %s4596_s9  ;;  %v4597_v34 = vstv %s4593_s11  ;;  %v4598_v48 = vstv %s4594_s14 }
  0xb3   :  { %v528_v52 = vrot.slane %v523_v13, %v2430_v3  ;;  %v532_v63 = vrot.slane %v523_v13, %v2433_v4  ;;  %v777_v42 = vrot.slane %v772_v21, %v2430_v3  ;;  %v781_v27 = vrot.slane %v772_v21, %v2433_v4  ;;  %1482 = vrot.lane.b32.xlu0 %v2726_v53, %s4596_s9 }
  0xb4   :  { %v1023_v38 = vrot.slane %v1018_v39, %v2430_v3  ;;  %v1027_v58 = vrot.slane %v1018_v39, %v2433_v4  ;;  %v553_v20 = vmul.f32 %v4597_v34, %v252_v25  ;;  %v802_v28 = vmul.f32 %v4598_v48, %v252_v25  ;;  %v276_v1 = vpop.permute.xlu1 %275  ;;  %v274_v31 = vpop.permute.xlu0 %273 }
  0xb5   :  { %v4599_v19 = vstv %s4595_s19  ;;  %v535_v5 = vadd.f32 %v528_v52, %v3027_v37  ;;  %v536_v21 = vadd.f32 %v532_v63, %v3032_v30  ;;  %v784_v32 = vadd.f32 %v777_v42, %v3034_v29 }
  0xb6   :  { %v1048_v13 = vmul.f32 %v4599_v19, %v252_v25  ;;  %vm277_vm1 = vcmp.lt.s32.totalorder %v2637_v26, 111  ;;  %v558_v39 = vrot.slane %v553_v20, %v2430_v3  ;;  %v562_v34 = vrot.slane %v553_v20, %v2433_v4  ;;  %418 = vrot.lane.b32.xlu1 %v2502_v11, %s4523_s12 }
  0xb7   :  { %v785_v48 = vadd.f32 %v781_v27, %v3040_v62  ;;  %v807_v60 = vrot.slane %v802_v28, %v2430_v3  ;;  %v4600_v25 = vrot.slane %v2700_v45, %v2430_v3  ;;  %v4601_v30 = vrot.slane %v2700_v45, %v2433_v4  ;;  %416 = vrot.lane.b32.xlu0 %v2505_v12, %s4523_s12 }
  0xb8   :  { %v4602_v63 = vrot.slane %v2710_v47, %v2430_v3  ;;  %v811_v42 = vrot.slane %v802_v28, %v2433_v4  ;;  %v4603_v62 = vrot.slane %v2710_v47, %v2433_v4  ;;  %v1030_v27 = vadd.f32 %v1023_v38, %v3051_v7 }
  0xb9   :  { %v550_v37 = vadd.f32 %v4600_v25, %v535_v5  ;;  %v551_v29 = vadd.f32 %v4601_v30, %v536_v21  ;;  %v1031_v5 = vadd.f32 %v1027_v58, %v3053_v9  ;;  %v1053_v45 = vrot.slane %v1048_v13, %v2430_v3  ;;  %v300_v25 = vpop.permute.xlu1 %299  ;;  %v298_v30 = vpop.permute.xlu0 %297 }
  0xba   :  { %v799_v52 = vadd.f32 %v4602_v63, %v784_v32  ;;  %v800_v20 = vadd.f32 %v4603_v62, %v785_v48  ;;  %v1057_v28 = vrot.slane %v1048_v13, %v2433_v4  ;;  %v4604_v47 = vrot.slane %v2749_v61, %v2430_v3  ;;  %459 = vrot.lane.b32.xlu1 %v2502_v11, %s4543_s27 }
  0xbb   :  { %v565_v19 = vadd.f32 %v558_v39, %v550_v37  ;;  %v566_v32 = vadd.f32 %v562_v34, %v551_v29  ;;  %v4605_v7 = vrot.slane %v2749_v61, %v2433_v4  ;;  %v269_v38 = vsel %vm268_vm11, %v265_v54, %v267_v40  ;;  %457 = vrot.lane.b32.xlu0 %v2505_v12, %s4543_s27 }
  0xbc   :  { %v814_v21 = vadd.f32 %v807_v60, %v799_v52  ;;  %v815_v63 = vadd.f32 %v811_v42, %v800_v20  ;;  %v1045_v48 = vadd.f32 %v4604_v47, %v1030_v27  ;;  %v270_v60 = vsel %vm268_vm11, %v267_v40, %v265_v54 }
  0xbd   :  { %v1046_v9 = vadd.f32 %v4605_v7, %v1031_v5  ;;  %v570_v58 = vadd.f32 %v568_v59, %v565_v19  ;;  %v571_v39 = vadd.f32 %v569_v57, %v566_v32  ;;  %v272_v52 = vsel %vm133_vm14, %v270_v60, 0.0  ;;  %v308_v40 = vpop.permute.xlu1 %307  ;;  %v306_v54 = vpop.permute.xlu0 %305 }
  0xbe   :  { %v819_v34 = vadd.f32 %v817_v43, %v814_v21  ;;  %v820_v13 = vadd.f32 %v818_v33, %v815_v63  ;;  %v1060_v37 = vadd.f32 %v1053_v45, %v1045_v48  ;;  %v573_v61 = vmul.f32 %v2766_v6, %v269_v38  ;;  %1492 = vrot.lane.b32.xlu1 %v2714_v49, %s4523_s12 }
  0xbf   :  { %v1061_v29 = vadd.f32 %v1057_v28, %v1046_v9  ;;  %v574_v59 = vmul.f32 %v2766_v6, %v272_v52  ;;  %v822_v43 = vmul.f32 %v2769_v2, %v269_v38  ;;  %v823_v57 = vmul.f32 %v2769_v2, %v272_v52  ;;  %1490 = vrot.lane.b32.xlu0 %v2726_v53, %s4523_s12  ;;  %s3970_s12 = sld [smem:[#allocation2 + $0x14]] }
  0xc0   :  { %v1065_v42 = vadd.f32 %v1063_v24, %v1060_v37  ;;  %v1068_v62 = vmul.f32 %v2772_v8, %v269_v38  ;;  %v1069_v20 = vmul.f32 %v2772_v8, %v272_v52  ;;  %v575_v5 = vadd.f32 %v573_v61, %v570_v58 }
  0xc1   :  { %v1066_v33 = vadd.f32 %v1064_v22, %v1061_v29  ;;  %v576_v45 = vadd.f32 %v574_v59, %v571_v39  ;;  %v824_v19 = vadd.f32 %v822_v43, %v819_v34  ;;  %v825_v32 = vadd.f32 %v823_v57, %v820_v13  ;;  %v316_v9 = vpop.permute.xlu1 %315  ;;  %v314_v38 = vpop.permute.xlu0 %313  ;;  %v4608_v43 = vld [vmem:[#allocation49_spill] sm:$0xff] }
  0xc2   :  { %v1070_v24 = vadd.f32 %v1068_v62, %v1065_v42  ;;  %v278_v21 = vsel %vm277_vm1, %v274_v31, %v276_v1  ;;  %v279_v28 = vsel %vm277_vm1, %v276_v1, %v274_v31  ;;  %v301_v48 = vsel %vm4452_vm5, %v298_v30, %v300_v25  ;;  %1533 = vrot.lane.b32.xlu1 %v2714_v49, %s4543_s27 }
  0xc3   :  { %v1071_v22 = vadd.f32 %v1069_v20, %v1066_v33  ;;  %v282_v63 = vsel %vm2852_vm7, %v278_v21, 0.0  ;;  %v283_v47 = vsel %vm3203_vm0, %v279_v28, 0.0  ;;  %v302_v7 = vsel %vm4452_vm5, %v300_v25, %v298_v30  ;;  %1531 = vrot.lane.b32.xlu0 %v2726_v53, %s4543_s27  ;;  %v4609_v20 = vld [vmem:[#allocation50_spill] sm:$0xff]  ;;  %s4099_s27 = sld [smem:[#allocation2 + $0x4e]] }
  0xc4   :  { %v578_v58 = vmul.f32 %v2783_v14, %v282_v63  ;;  %v579_v1 = vmul.f32 %v2783_v14, %v283_v47  ;;  %v827_v31 = vmul.f32 %v2786_v15, %v282_v63  ;;  %v828_v39 = vmul.f32 %v2786_v15, %v283_v47 }
  0xc5   :  { %v1073_v34 = vmul.f32 %v2789_v17, %v282_v63  ;;  %v1074_v60 = vmul.f32 %v2789_v17, %v283_v47  ;;  %v303_v13 = vsel %vm2945_vm10, %v302_v7, 0.0  ;;  %v304_v25 = vsel %vm2845_vm6, %v301_v48, 0.0  ;;  %v324_v33 = vpop.permute.xlu1 %323  ;;  %v322_v62 = vpop.permute.xlu0 %321  ;;  %v4610_v63 = vld [vmem:[#allocation51_spill] sm:$0xff] }
  0xc6   :  { %v580_v30 = vadd.f32 %v578_v58, %v575_v5  ;;  %v581_v37 = vadd.f32 %v579_v1, %v576_v45  ;;  %v829_v29 = vadd.f32 %v827_v31, %v824_v19  ;;  %v830_v52 = vadd.f32 %v828_v39, %v825_v32  ;;  %426 = vrot.lane.b32.xlu1 %v2502_v11, %s4557_s16  ;;  %v4611_v31 = vld [vmem:[#allocation52_spill] sm:$0xff] }
  0xc7   :  { %v1075_v61 = vadd.f32 %v1073_v34, %v1070_v24  ;;  %v1076_v59 = vadd.f32 %v1074_v60, %v1071_v22  ;;  %v583_v57 = vmul.f32 %v4608_v43, %v303_v13  ;;  %v584_v42 = vmul.f32 %v4608_v43, %v304_v25  ;;  %424 = vrot.lane.b32.xlu0 %v2505_v12, %s4557_s16  ;;  %v4612_v34 = vld [vmem:[#allocation54_spill] sm:$0xff] }
  0xc8   :  { %v832_v21 = vmul.f32 %v4609_v20, %v303_v13  ;;  %v833_v28 = vmul.f32 %v4609_v20, %v304_v25  ;;  %v1078_v5 = vmul.f32 %v4610_v63, %v303_v13  ;;  %v1079_v45 = vmul.f32 %v4610_v63, %v304_v25  ;;  %v4613_v13 = vld [vmem:[#allocation55_spill] sm:$0xff] }
  0xc9   :  { %v585_v19 = vadd.f32 %v583_v57, %v580_v30  ;;  %v586_v32 = vadd.f32 %v584_v42, %v581_v37  ;;  %v309_v24 = vsel %vm4419_vm4, %v306_v54, %v308_v40  ;;  %v310_v22 = vsel %vm4419_vm4, %v308_v40, %v306_v54  ;;  %v349_v40 = vpop.permute.xlu1 %348  ;;  %v347_v54 = vpop.permute.xlu0 %346 }
  0xca   :  { %v834_v47 = vadd.f32 %v832_v21, %v829_v29  ;;  %v835_v48 = vadd.f32 %v833_v28, %v830_v52  ;;  %v1080_v7 = vadd.f32 %v1078_v5, %v1075_v61  ;;  %v1081_v58 = vadd.f32 %v1079_v45, %v1076_v59  ;;  %1500 = vrot.lane.b32.xlu1 %v2714_v49, %s4557_s16 }
  0xcb   :  { %v311_v1 = vsel %vm4416_vm2, %v310_v22, 0.0  ;;  %v589_v39 = vmul.f32 %v4611_v31, %v309_v24  ;;  %v838_v60 = vmul.f32 %v4612_v34, %v309_v24  ;;  %v1084_v25 = vmul.f32 %v4613_v13, %v309_v24  ;;  %1498 = vrot.lane.b32.xlu0 %v2726_v53, %s4557_s16  ;;  %v4615_v22 = vld [vmem:[#allocation56_spill] sm:$0xff] }
  0xcc   :  { %v588_v30 = vmul.f32 %v4611_v31, %v311_v1  ;;  %v837_v37 = vmul.f32 %v4612_v34, %v311_v1  ;;  %v1083_v29 = vmul.f32 %v4613_v13, %v311_v1  ;;  %v317_v52 = vsel %vm4415_vm8, %v314_v38, %v316_v9 }
  0xcd   :  { %v591_v61 = vadd.f32 %v589_v39, %v586_v32  ;;  %v840_v59 = vadd.f32 %v838_v60, %v835_v48  ;;  %v1086_v57 = vadd.f32 %v1084_v25, %v1081_v58  ;;  %v318_v42 = vsel %vm4415_vm8, %v316_v9, %v314_v38  ;;  %v4616_v58 = vld [vmem:[#allocation58_spill] sm:$0xff]  ;;  %v4617_v9 = vld [vmem:[#allocation59_spill] sm:$0xff]  ;;  %v374_v39 = vpop.permute.xlu1 %373  ;;  %v372_v60 = vpop.permute.xlu0 %371 }
  0xce   :  { %v590_v21 = vadd.f32 %v588_v30, %v585_v19  ;;  %v839_v28 = vadd.f32 %v837_v37, %v834_v47  ;;  %v1085_v5 = vadd.f32 %v1083_v29, %v1080_v7  ;;  %v319_v24 = vsel %vm2997_vm13, %v318_v42, 0.0  ;;  %484 = vrot.lane.b32.xlu1 %v2502_v11, %s4572_s30 }
  0xcf   :  { %v320_v32 = vsel %vm2900_vm9, %v317_v52, 0.0  ;;  %v593_v48 = vmul.f32 %v4615_v22, %v319_v24  ;;  %v842_v1 = vmul.f32 %v4616_v58, %v319_v24  ;;  %v1088_v38 = vmul.f32 %v4617_v9, %v319_v24  ;;  %482 = vrot.lane.b32.xlu0 %v2505_v12, %s4572_s30 }
  0xd0   :  { %v594_v19 = vmul.f32 %v4615_v22, %v320_v32  ;;  %v843_v47 = vmul.f32 %v4616_v58, %v320_v32  ;;  %v1089_v7 = vmul.f32 %v4617_v9, %v320_v32  ;;  %vm4618_vm8 = vcmp.lt.s32.totalorder %v2637_v26, 1 }
  0xd1   :  { %v325_v25 = vsel %vm4618_vm8, %v322_v62, %v324_v33  ;;  %v595_v30 = vadd.f32 %v593_v48, %v590_v21  ;;  %v844_v37 = vadd.f32 %v842_v1, %v839_v28  ;;  %v3279_v29 = vadd.f32 %v1088_v38, %v1085_v5  ;;  %vm4619_vm2 = vmmov %vm4618_vm8  ;;  %v4622_v1 = vld [vmem:[#allocation60_spill] sm:$0xff] }
  0xd2   :  { %v326_v52 = vsel %vm4619_vm2, %v324_v33, %v322_v62  ;;  %v596_v42 = vadd.f32 %v594_v19, %v591_v61  ;;  %v845_v24 = vadd.f32 %v843_v47, %v840_v59  ;;  %v3285_v22 = vadd.f32 %v1089_v7, %v1086_v57  ;;  %v382_v61 = vpop.permute.xlu1 %381  ;;  %v380_v59 = vpop.permute.xlu0 %379  ;;  %1558 = vrot.lane.b32.xlu1 %v2714_v49, %s4572_s30  ;;  %v4623_v19 = vld [vmem:[#allocation62_spill] sm:$0xff] }
  0xd3   :  { %v329_v58 = vcombine.low %v326_v52, %v325_v25  ;;  %vm4620_vm8 = vcmp.lt.s32.totalorder %v2637_v26, 127  ;;  %v375_v33 = vsel %vm257_vm15, %v372_v60, %v374_v39  ;;  %v376_v62 = vsel %vm257_vm15, %v374_v39, %v372_v60  ;;  %1556 = vrot.lane.b32.xlu0 %v2726_v53, %s4572_s30  ;;  %v4624_v25 = vld [vmem:[#allocation65_spill] sm:$0xff] }
  0xd4   :  { %v350_v21 = vsel %vm4620_vm8, %v347_v54, %v349_v40  ;;  %vm4621_vm4 = vmmov %vm4620_vm8  ;;  %v377_v32 = vsel %vm2778_vm3, %v375_v33, 0.0  ;;  %v378_v48 = vsel %vm3077_vm12, %v376_v62, 0.0  ;;  %v384_v33 = vsel %vm268_vm11, %v382_v61, %v380_v59 }
  0xd5   :  { %v351_v28 = vsel %vm4621_vm4, %v349_v40, %v347_v54  ;;  %v336_v57 = vrot.slane %v329_v58, %v2680_v41  ;;  %v3303_v38 = vmul.f32 %v4622_v1, %v377_v32  ;;  %v3306_v40 = vmul.f32 %v4622_v1, %v378_v48 }
  0xd6   :  { %v354_v5 = vcombine.low %v350_v21, %v351_v28  ;;  %v3317_v47 = vmul.f32 %v4623_v19, %v377_v32  ;;  %v3320_v7 = vmul.f32 %v4623_v19, %v378_v48  ;;  %v3325_v52 = vmul.f32 %v4624_v25, %v377_v32  ;;  %v3334_v62 = vpop.permute.xlu1 %389  ;;  %492 = vrot.lane.b32.xlu1 %v2502_v11, %s4576_s6 }
  0xd7   :  { %v343_v39 = vrot.slane %v336_v57, %v2680_v41  ;;  %v3328_v21 = vmul.f32 %v4624_v25, %v378_v48  ;;  %v383_v28 = vsel %vm268_vm11, %v380_v59, %v382_v61  ;;  %v3336_v57 = vpop.permute.xlu0 %387  ;;  %vm4625_vm2 = vcmp.ge.s32.totalorder %v2587_v16, 1  ;;  %v4626_v48 = vld [vmem:[#allocation66_spill] sm:$0xff]  ;;  %490 = vrot.lane.b32.xlu0 %v2505_v12, %s4576_s6 }
  0xd8   :  { %v361_v60 = vrot.slane %v354_v5, %v2680_v41  ;;  %v386_v32 = vsel %vm133_vm14, %v384_v33, 0.0  ;;  %v648_v54 = vmul.f32 %v4626_v48, %v383_v28  ;;  %v4627_v25 = vstv %s4527_s13 }
  0xd9   :  { %v345_v5 = vsel %vm4625_vm2, %v343_v39, 0.0  ;;  %v4628_v0 = vstv %s2601_s2  ;;  %v4629_v9 = vstv %s2610_s25  ;;  %v649_v59 = vmul.f32 %v4626_v48, %v386_v32 }
  0xda   :  { %v368_v58 = vrot.slane %v361_v60, %v2680_v41  ;;  %v598_v19 = vmul.f32 %v4627_v25, %v345_v5  ;;  %v847_v1 = vmul.f32 %v4628_v0, %v345_v5  ;;  %v1093_v61 = vmul.f32 %v4629_v9, %v345_v5  ;;  %v4631_v60 = vld [vmem:[#allocation67_spill] sm:$0xff]  ;;  %v4632_v25 = vld [vmem:[#allocation68_spill] sm:$0xff]  ;;  %v3366_v31 = vpop.permute.xlu1 %410  ;;  %1566 = vrot.lane.b32.xlu1 %v2714_v49, %s4576_s6 }
  0xdb   :  { %vm4630_vm4 = vcmp.le.s32.totalorder %v2587_v16, 14  ;;  %v897_v33 = vmul.f32 %v4631_v60, %v383_v28  ;;  %v898_v13 = vmul.f32 %v4631_v60, %v386_v32  ;;  %v3358_v34 = vmul.f32 %v4632_v25, %v383_v28  ;;  %1564 = vrot.lane.b32.xlu0 %v2726_v53, %s4576_s6 }
  0xdc   :  { %v370_v39 = vsel %vm4630_vm4, %v368_v58, 0.0  ;;  %v603_v0 = vrot.slane %v598_v19, %v2430_v3  ;;  %v607_v9 = vrot.slane %v598_v19, %v2433_v4  ;;  %v852_v5 = vrot.slane %v847_v1, %v2430_v3  ;;  %v3368_v58 = vpop.permute.xlu0 %408 }
  0xdd   :  { %v856_v48 = vrot.slane %v847_v1, %v2433_v4  ;;  %v1098_v60 = vrot.slane %v1093_v61, %v2430_v3  ;;  %v1102_v28 = vrot.slane %v1093_v61, %v2433_v4  ;;  %v4633_v63 = vstv %s4534_s4 }
  0xde   :  { %v628_v20 = vmul.f32 %v4633_v63, %v370_v39  ;;  %v4634_v43 = vstv %s4536_s24  ;;  %v4635_v15 = vstv %s2654_s28  ;;  %v610_v8 = vadd.f32 %v603_v0, %v595_v30  ;;  %v4636_v63 = vld [vmem:[#allocation53_spill] sm:$0xff]  ;;  %500 = vrot.lane.b32.xlu1 %v2502_v11, %s4580_s26 }
  0xdf   :  { %v877_v17 = vmul.f32 %v4634_v43, %v370_v39  ;;  %v1123_v14 = vmul.f32 %v4635_v15, %v370_v39  ;;  %v611_v19 = vadd.f32 %v607_v9, %v596_v42  ;;  %v859_v2 = vadd.f32 %v852_v5, %v844_v37  ;;  %v4639_v42 = vld [vmem:[#allocation57_spill] sm:$0xff]  ;;  %498 = vrot.lane.b32.xlu0 %v2505_v12, %s4580_s26 }
  0xe0   :  { %v633_v1 = vrot.slane %v628_v20, %v2430_v3  ;;  %v637_v6 = vrot.slane %v628_v20, %v2433_v4  ;;  %v860_v44 = vadd.f32 %v856_v48, %v845_v24  ;;  %v4637_v43 = vrot.slane %v4636_v63, %v2430_v3  ;;  %v1287_v24 = vpop.permute.xlu1 %1286  ;;  %v1285_v48 = vpop.permute.xlu0 %1284 }
  0xe1   :  { %v882_v36 = vrot.slane %v877_v17, %v2430_v3  ;;  %v4638_v30 = vrot.slane %v4636_v63, %v2433_v4  ;;  %v4640_v61 = vrot.slane %v4639_v42, %v2430_v3  ;;  %v886_v20 = vrot.slane %v877_v17, %v2433_v4  ;;  %v4642_v17 = vld [vmem:[#allocation61_spill] sm:$0xff] }
  0xe2   :  { %v625_v15 = vadd.f32 %v4637_v43, %v610_v8  ;;  %v4641_v0 = vrot.slane %v4639_v42, %v2433_v4  ;;  %v1105_v5 = vadd.f32 %v1098_v60, %v3279_v29  ;;  %v1106_v8 = vadd.f32 %v1102_v28, %v3285_v22  ;;  %1574 = vrot.lane.b32.xlu1 %v2714_v49, %s4580_s26 }
  0xe3   :  { %v626_v37 = vadd.f32 %v4638_v30, %v611_v19  ;;  %v874_v39 = vadd.f32 %v4640_v61, %v859_v2  ;;  %v1128_v43 = vrot.slane %v1123_v14, %v2430_v3  ;;  %v1132_v23 = vrot.slane %v1123_v14, %v2433_v4  ;;  %1572 = vrot.lane.b32.xlu0 %v2726_v53, %s4580_s26  ;;  %s4179_s26 = sld [smem:[#allocation2 + $0x34]] }
  0xe4   :  { %v875_v9 = vadd.f32 %v4641_v0, %v860_v44  ;;  %v640_v63 = vadd.f32 %v633_v1, %v625_v15  ;;  %v4643_v61 = vrot.slane %v4642_v17, %v2430_v3  ;;  %v4644_v44 = vrot.slane %v4642_v17, %v2433_v4  ;;  %v1263_v60 = vpop.permute.xlu1 %1262  ;;  %v1261_v28 = vpop.permute.xlu0 %1260 }
  0xe5   :  { %v641_v19 = vadd.f32 %v637_v6, %v626_v37  ;;  %v889_v30 = vadd.f32 %v882_v36, %v874_v39  ;;  %v1144_v22 = vmul.f32 %v4632_v25, %v386_v32  ;;  %v391_v14 = vsel %vm277_vm1, %v3336_v57, %v3334_v62 }
  0xe6   :  { %v890_v2 = vadd.f32 %v886_v20, %v875_v9  ;;  %v1120_v42 = vadd.f32 %v4643_v61, %v1105_v5  ;;  %v1121_v29 = vadd.f32 %v4644_v44, %v1106_v8  ;;  %v645_v36 = vadd.f32 %v3303_v38, %v640_v63 }
  0xe7   :  { %v646_v6 = vadd.f32 %v3306_v40, %v641_v19  ;;  %v894_v11 = vadd.f32 %v3317_v47, %v889_v30  ;;  %v392_v12 = vsel %vm277_vm1, %v3334_v62, %v3336_v57  ;;  %v393_v47 = vsel %vm2852_vm7, %v391_v14, 0.0 }
  0xe8   :  { %v895_v1 = vadd.f32 %v3320_v7, %v890_v2  ;;  %v1135_v15 = vadd.f32 %v1128_v43, %v1120_v42  ;;  %v1136_v32 = vadd.f32 %v1132_v23, %v1121_v29  ;;  %v650_v38 = vadd.f32 %v648_v54, %v645_v36  ;;  %v4645_v54 = vld [vmem:[#allocation69_spill] sm:$0xff]  ;;  %v1271_v49 = vpop.permute.xlu1 %1270  ;;  %v1269_v9 = vpop.permute.xlu0 %1268 }
  0xe9   :  { %v651_v40 = vadd.f32 %v649_v59, %v646_v6  ;;  %v899_v37 = vadd.f32 %v897_v33, %v894_v11  ;;  %v394_v23 = vsel %vm3203_vm0, %v392_v12, 0.0  ;;  %v653_v62 = vmul.f32 %v4645_v54, %v393_v47  ;;  %v4646_v59 = vld [vmem:[#allocation70_spill] sm:$0xff]  ;;  %v4650_v6 = vld [vmem:[#allocation72_spill] sm:$0xff] }
  0xea   :  { %v1140_v39 = vadd.f32 %v3325_v52, %v1135_v15  ;;  %v1141_v7 = vadd.f32 %v3328_v21, %v1136_v32  ;;  %v900_v20 = vadd.f32 %v898_v13, %v895_v1  ;;  %v654_v57 = vmul.f32 %v4645_v54, %v394_v23  ;;  %v4647_v13 = vld [vmem:[#allocation71_spill] sm:$0xff]  ;;  %v4651_v1 = vld [vmem:[#allocation73_spill] sm:$0xff]  ;;  %v4652_v15 = vld [vmem:[#allocation74_spill] sm:$0xff] }
  0xeb   :  { %v902_v33 = vmul.f32 %v4646_v59, %v393_v47  ;;  %v903_v0 = vmul.f32 %v4646_v59, %v394_v23  ;;  %v1148_v5 = vmul.f32 %v4647_v13, %v393_v47  ;;  %v1149_v8 = vmul.f32 %v4647_v13, %v394_v23 }
  0xec   :  { %v1145_v52 = vadd.f32 %v3358_v34, %v1140_v39  ;;  %v1146_v21 = vadd.f32 %v1144_v22, %v1141_v7  ;;  %v655_v43 = vadd.f32 %v653_v62, %v650_v38  ;;  %v656_v63 = vadd.f32 %v654_v57, %v651_v40  ;;  %v1312_v22 = vpop.permute.xlu1 %1311  ;;  %v1310_v36 = vpop.permute.xlu0 %1309 }
  0xed   :  { %v904_v53 = vadd.f32 %v902_v33, %v899_v37  ;;  %v905_v19 = vadd.f32 %v903_v0, %v900_v20  ;;  %v412_v17 = vsel %vm4452_vm5, %v3368_v58, %v3366_v31  ;;  %v413_v34 = vsel %vm4452_vm5, %v3366_v31, %v3368_v58 }
  0xee   :  { %v1150_v30 = vadd.f32 %v1148_v5, %v1145_v52  ;;  %v1151_v2 = vadd.f32 %v1149_v8, %v1146_v21  ;;  %v414_v61 = vsel %vm2945_vm10, %v413_v34, 0.0  ;;  %v415_v42 = vsel %vm2845_vm6, %v412_v17, 0.0  ;;  %v4656_v8 = vld [vmem:[#allocation33_spill] sm:$0xff] }
  0xef   :  { %vm4648_vm8 = vcmp.lt.s32.totalorder %v2637_v26, 1  ;;  %v658_v11 = vmul.f32 %v4650_v6, %v414_v61  ;;  %v659_v14 = vmul.f32 %v4650_v6, %v415_v42  ;;  %v907_v31 = vmul.f32 %v4651_v1, %v414_v61 }
  0xf0   :  { %v1288_v44 = vsel %vm4648_vm8, %v1285_v48, %v1287_v24  ;;  %vm4649_vm2 = vmmov %vm4648_vm8  ;;  %v908_v58 = vmul.f32 %v4651_v1, %v415_v42  ;;  %v1153_v32 = vmul.f32 %v4652_v15, %v414_v61  ;;  %v1154_v12 = vmul.f32 %v4652_v15, %v415_v42  ;;  %v1279_v62 = vpop.permute.xlu1 %1278  ;;  %v1277_v57 = vpop.permute.xlu0 %1276  ;;  %v4662_v42 = vld [vmem:[#allocation37_spill] sm:$0xff] }
  0xf1   :  { %v1289_v29 = vsel %vm4649_vm2, %v1287_v24, %v1285_v48  ;;  %v1264_v40 = vsel %vm4452_vm5, %v1261_v28, %v1263_v60  ;;  %v3466_v37 = vadd.f32 %v658_v11, %v655_v43  ;;  %v3468_v24 = vadd.f32 %v659_v14, %v656_v63  ;;  %v4657_v43 = vld [vmem:[#allocation35_spill] sm:$0xff] }
  0xf2   :  { %v1292_v38 = vcombine.low %v1289_v29, %v1288_v44  ;;  %v3470_v48 = vadd.f32 %v907_v31, %v904_v53  ;;  %v3472_v47 = vadd.f32 %v908_v58, %v905_v19  ;;  %v3474_v39 = vadd.f32 %v1153_v32, %v1150_v30  ;;  %v4658_v19 = vld [vmem:[#allocation36_spill] sm:$0xff] }
  0xf3   :  { %v3476_v7 = vadd.f32 %v1154_v12, %v1151_v2  ;;  %v1265_v23 = vsel %vm4452_vm5, %v1263_v60, %v1261_v28  ;;  %v1267_v0 = vsel %vm2845_vm6, %v1264_v40, 0.0  ;;  %vm4654_vm4 = vcmp.lt.s32.totalorder %v2637_v26, 16 }
  0xf4   :  { %v1299_v20 = vrot.slane %v1292_v38, %v2680_v41  ;;  %v1266_v33 = vsel %vm2945_vm10, %v1265_v23, 0.0  ;;  %v1272_v52 = vsel %vm4654_vm4, %v1269_v9, %v1271_v49  ;;  %vm4655_vm8 = vmmov %vm4654_vm4  ;;  %v1581_v28 = vmul.f32 %v1267_v0, %v4656_v8  ;;  %v3503_v29 = vpop.permute.xlu1 %1336  ;;  %v3505_v11 = vpop.permute.xlu0 %1334 }
  0xf5   :  { %4653 = vst [vmem:[#allocation77_spill] sm:$0xff] %v3476_v7  ;;  %v1273_v21 = vsel %vm4655_vm8, %v1271_v49, %v1269_v9  ;;  %v1580_v60 = vmul.f32 %v1266_v33, %v4656_v8  ;;  %v1798_v63 = vmul.f32 %v1266_v33, %v4657_v43  ;;  %v1799_v53 = vmul.f32 %v1267_v0, %v4657_v43  ;;  %v4661_v9 = vld [vmem:[#allocation34_spill] sm:$0xff]  ;;  %v4668_v8 = vld [vmem:[#allocation31_spill] sm:$0xff]  ;;  %v4669_v43 = vld [vmem:[#allocation32_spill] sm:$0xff] }
  0xf6   :  { %v1306_v5 = vrot.slane %v1299_v20, %v2680_v41  ;;  %v2016_v30 = vmul.f32 %v1266_v33, %v4658_v19  ;;  %v2017_v2 = vmul.f32 %v1267_v0, %v4658_v19  ;;  %vm4659_vm2 = vcmp.ge.s32.totalorder %v2637_v26, 16  ;;  %v4666_v20 = vld [vmem:[#allocation38_spill] sm:$0xff] }
  0xf7   :  { %v1274_v17 = vsel %vm4659_vm2, %v1273_v21, 0.0  ;;  %vm4660_vm4 = vcmp.ge.s32.totalorder %v2587_v16, 1  ;;  %v1582_v34 = vadd.f32 %v1580_v60, %v4661_v9  ;;  %v1583_v61 = vadd.f32 %v1581_v28, %v4661_v9  ;;  %v4667_v0 = vld [vmem:[#allocation30_spill] sm:$0xff] }
  0xf8   :  { %v1308_v49 = vsel %vm4660_vm4, %v1306_v5, 0.0  ;;  %v1800_v44 = vadd.f32 %v1798_v63, %v4662_v42  ;;  %v4663_v14 = vstv %s2518_s1  ;;  %v4664_v58 = vstv %s4588_s22  ;;  %s3630_s1 = sld [smem:[#allocation2 + $0x15]] }
  0xf9   :  { %v1592_v31 = vmul.f32 %v1308_v49, %v4663_v14  ;;  %v1810_v32 = vmul.f32 %v1308_v49, %v4664_v58  ;;  %v4665_v12 = vstv %s4589_s29  ;;  %v1801_v40 = vadd.f32 %v1799_v53, %v4662_v42  ;;  %v3530_v42 = vpop.permute.xlu0 %1342  ;;  %s4189_s22 = sld [smem:[#allocation2 + $0x4f]] }
  0xfa   :  { %v3513_v38 = vmul.f32 %v1308_v49, %v4665_v12  ;;  %v2018_v23 = vadd.f32 %v2016_v30, %v4666_v20  ;;  %v2019_v33 = vadd.f32 %v2017_v2, %v4666_v20  ;;  %v1584_v21 = vmul.f32 %v1274_v17, %v4667_v0  ;;  %v3528_v2 = vpop.permute.xlu1 %1344  ;;  %s4213_s29 = sld [smem:[#allocation2 + $0x1a]] }
  0xfb   :  { %v1585_v5 = vmul.f32 %v1272_v52, %v4667_v0  ;;  %v1802_v60 = vmul.f32 %v1274_v17, %v4668_v8  ;;  %v1803_v28 = vmul.f32 %v1272_v52, %v4668_v8  ;;  %v2020_v63 = vmul.f32 %v1274_v17, %v4669_v43 }
  0xfc   :  { %v2021_v19 = vmul.f32 %v1272_v52, %v4669_v43  ;;  %v1586_v49 = vadd.f32 %v1584_v21, %v1582_v34  ;;  %vm4670_vm8 = vcmp.lt.s32.totalorder %v2637_v26, 127  ;;  %vm4672_vm4 = vcmp.lt.s32.totalorder %v2637_v26, 15 }
  0xfd   :  { %v1587_v9 = vadd.f32 %v1585_v5, %v1583_v61  ;;  %v1313_v53 = vsel %vm4670_vm8, %v1310_v36, %v1312_v22  ;;  %vm4671_vm2 = vmmov %vm4670_vm8  ;;  %v1804_v14 = vadd.f32 %v1802_v60, %v1800_v44  ;;  %v1805_v58 = vadd.f32 %v1803_v28, %v1801_v40  ;;  %v3549_v21 = vpop.permute.xlu0 %1350 }
  0xfe   :  { %v1314_v30 = vsel %vm4671_vm2, %v1312_v22, %v1310_v36  ;;  %v2022_v12 = vadd.f32 %v2020_v63, %v2018_v23  ;;  %v2023_v20 = vadd.f32 %v2021_v19, %v2019_v33  ;;  %v1280_v52 = vsel %vm4672_vm4, %v1277_v57, %v1279_v62  ;;  %vm4673_vm5 = vmmov %vm4672_vm4 }
  0xff   :  { %v1317_v0 = vcombine.low %v1313_v53, %v1314_v30  ;;  %v1281_v17 = vsel %vm4673_vm5, %v1279_v62, %v1277_v57  ;;  %v1597_v34 = vrot.slane %v1592_v31, %v2430_v3  ;;  %v1283_v36 = vsel %vm2900_vm9, %v1280_v52, 0.0  ;;  %v3547_v57 = vpop.permute.xlu1 %1352 }
 0x100   :  { %v1282_v22 = vsel %vm2997_vm13, %v1281_v17, 0.0  ;;  %v1601_v61 = vrot.slane %v1592_v31, %v2433_v4  ;;  %v1815_v44 = vrot.slane %v1810_v32, %v2430_v3  ;;  %v1589_v33 = vmul.f32 %v1283_v36, %v2705_v46 }
 0x101   :  { %v1324_v40 = vrot.slane %v1317_v0, %v2680_v41  ;;  %v1588_v23 = vmul.f32 %v1282_v22, %v2705_v46  ;;  %v1806_v62 = vmul.f32 %v1282_v22, %v2719_v50  ;;  %v1807_v5 = vmul.f32 %v1283_v36, %v2719_v50 }
 0x102   :  { %v1819_v8 = vrot.slane %v1810_v32, %v2433_v4  ;;  %v2024_v31 = vmul.f32 %v1282_v22, %v2722_v51  ;;  %v2025_v60 = vmul.f32 %v1283_v36, %v2722_v51  ;;  %v1591_v43 = vadd.f32 %v1589_v33, %v1587_v9  ;;  %v3562_v22 = vpop.permute.xlu0 %1395 }
 0x103   :  { %v1331_v28 = vrot.slane %v1324_v40, %v2680_v41  ;;  %v1590_v46 = vadd.f32 %v1588_v23, %v1586_v49  ;;  %v1808_v63 = vadd.f32 %v1806_v62, %v1804_v14  ;;  %v1809_v19 = vadd.f32 %v1807_v5, %v1805_v58  ;;  %v3560_v51 = vpop.permute.xlu1 %1397  ;;  %v4679_v5 = vld [vmem:[#allocation63_spill] sm:$0xff] }
 0x104   :  { %v2026_v53 = vadd.f32 %v2024_v31, %v2022_v12  ;;  %v2027_v30 = vadd.f32 %v2025_v60, %v2023_v20  ;;  %v2033_v50 = vrot.slane %v3513_v38, %v2430_v3  ;;  %vm4674_vm5 = vcmp.le.s32.totalorder %v2587_v16, 14 }
 0x105   :  { %v1333_v32 = vsel %vm4674_vm5, %v1331_v28, 0.0  ;;  %v1604_v0 = vadd.f32 %v1597_v34, %v1590_v46  ;;  %v1605_v52 = vadd.f32 %v1601_v61, %v1591_v43  ;;  %v1822_v17 = vadd.f32 %v1815_v44, %v1808_v63 }
 0x106   :  { %v4675_v36 = vstv %s4593_s11  ;;  %v4676_v9 = vstv %s4594_s14  ;;  %v4677_v58 = vstv %s4595_s19  ;;  %v1823_v20 = vadd.f32 %v1819_v8, %v1809_v19  ;;  %v3595_v19 = vpop.permute.xlu0 %1371  ;;  %s4218_s11 = sld [smem:[#allocation2 + $0x35]] }
 0x107   :  { %v1620_v49 = vmul.f32 %v1333_v32, %v4675_v36  ;;  %v1838_v14 = vmul.f32 %v1333_v32, %v4676_v9  ;;  %v2056_v12 = vmul.f32 %v1333_v32, %v4677_v58  ;;  %v2037_v40 = vrot.slane %v3513_v38, %v2433_v4  ;;  %v3593_v63 = vpop.permute.xlu1 %1373  ;;  %s4220_s14 = sld [smem:[#allocation2 + $0x50]] }
 0x108   :  { %v2040_v23 = vadd.f32 %v2033_v50, %v2026_v53  ;;  %v1338_v34 = vsel %vm257_vm15, %v3505_v11, %v3503_v29  ;;  %v1339_v61 = vsel %vm257_vm15, %v3503_v29, %v3505_v11  ;;  %v4680_v38 = vrot.slane %v4679_v5, %v2430_v3  ;;  %v4682_v29 = vld [vmem:[#allocation40_spill] sm:$0xff]  ;;  %v4683_v50 = vld [vmem:[#allocation75_spill] sm:$0xff] }
 0x109   :  { %v1340_v44 = vsel %vm2778_vm3, %v1338_v34, 0.0  ;;  %v1341_v62 = vsel %vm3077_vm12, %v1339_v61, 0.0  ;;  %v4681_v31 = vrot.slane %v4679_v5, %v2433_v4  ;;  %v2041_v28 = vadd.f32 %v2037_v40, %v2027_v30  ;;  %v4686_v40 = vld [vmem:[#allocation41_spill] sm:$0xff] }
 0x10a   :  { %v1618_v8 = vadd.f32 %v4680_v38, %v1604_v0  ;;  %v1625_v46 = vrot.slane %v1620_v49, %v2430_v3  ;;  %v1629_v43 = vrot.slane %v1620_v49, %v2433_v4  ;;  %v1634_v11 = vmul.f32 %v1340_v44, %v4682_v29  ;;  %v4687_v38 = vld [vmem:[#allocation76_spill] sm:$0xff] }
 0x10b   :  { %v1619_v60 = vadd.f32 %v4681_v31, %v1605_v52  ;;  %v1635_v53 = vmul.f32 %v1341_v62, %v4682_v29  ;;  %v4684_v32 = vrot.slane %v4683_v50, %v2430_v3  ;;  %v4685_v52 = vrot.slane %v4683_v50, %v2433_v4 }
 0x10c   :  { %v1843_v36 = vrot.slane %v1838_v14, %v2430_v3  ;;  %v1632_v9 = vadd.f32 %v1625_v46, %v1618_v8  ;;  %v1847_v58 = vrot.slane %v1838_v14, %v2433_v4  ;;  %v1852_v34 = vmul.f32 %v1340_v44, %v4686_v40  ;;  %v3617_v14 = vpop.permute.xlu0 %1379 }
 0x10d   :  { %v1836_v0 = vadd.f32 %v4684_v32, %v1822_v17  ;;  %v1837_v30 = vadd.f32 %v4685_v52, %v1823_v20  ;;  %v1633_v49 = vadd.f32 %v1629_v43, %v1619_v60  ;;  %v1853_v5 = vmul.f32 %v1341_v62, %v4686_v40  ;;  %v3615_v60 = vpop.permute.xlu1 %1381 }
 0x10e   :  { %v4688_v31 = vrot.slane %v4687_v38, %v2430_v3  ;;  %v4689_v17 = vrot.slane %v4687_v38, %v2433_v4  ;;  %v1636_v20 = vadd.f32 %v1634_v11, %v1632_v9  ;;  %v2061_v8 = vrot.slane %v2056_v12, %v2430_v3  ;;  %v4693_v9 = vld [vmem:[#allocation44_spill] sm:$0xff] }
 0x10f   :  { %v1850_v61 = vadd.f32 %v1843_v36, %v1836_v0  ;;  %v1637_v32 = vadd.f32 %v1635_v53, %v1633_v49  ;;  %v1851_v52 = vadd.f32 %v1847_v58, %v1837_v30  ;;  %v2065_v43 = vrot.slane %v2056_v12, %v2433_v4  ;;  %v4690_v0 = vld [vmem:[#allocation42_spill] sm:$0xff]  ;;  %v4692_v30 = vld [vmem:[#allocation43_spill] sm:$0xff] }
 0x110   :  { %v2054_v29 = vadd.f32 %v4688_v31, %v2040_v23  ;;  %v2055_v50 = vadd.f32 %v4689_v17, %v2041_v28  ;;  %v2070_v36 = vmul.f32 %v1340_v44, %v4690_v0  ;;  %v2071_v23 = vmul.f32 %v1341_v62, %v4690_v0 }
 0x111   :  { %v1854_v46 = vadd.f32 %v1852_v34, %v1850_v61  ;;  %v1855_v40 = vadd.f32 %v1853_v5, %v1851_v52  ;;  %v1346_v28 = vsel %vm268_vm11, %v3530_v42, %v3528_v2  ;;  %v1347_v11 = vsel %vm268_vm11, %v3528_v2, %v3530_v42  ;;  %v4694_v5 = vld [vmem:[#allocation45_spill] sm:$0xff]  ;;  %v3641_v2 = vpop.permute.xlu0 %1420 }
 0x112   :  { %v2068_v31 = vadd.f32 %v2061_v8, %v2054_v29  ;;  %v2069_v53 = vadd.f32 %v2065_v43, %v2055_v50  ;;  %v1349_v44 = vsel %vm133_vm14, %v1347_v11, 0.0  ;;  %v1638_v62 = vmul.f32 %v1346_v28, %v4692_v30  ;;  %v3639_v29 = vpop.permute.xlu1 %1422  ;;  %v4697_v11 = vld [vmem:[#allocation47_spill] sm:$0xff] }
 0x113   :  { %v1856_v49 = vmul.f32 %v1346_v28, %v4693_v9  ;;  %v1639_v34 = vmul.f32 %v1349_v44, %v4692_v30  ;;  %v1857_v61 = vmul.f32 %v1349_v44, %v4693_v9  ;;  %v2074_v38 = vmul.f32 %v1346_v28, %v4694_v5 }
 0x114   :  { %v2072_v58 = vadd.f32 %v2070_v36, %v2068_v31  ;;  %v2073_v42 = vadd.f32 %v2071_v23, %v2069_v53  ;;  %v1640_v17 = vadd.f32 %v1638_v62, %v1636_v20  ;;  %v2075_v52 = vmul.f32 %v1349_v44, %v4694_v5  ;;  %v4696_v23 = vld [vmem:[#allocation46_spill] sm:$0xff]  ;;  %v4698_v44 = vld [vmem:[#allocation48_spill] sm:$0xff] }
 0x115   :  { %v1858_v50 = vadd.f32 %v1856_v49, %v1854_v46  ;;  %v1641_v8 = vadd.f32 %v1639_v34, %v1637_v32  ;;  %v1859_v43 = vadd.f32 %v1857_v61, %v1855_v40  ;;  %v1354_v36 = vsel %vm277_vm1, %v3549_v21, %v3547_v57 }
 0x116   :  { %v2076_v0 = vadd.f32 %v2074_v38, %v2072_v58  ;;  %v2077_v31 = vadd.f32 %v2075_v52, %v2073_v42  ;;  %v1355_v28 = vsel %vm277_vm1, %v3547_v57, %v3549_v21  ;;  %v1356_v20 = vsel %vm2852_vm7, %v1354_v36, 0.0  ;;  %v1390_v62 = vpop.permute.xlu1 %1389  ;;  %v1388_v57 = vpop.permute.xlu0 %1387 }
 0x117   :  { %vm4695_vm8 = vcmp.lt.s32.totalorder %v2637_v26, 1  ;;  %v1357_v46 = vsel %vm3203_vm0, %v1355_v28, 0.0  ;;  %v1642_v40 = vmul.f32 %v1356_v20, %v4696_v23  ;;  %v1860_v53 = vmul.f32 %v1356_v20, %v4697_v11 }
 0x118   :  { %v1399_v32 = vsel %vm4695_vm8, %v3562_v22, %v3560_v51  ;;  %v2078_v30 = vmul.f32 %v1356_v20, %v4698_v44  ;;  %v1643_v21 = vmul.f32 %v1357_v46, %v4696_v23  ;;  %v1861_v9 = vmul.f32 %v1357_v46, %v4697_v11  ;;  %vm4699_vm2 = vmmov %vm4695_vm8  ;;  %v4704_v23 = vld [vmem:[#allocation51_spill] sm:$0xff] }
 0x119   :  { %v2079_v49 = vmul.f32 %v1357_v46, %v4698_v44  ;;  %v1400_v58 = vsel %vm4699_vm2, %v3560_v51, %v3562_v22  ;;  %v1644_v34 = vadd.f32 %v1642_v40, %v1640_v17  ;;  %v1862_v61 = vadd.f32 %v1860_v53, %v1858_v50 }
 0x11a   :  { %v1403_v5 = vcombine.low %v1400_v58, %v1399_v32  ;;  %v1645_v42 = vadd.f32 %v1643_v21, %v1641_v8  ;;  %v1863_v52 = vadd.f32 %v1861_v9, %v1859_v43  ;;  %v2080_v36 = vadd.f32 %v2078_v30, %v2076_v0  ;;  %v3682_v17 = vpop.permute.xlu1 %1447  ;;  %v3684_v50 = vpop.permute.xlu0 %1445  ;;  %v4702_v43 = vld [vmem:[#allocation49_spill] sm:$0xff] }
 0x11b   :  { %vm4700_vm4 = vcmp.lt.s32.totalorder %v2637_v26, 17  ;;  %v2081_v20 = vadd.f32 %v2079_v49, %v2077_v31  ;;  %v4703_v31 = vld [vmem:[#allocation50_spill] sm:$0xff]  ;;  %vm4705_vm8 = vcmp.lt.s32.totalorder %v2637_v26, 16 }
 0x11c   :  { %v1375_v28 = vsel %vm4700_vm4, %v3595_v19, %v3593_v63  ;;  %v1410_v46 = vrot.slane %v1403_v5, %v2680_v41  ;;  %vm4701_vm5 = vmmov %vm4700_vm4  ;;  %v1383_v21 = vsel %vm4705_vm8, %v3617_v14, %v3615_v60  ;;  %vm4707_vm4 = vcmp.ge.s32.totalorder %v2587_v16, 1 }
 0x11d   :  { %v1376_v51 = vsel %vm4701_vm5, %v3593_v63, %v3595_v19  ;;  %v1378_v22 = vsel %vm2845_vm6, %v1375_v28, 0.0  ;;  %vm4706_vm2 = vmmov %vm4705_vm8  ;;  %vm4710_vm5 = vcmp.ge.s32.totalorder %v2637_v26, 16  ;;  %vm4714_vm8 = vcmp.lt.s32.totalorder %v2637_v26, 127 }
 0x11e   :  { %v1377_v8 = vsel %vm2945_vm10, %v1376_v51, 0.0  ;;  %v1647_v0 = vmul.f32 %v1378_v22, %v4702_v43  ;;  %v1865_v32 = vmul.f32 %v1378_v22, %v4703_v31  ;;  %v2083_v40 = vmul.f32 %v1378_v22, %v4704_v23 }
 0x11f   :  { %v1417_v63 = vrot.slane %v1410_v46, %v2680_v41  ;;  %v1646_v19 = vmul.f32 %v1377_v8, %v4702_v43  ;;  %v1864_v11 = vmul.f32 %v1377_v8, %v4703_v31  ;;  %v2082_v53 = vmul.f32 %v1377_v8, %v4704_v23  ;;  %v3705_v46 = vpop.permute.xlu1 %1455 }
 0x120   :  { %v1649_v44 = vadd.f32 %v1647_v0, %v1645_v42  ;;  %v1867_v30 = vadd.f32 %v1865_v32, %v1863_v52  ;;  %v1384_v9 = vsel %vm4706_vm2, %v3615_v60, %v3617_v14  ;;  %v2085_v28 = vadd.f32 %v2083_v40, %v2081_v20  ;;  %v3713_v0 = vpop.permute.xlu0 %1453  ;;  %v4711_v60 = vld [vmem:[#allocation52_spill] sm:$0xff]  ;;  %v4713_v32 = vld [vmem:[#allocation55_spill] sm:$0xff]  ;;  %vm4715_vm2 = vmmov %vm4714_vm8 }
 0x121   :  { %v1419_v49 = vsel %vm4707_vm4, %v1417_v63, 0.0  ;;  %v1648_v58 = vadd.f32 %v1646_v19, %v1644_v34  ;;  %v1866_v5 = vadd.f32 %v1864_v11, %v1862_v61  ;;  %v4708_v42 = vstv %s4527_s13  ;;  %v4712_v34 = vld [vmem:[#allocation54_spill] sm:$0xff]  ;;  %s3986_s13 = sld [smem:[#allocation2 + $0x4a]] }
 0x122   :  { %v1658_v52 = vmul.f32 %v1419_v49, %v4708_v42  ;;  %v4709_v51 = vstv %s2601_s2  ;;  %v2084_v8 = vadd.f32 %v2082_v53, %v2080_v36  ;;  %v1385_v43 = vsel %vm4710_vm5, %v1384_v9, 0.0  ;;  %s3833_s2 = sld [smem:[#allocation2 + $0x4b]] }
 0x123   :  { %v1876_v22 = vmul.f32 %v1419_v49, %v4709_v51  ;;  %v1650_v14 = vmul.f32 %v1385_v43, %v4711_v60  ;;  %v1651_v31 = vmul.f32 %v1383_v21, %v4711_v60  ;;  %v1868_v61 = vmul.f32 %v1385_v43, %v4712_v34  ;;  %v3731_v51 = vpop.permute.xlu1 %434 }
 0x124   :  { %v1869_v20 = vmul.f32 %v1383_v21, %v4712_v34  ;;  %v2086_v23 = vmul.f32 %v1385_v43, %v4713_v32  ;;  %v2087_v40 = vmul.f32 %v1383_v21, %v4713_v32  ;;  %v1424_v36 = vsel %vm4714_vm8, %v3641_v2, %v3639_v29  ;;  %v3735_v32 = vpop.permute.xlu0 %432 }
 0x125   :  { %v1425_v63 = vsel %vm4715_vm2, %v3639_v29, %v3641_v2  ;;  %v4716_v19 = vstv %s2610_s25  ;;  %v1652_v53 = vadd.f32 %v1650_v14, %v1648_v58  ;;  %v1653_v9 = vadd.f32 %v1651_v31, %v1649_v44  ;;  %s3751_s25 = sld [smem:[#allocation2 + $0x30]] }
 0x126   :  { %v2094_v11 = vmul.f32 %v1419_v49, %v4716_v19  ;;  %v1870_v42 = vadd.f32 %v1868_v61, %v1866_v5  ;;  %v1871_v43 = vadd.f32 %v1869_v20, %v1867_v30  ;;  %v2088_v60 = vadd.f32 %v2086_v23, %v2084_v8  ;;  %v4719_v49 = vld [vmem:[#allocation56_spill] sm:$0xff]  ;;  %v4720_v5 = vld [vmem:[#allocation58_spill] sm:$0xff]  ;;  %v4721_v23 = vld [vmem:[#allocation59_spill] sm:$0xff] }
 0x127   :  { %v1428_v21 = vcombine.low %v1424_v36, %v1425_v63  ;;  %vm4717_vm4 = vcmp.lt.s32.totalorder %v2637_v26, 15  ;;  %v2089_v38 = vadd.f32 %v2087_v40, %v2085_v28  ;;  %v1663_v2 = vrot.slane %v1658_v52, %v2430_v3  ;;  %v3753_v31 = vpop.permute.xlu1 %1463 }
 0x128   :  { %v1391_v34 = vsel %vm4717_vm4, %v1388_v57, %v1390_v62  ;;  %vm4718_vm5 = vmmov %vm4717_vm4  ;;  %v1667_v28 = vrot.slane %v1658_v52, %v2433_v4  ;;  %v3757_v36 = vpop.permute.xlu0 %1461  ;;  %v1885_v19 = vrot.slane %v1876_v22, %v2433_v4  ;;  %vm4722_vm8 = vcmp.le.s32.totalorder %v2587_v16, 14 }
 0x129   :  { %v1392_v7 = vsel %vm4718_vm5, %v1390_v62, %v1388_v57  ;;  %v1394_v29 = vsel %vm2900_vm9, %v1391_v34, 0.0  ;;  %v1435_v44 = vrot.slane %v1428_v21, %v2680_v41  ;;  %v1881_v57 = vrot.slane %v1876_v22, %v2430_v3 }
 0x12a   :  { %v1393_v30 = vsel %vm2997_vm13, %v1392_v7, 0.0  ;;  %v1655_v58 = vmul.f32 %v1394_v29, %v4719_v49  ;;  %v1873_v8 = vmul.f32 %v1394_v29, %v4720_v5  ;;  %v2091_v21 = vmul.f32 %v1394_v29, %v4721_v23 }
 0x12b   :  { %v1654_v14 = vmul.f32 %v1393_v30, %v4719_v49  ;;  %v1872_v62 = vmul.f32 %v1393_v30, %v4720_v5  ;;  %v1442_v7 = vrot.slane %v1435_v44, %v2680_v41  ;;  %v2090_v40 = vmul.f32 %v1393_v30, %v4721_v23 }
 0x12c   :  { %v1657_v61 = vadd.f32 %v1655_v58, %v1653_v9  ;;  %v1875_v20 = vadd.f32 %v1873_v8, %v1871_v43  ;;  %v2099_v18 = vrot.slane %v2094_v11, %v2430_v3  ;;  %v4723_v44 = vstv %s4534_s4  ;;  %s4068_s4 = sld [smem:[#allocation2 + $0x31]] }
 0x12d   :  { %v1656_v63 = vadd.f32 %v1654_v14, %v1652_v53  ;;  %v1874_v52 = vadd.f32 %v1872_v62, %v1870_v42  ;;  %v1444_v34 = vsel %vm4722_vm8, %v1442_v7, 0.0  ;;  %v2092_v5 = vadd.f32 %v2090_v40, %v2088_v60  ;;  %v3768_v53 = vpop.permute.xlu1 %1508  ;;  %v3771_v62 = vpop.permute.xlu0 %1506 }
 0x12e   :  { %v1671_v49 = vadd.f32 %v1667_v28, %v1657_v61  ;;  %v1686_v9 = vmul.f32 %v1444_v34, %v4723_v44  ;;  %v4724_v43 = vstv %s4536_s24  ;;  %v1889_v8 = vadd.f32 %v1885_v19, %v1875_v20  ;;  %v4725_v28 = vld [vmem:[#allocation78_spill] sm:$0xff]  ;;  %s4076_s24 = sld [smem:[#allocation2 + $0x33]] }
 0x12f   :  { %v1904_v58 = vmul.f32 %v1444_v34, %v4724_v43  ;;  %v1670_v30 = vadd.f32 %v1663_v2, %v1656_v63  ;;  %v1888_v42 = vadd.f32 %v1881_v57, %v1874_v52  ;;  %v2093_v22 = vadd.f32 %v2091_v21, %v2089_v38  ;;  %v4737_v21 = vld [vmem:[#allocation65_spill] sm:$0xff] }
 0x130   :  { %v2103_v29 = vrot.slane %v2094_v11, %v2433_v4  ;;  %v2106_v14 = vadd.f32 %v2099_v18, %v2092_v5  ;;  %v1449_v60 = vsel %vm257_vm15, %v3684_v50, %v3682_v17  ;;  %v1450_v2 = vsel %vm257_vm15, %v3682_v17, %v3684_v50  ;;  %v4729_v50 = vld [vmem:[#allocation79_spill] sm:$0xff] }
 0x131   :  { %v4726_v57 = vrot.slane %v4725_v28, %v2430_v3  ;;  %v4727_v38 = vrot.slane %v4725_v28, %v2433_v4  ;;  %v1451_v61 = vsel %vm2778_vm3, %v1449_v60, 0.0  ;;  %v1452_v20 = vsel %vm3077_vm12, %v1450_v2, 0.0 }
 0x132   :  { %v2107_v11 = vadd.f32 %v2103_v29, %v2093_v22  ;;  %v1691_v23 = vrot.slane %v1686_v9, %v2430_v3  ;;  %v4728_v40 = vstv %s2654_s28  ;;  %v1695_v17 = vrot.slane %v1686_v9, %v2433_v4  ;;  %v3804_v22 = vpop.permute.xlu1 %1484  ;;  %v3806_v29 = vpop.permute.xlu0 %1482  ;;  %v4732_v9 = vld [vmem:[#allocation60_spill] sm:$0xff]  ;;  %s3884_s28 = sld [smem:[#allocation2 + $0x13]] }
 0x133   :  { %v1684_v7 = vadd.f32 %v4726_v57, %v1670_v30  ;;  %v1685_v18 = vadd.f32 %v4727_v38, %v1671_v49  ;;  %v2122_v63 = vmul.f32 %v1444_v34, %v4728_v40  ;;  %v4730_v52 = vrot.slane %v4729_v50, %v2430_v3 }
 0x134   :  { %v4731_v49 = vrot.slane %v4729_v50, %v2433_v4  ;;  %v1909_v43 = vrot.slane %v1904_v58, %v2430_v3  ;;  %v1913_v30 = vrot.slane %v1904_v58, %v2433_v4  ;;  %v1700_v60 = vmul.f32 %v1451_v61, %v4732_v9 }
 0x135   :  { %v1902_v19 = vadd.f32 %v4730_v52, %v1888_v42  ;;  %v1698_v5 = vadd.f32 %v1691_v23, %v1684_v7  ;;  %v1699_v34 = vadd.f32 %v1695_v17, %v1685_v18  ;;  %v1701_v2 = vmul.f32 %v1452_v20, %v4732_v9  ;;  %v4733_v42 = vld [vmem:[#allocation81_spill] sm:$0xff] }
 0x136   :  { %v1903_v44 = vadd.f32 %v4731_v49, %v1889_v8  ;;  %v4734_v28 = vrot.slane %v4733_v42, %v2430_v3  ;;  %v4735_v8 = vld [vmem:[#allocation62_spill] sm:$0xff]  ;;  %v4736_v58 = vrot.slane %v4733_v42, %v2433_v4  ;;  %v2127_v18 = vrot.slane %v2122_v63, %v2430_v3 }
 0x137   :  { %v1916_v7 = vadd.f32 %v1909_v43, %v1902_v19  ;;  %v1918_v23 = vmul.f32 %v1451_v61, %v4735_v8  ;;  %v1702_v50 = vadd.f32 %v1700_v60, %v1698_v5  ;;  %v1919_v52 = vmul.f32 %v1452_v20, %v4735_v8  ;;  %v3839_v60 = vpop.permute.xlu1 %418 }
 0x138   :  { %v2120_v57 = vadd.f32 %v4734_v28, %v2106_v14  ;;  %v1917_v38 = vadd.f32 %v1913_v30, %v1903_v44  ;;  %v2121_v40 = vadd.f32 %v4736_v58, %v2107_v11  ;;  %v2131_v17 = vrot.slane %v2122_v63, %v2433_v4  ;;  %v4738_v30 = vld [vmem:[#allocation66_spill] sm:$0xff] }
 0x139   :  { %v1703_v49 = vadd.f32 %v1701_v2, %v1699_v34  ;;  %v1920_v9 = vadd.f32 %v1918_v23, %v1916_v7  ;;  %v2136_v33 = vmul.f32 %v1451_v61, %v4737_v21  ;;  %v1457_v14 = vsel %vm268_vm11, %v3713_v0, %v3705_v46  ;;  %v3841_v2 = vpop.permute.xlu0 %416 }
 0x13a   :  { %v1921_v19 = vadd.f32 %v1919_v52, %v1917_v38  ;;  %v2134_v44 = vadd.f32 %v2127_v18, %v2120_v57  ;;  %v2135_v43 = vadd.f32 %v2131_v17, %v2121_v40  ;;  %v1458_v11 = vsel %vm268_vm11, %v3705_v46, %v3713_v0  ;;  %v4740_v0 = vld [vmem:[#allocation67_spill] sm:$0xff] }
 0x13b   :  { %v2137_v5 = vmul.f32 %v1452_v20, %v4737_v21  ;;  %v1460_v63 = vsel %vm133_vm14, %v1458_v11, 0.0  ;;  %v1704_v61 = vmul.f32 %v1457_v14, %v4738_v30  ;;  %vm4739_vm2 = vcmp.lt.s32.totalorder %v2637_v26, 1 }
 0x13c   :  { %v436_v34 = vsel %vm4739_vm2, %v3735_v32, %v3731_v51  ;;  %v2138_v42 = vadd.f32 %v2136_v33, %v2134_v44  ;;  %v1705_v46 = vmul.f32 %v1460_v63, %v4738_v30  ;;  %v1922_v20 = vmul.f32 %v1457_v14, %v4740_v0  ;;  %vm4741_vm4 = vmmov %vm4739_vm2 }
 0x13d   :  { %v2140_v21 = vmul.f32 %v1457_v14, %v4632_v25  ;;  %v2139_v28 = vadd.f32 %v2137_v5, %v2135_v43  ;;  %v1706_v57 = vadd.f32 %v1704_v61, %v1702_v50  ;;  %v1923_v7 = vmul.f32 %v1460_v63, %v4740_v0  ;;  %vm4742_vm5 = vmmov %vm4739_vm2  ;;  %v3873_v14 = vpop.permute.xlu1 %459 }
 0x13e   :  { %v437_v38 = vsel %vm4741_vm4, %v3731_v51, %v3735_v32  ;;  %v1707_v8 = vadd.f32 %v1705_v46, %v1703_v49  ;;  %v1924_v23 = vadd.f32 %v1922_v20, %v1920_v9  ;;  %v2141_v58 = vmul.f32 %v1460_v63, %v4632_v25  ;;  %vm4743_vm8 = vmmov %vm4739_vm2 }
 0x13f   :  { %v440_v33 = vcombine.low %v437_v38, %v436_v34  ;;  %v1925_v40 = vadd.f32 %v1923_v7, %v1921_v19  ;;  %v2142_v52 = vadd.f32 %v2140_v21, %v2138_v42  ;;  %v1465_v18 = vsel %vm277_vm1, %v3757_v36, %v3753_v31  ;;  %v3875_v19 = vpop.permute.xlu0 %457 }
 0x140   :  { %v1466_v50 = vsel %vm277_vm1, %v3753_v31, %v3757_v36  ;;  %v1467_v51 = vsel %vm2852_vm7, %v1465_v18, 0.0  ;;  %v1510_v32 = vsel %vm4742_vm5, %v3771_v62, %v3768_v53  ;;  %v1167_v5 = vstv %s3833_s2 }
 0x141   :  { %v447_v17 = vrot.slane %v440_v33, %v2680_v41  ;;  %v1468_v25 = vsel %vm3203_vm0, %v1466_v50, 0.0  ;;  %v1708_v49 = vmul.f32 %v1467_v51, %v4645_v54  ;;  %v1926_v31 = vmul.f32 %v1467_v51, %v4646_v59 }
 0x142   :  { %v1709_v9 = vmul.f32 %v1468_v25, %v4645_v54  ;;  %v1927_v36 = vmul.f32 %v1468_v25, %v4646_v59  ;;  %v2144_v43 = vmul.f32 %v1467_v51, %v4647_v13  ;;  %v2145_v11 = vmul.f32 %v1468_v25, %v4647_v13 }
 0x143   :  { %v454_v44 = vrot.slane %v447_v17, %v2680_v41  ;;  %v1511_v54 = vsel %vm4743_vm8, %v3768_v53, %v3771_v62  ;;  %v2143_v59 = vadd.f32 %v2141_v58, %v2139_v28  ;;  %v1710_v63 = vadd.f32 %v1708_v49, %v1706_v57 }
 0x144   :  { %v1711_v30 = vadd.f32 %v1709_v9, %v1707_v8  ;;  %vm4744_vm2 = vcmp.ge.s32.totalorder %v2587_v16, 1  ;;  %v1928_v34 = vadd.f32 %v1926_v31, %v1924_v23  ;;  %v1929_v42 = vadd.f32 %v1927_v36, %v1925_v40  ;;  %v1493_v40 = vpop.permute.xlu1 %1492 }
 0x145   :  { %v456_v61 = vsel %vm4744_vm2, %v454_v44, 0.0  ;;  %v1514_v13 = vcombine.low %v1511_v54, %v1510_v32  ;;  %v4745_v46 = vstv %s3630_s1  ;;  %v2146_v53 = vadd.f32 %v2144_v43, %v2142_v52  ;;  %v1491_v52 = vpop.permute.xlu0 %1490  ;;  %vm4751_vm8 = vmmov %vm4744_vm2  ;;  %s4772_s1 = sld [smem:[#allocation83_spill]] }
 0x146   :  { %v3895_v0 = vmul.f32 %v4745_v46, %v456_v61  ;;  %v2147_v62 = vadd.f32 %v2145_v11, %v2143_v59  ;;  %vm4746_vm4 = vcmp.lt.s32.totalorder %v2637_v26, 17  ;;  %v4747_v21 = vstv %s3751_s25 }
 0x147   :  { %v1486_v20 = vsel %vm4746_vm4, %v3806_v29, %v3804_v22  ;;  %v3903_v28 = vmul.f32 %v4747_v21, %v456_v61  ;;  %v1521_v57 = vrot.slane %v1514_v13, %v2680_v41  ;;  %vm4748_vm5 = vmmov %vm4746_vm4  ;;  %v4752_v32 = vmov %v4745_v46 }
 0x148   :  { %v1487_v7 = vsel %vm4748_vm5, %v3804_v22, %v3806_v29  ;;  %v1489_v38 = vsel %vm2845_vm6, %v1486_v20, 0.0  ;;  %v3923_v29 = vmul.f32 %v1167_v5, %v456_v61  ;;  %vm4749_vm6 = vcmp.lt.s32.totalorder %v2637_v26, 16 }
 0x149   :  { %v1488_v8 = vsel %vm2945_vm10, %v1487_v7, 0.0  ;;  %v1713_v23 = vmul.f32 %v1489_v38, %v4650_v6  ;;  %v1931_v58 = vmul.f32 %v1489_v38, %v4651_v1  ;;  %v2149_v33 = vmul.f32 %v1489_v38, %v4652_v15  ;;  %vm4750_vm10 = vmmov %vm4749_vm6  ;;  %v1532_v61 = vpop.permute.xlu0 %1531 }
 0x14a   :  { %v1528_v18 = vrot.slane %v1521_v57, %v2680_v41  ;;  %v1712_v22 = vmul.f32 %v1488_v8, %v4650_v6  ;;  %v1930_v56 = vmul.f32 %v1488_v8, %v4651_v1  ;;  %v2148_v35 = vmul.f32 %v1488_v8, %v4652_v15 }
 0x14b   :  { %v1715_v50 = vadd.f32 %v1713_v23, %v1711_v30  ;;  %v420_v17 = vsel %vm4749_vm6, %v3841_v2, %v3839_v60  ;;  %v421_v6 = vsel %vm4750_vm10, %v3839_v60, %v3841_v2  ;;  %v1933_v25 = vadd.f32 %v1931_v58, %v1929_v42  ;;  %v1534_v30 = vpop.permute.xlu1 %1533  ;;  %v4757_v58 = vld [vmem:[#allocation77_spill] sm:$0xff]  ;;  %vm4758_vm10 = vmmov %vm4749_vm6 }
 0x14c   :  { %v1530_v1 = vsel %vm4751_vm8, %v1528_v18, 0.0  ;;  %v1714_v51 = vadd.f32 %v1712_v22, %v1710_v63  ;;  %v2151_v15 = vadd.f32 %v2149_v33, %v2147_v62  ;;  %v1932_v9 = vadd.f32 %v1930_v56, %v1928_v34 }
 0x14d   :  { %v3937_v49 = vmul.f32 %v1530_v1, %v4752_v32  ;;  %v2150_v31 = vadd.f32 %v2148_v35, %v2146_v53  ;;  %vm4753_vm2 = vcmp.ge.s32.totalorder %v2637_v26, 16  ;;  %v662_v44 = vstv %s3884_s28 }
 0x14e   :  { %v422_v36 = vsel %vm4753_vm2, %v421_v6, 0.0  ;;  %v911_v43 = vstv %s3887_s23  ;;  %v1157_v60 = vstv %s3891_s0  ;;  %vm4754_vm4 = vcmp.lt.s32.totalorder %v2637_v26, 127 }
 0x14f   :  { %v461_v2 = vsel %vm4754_vm4, %v3875_v19, %v3873_v14  ;;  %v663_v11 = vmul.f32 %v662_v44, %v422_v36  ;;  %v664_v54 = vmul.f32 %v662_v44, %v420_v17  ;;  %v912_v59 = vmul.f32 %v911_v43, %v422_v36  ;;  %vm4756_vm5 = vmmov %vm4754_vm4  ;;  %v427_v35 = vpop.permute.xlu1 %426 }
 0x150   :  { %v913_v63 = vmul.f32 %v911_v43, %v420_v17  ;;  %v4755_v34 = vmov %v4747_v21  ;;  %v1158_v13 = vmul.f32 %v1157_v60, %v422_v36  ;;  %v1159_v46 = vmul.f32 %v1157_v60, %v420_v17  ;;  %vm4759_vm8 = vmmov %vm4754_vm4  ;;  %v425_v17 = vpop.permute.xlu0 %424 }
 0x151   :  { %v3954_v42 = vmul.f32 %v1530_v1, %v4755_v34  ;;  %v462_v53 = vsel %vm4756_vm5, %v3873_v14, %v3875_v19  ;;  %v3960_v62 = vmul.f32 %v1530_v1, %v1167_v5  ;;  %v665_v20 = vadd.f32 %v663_v11, %v3466_v37 }
 0x152   :  { %v666_v21 = vadd.f32 %v664_v54, %v3468_v24  ;;  %v702_v57 = vstv %s3917_s18  ;;  %v914_v7 = vadd.f32 %v912_v59, %v3470_v48  ;;  %v915_v38 = vadd.f32 %v913_v63, %v3472_v47 }
 0x153   :  { %v3968_v8 = vadd.f32 %v1158_v13, %v3474_v39  ;;  %v465_v23 = vcombine.low %v461_v2, %v462_v53  ;;  %v3973_v33 = vadd.f32 %v1159_v46, %v4757_v58  ;;  %v1494_v14 = vsel %vm4749_vm6, %v1491_v52, %v1493_v40 }
 0x154   :  { %v1495_v37 = vsel %vm4758_vm10, %v1493_v40, %v1491_v52  ;;  %v1535_v24 = vsel %vm4759_vm8, %v1532_v61, %v1534_v30  ;;  %v1717_v39 = vmul.f32 %v1494_v14, %v662_v44  ;;  %v1935_v19 = vmul.f32 %v1494_v14, %v911_v43 }
 0x155   :  { %v472_v48 = vrot.slane %v465_v23, %v2680_v41  ;;  %v1496_v47 = vsel %vm4753_vm2, %v1495_v37, 0.0  ;;  %v2153_v56 = vmul.f32 %v1494_v14, %v1157_v60  ;;  %v951_v52 = vstv %s3941_s3 }
 0x156   :  { %v1716_v5 = vmul.f32 %v1496_v47, %v662_v44  ;;  %v1934_v18 = vmul.f32 %v1496_v47, %v911_v43  ;;  %v2152_v22 = vmul.f32 %v1496_v47, %v1157_v60  ;;  %v1197_v6 = vstv %s3946_s8 }
 0x157   :  { %v479_v40 = vrot.slane %v472_v48, %v2680_v41  ;;  %v1536_v1 = vsel %vm4754_vm4, %v1534_v30, %v1532_v61  ;;  %v1719_v36 = vadd.f32 %v1717_v39, %v1715_v50  ;;  %v3997_v44 = vadd.f32 %v1935_v19, %v1933_v25 }
 0x158   :  { %v3993_v32 = vadd.f32 %v1716_v5, %v1714_v51  ;;  %v3995_v2 = vadd.f32 %v1934_v18, %v1932_v9  ;;  %vm4760_vm5 = vcmp.le.s32.totalorder %v2587_v16, 14  ;;  %v1539_v60 = vcombine.low %v1535_v24, %v1536_v1 }
 0x159   :  { %v481_v43 = vsel %vm4760_vm5, %v479_v40, 0.0  ;;  %vm4761_vm6 = vcmp.lt.s32.totalorder %v2637_v26, 15  ;;  %v4007_v51 = vadd.f32 %v2152_v22, %v2150_v31  ;;  %v4009_v50 = vadd.f32 %v2153_v56, %v2151_v15  ;;  %vm4764_vm8 = vmmov %vm4760_vm5  ;;  %v1501_v22 = vpop.permute.xlu1 %1500  ;;  %v1499_v56 = vpop.permute.xlu0 %1498 }
 0x15a   :  { %v428_v11 = vsel %vm4761_vm6, %v425_v17, %v427_v35  ;;  %vm4762_vm10 = vmmov %vm4761_vm6  ;;  %v4005_v59 = vmul.f32 %v702_v57, %v481_v43  ;;  %v4013_v9 = vmul.f32 %v951_v52, %v481_v43  ;;  %v1546_v63 = vrot.slane %v1539_v60, %v2680_v41 }
 0x15b   :  { %v429_v54 = vsel %vm4762_vm10, %v427_v35, %v425_v17  ;;  %v431_v61 = vsel %vm2900_vm9, %v428_v11, 0.0  ;;  %v667_v34 = vstv %s3970_s12  ;;  %v4019_v13 = vmul.f32 %v1197_v6, %v481_v43  ;;  %vm4765_vm2 = vmmov %vm4761_vm6 }
 0x15c   :  { %v430_v25 = vsel %vm2997_vm13, %v429_v54, 0.0  ;;  %v669_v53 = vmul.f32 %v667_v34, %v431_v61  ;;  %v916_v31 = vstv %s3981_s5  ;;  %v1553_v15 = vrot.slane %v1546_v63, %v2680_v41  ;;  %vm4766_vm4 = vmmov %vm4765_vm2 }
 0x15d   :  { %v668_v46 = vmul.f32 %v667_v34, %v430_v25  ;;  %v678_v23 = vrot.slane %v3895_v0, %v2430_v3  ;;  %v917_v58 = vmul.f32 %v916_v31, %v430_v25  ;;  %v918_v14 = vmul.f32 %v916_v31, %v431_v61 }
 0x15e   :  { %v671_v24 = vadd.f32 %v669_v53, %v666_v21  ;;  %v682_v48 = vrot.slane %v3895_v0, %v2433_v4  ;;  %v1162_v47 = vstv %s3986_s13  ;;  %v1555_v39 = vsel %vm4764_vm8, %v1553_v15, 0.0 }
 0x15f   :  { %v670_v37 = vadd.f32 %v668_v46, %v665_v20  ;;  %v919_v19 = vadd.f32 %v917_v58, %v914_v7  ;;  %v920_v5 = vadd.f32 %v918_v14, %v915_v38  ;;  %v1163_v18 = vmul.f32 %v1162_v47, %v430_v25 }
 0x160   :  { %v4030_v35 = vmul.f32 %v1555_v39, %v702_v57  ;;  %v4032_v17 = vmul.f32 %v1555_v39, %v951_v52  ;;  %v927_v20 = vrot.slane %v3903_v28, %v2430_v3  ;;  %v931_v21 = vrot.slane %v3903_v28, %v2433_v4 }
 0x161   :  { %v4038_v0 = vmul.f32 %v1555_v39, %v1197_v6  ;;  %v4040_v40 = vadd.f32 %v678_v23, %v670_v37  ;;  %v4042_v16 = vadd.f32 %v682_v48, %v671_v24  ;;  %v1164_v7 = vmul.f32 %v1162_v47, %v431_v61  ;;  %v483_v37 = vpop.permute.xlu0 %482 }
 0x162   :  { %v4044_v38 = vadd.f32 %v927_v20, %v919_v19  ;;  %v4046_v1 = vadd.f32 %v931_v21, %v920_v5  ;;  %v1165_v57 = vadd.f32 %v1163_v18, %v3968_v8  ;;  %v1502_v52 = vsel %vm4765_vm2, %v1499_v56, %v1501_v22  ;;  %v2348_v18 = vld [vmem:[%s4768_s21 + $0x2] ss:$4 sm:$0x3] }
 0x163   :  { %v1166_v28 = vadd.f32 %v1164_v7, %v3973_v33  ;;  %v1173_v6 = vrot.slane %v3923_v29, %v2430_v3  ;;  %v1503_v43 = vsel %vm4766_vm4, %v1501_v22, %v1499_v56  ;;  %v1505_v60 = vsel %vm2900_vm9, %v1502_v52, 0.0 }
 0x164   :  { %v1177_v8 = vrot.slane %v3923_v29, %v2433_v4  ;;  %v1504_v11 = vsel %vm2997_vm13, %v1503_v43, 0.0  ;;  %v1721_v54 = vmul.f32 %v1505_v60, %v667_v34  ;;  %v1729_v33 = vrot.slane %v3937_v49, %v2430_v3 }
 0x165   :  { %v4070_v25 = vadd.f32 %v1173_v6, %v1165_v57  ;;  %v1720_v63 = vmul.f32 %v1504_v11, %v667_v34  ;;  %v1938_v61 = vmul.f32 %v1504_v11, %v916_v31  ;;  %v1939_v30 = vmul.f32 %v1505_v60, %v916_v31  ;;  %v485_v34 = vpop.permute.xlu1 %484 }
 0x166   :  { %v4072_v46 = vadd.f32 %v1177_v8, %v1166_v28  ;;  %v1723_v53 = vadd.f32 %v1721_v54, %v1719_v36  ;;  %v1733_v29 = vrot.slane %v3937_v49, %v2433_v4  ;;  %v2156_v15 = vmul.f32 %v1504_v11, %v1162_v47 }
 0x167   :  { %v1722_v45 = vadd.f32 %v1720_v63, %v3993_v32  ;;  %v1940_v23 = vadd.f32 %v1938_v61, %v3995_v2  ;;  %v1941_v58 = vadd.f32 %v1939_v30, %v3997_v44  ;;  %v2157_v14 = vmul.f32 %v1505_v60, %v1162_v47 }
 0x168   :  { %v4081_v31 = vadd.f32 %v1733_v29, %v1723_v53  ;;  %v1947_v36 = vrot.slane %v3954_v42, %v2430_v3  ;;  %v1951_v49 = vrot.slane %v3954_v42, %v2433_v4  ;;  %v2158_v24 = vadd.f32 %v2156_v15, %v4007_v51 }
 0x169   :  { %v4090_v32 = vadd.f32 %v1729_v33, %v1722_v45  ;;  %v2159_v2 = vadd.f32 %v2157_v14, %v4009_v50  ;;  %v2165_v44 = vrot.slane %v3960_v62, %v2430_v3  ;;  %v2169_v48 = vrot.slane %v3960_v62, %v2433_v4  ;;  %v1559_v15 = vpop.permute.xlu1 %1558  ;;  %v1557_v45 = vpop.permute.xlu0 %1556 }
 0x16a   :  { %v4097_v47 = vadd.f32 %v1947_v36, %v1940_v23  ;;  %v486_v42 = vsel %vm257_vm15, %v483_v37, %v485_v34  ;;  %v487_v51 = vsel %vm257_vm15, %v485_v34, %v483_v37  ;;  %v687_v39 = vstv %s4051_s20 }
 0x16b   :  { %v4106_v19 = vadd.f32 %v1951_v49, %v1941_v58  ;;  %v488_v50 = vsel %vm2778_vm3, %v486_v42, 0.0  ;;  %v489_v62 = vsel %vm3077_vm12, %v487_v51, 0.0  ;;  %v688_v22 = vmul.f32 %v2348_v18, %v687_v39 }
 0x16c   :  { %v4115_v56 = vadd.f32 %v2165_v44, %v2158_v24  ;;  %v4117_v20 = vadd.f32 %v2169_v48, %v2159_v2  ;;  %v717_v21 = vstv %s4060_s10  ;;  %v936_v7 = vstv %s4068_s4 }
 0x16d   :  { %v693_v57 = vrot.slane %v688_v22, %v2430_v3  ;;  %v697_v52 = vrot.slane %v688_v22, %v2433_v4  ;;  %v708_v28 = vrot.slane %v4005_v59, %v2430_v3  ;;  %v712_v6 = vrot.slane %v4005_v59, %v2433_v4 }
 0x16e   :  { %v718_v43 = vmul.f32 %v717_v21, %v488_v50  ;;  %v719_v60 = vmul.f32 %v717_v21, %v489_v62  ;;  %v937_v8 = vmul.f32 %v2348_v18, %v936_v7  ;;  %v4128_v11 = vstv %s4076_s24 }
 0x16f   :  { %v700_v54 = vadd.f32 %v693_v57, %v4040_v40  ;;  %v701_v33 = vadd.f32 %v697_v52, %v4042_v16  ;;  %v957_v63 = vrot.slane %v4013_v9, %v2430_v3  ;;  %v961_v61 = vrot.slane %v4013_v9, %v2433_v4 }
 0x170   :  { %v942_v30 = vrot.slane %v937_v8, %v2430_v3  ;;  %v946_v59 = vrot.slane %v937_v8, %v2433_v4  ;;  %v967_v53 = vmul.f32 %v4128_v11, %v488_v50  ;;  %v1182_v29 = vstv %s4088_s17  ;;  %v493_v8 = vpop.permute.xlu1 %492 }
 0x171   :  { %v715_v23 = vadd.f32 %v708_v28, %v700_v54  ;;  %v716_v40 = vadd.f32 %v712_v6, %v701_v33  ;;  %v968_v16 = vmul.f32 %v4128_v11, %v489_v62  ;;  %v1183_v58 = vmul.f32 %v2348_v18, %v1182_v29  ;;  %v2349_v28 = vld [vmem:[%s4768_s21 + $0xa] ss:$4 sm:$0x3] }
 0x172   :  { %v949_v14 = vadd.f32 %v942_v30, %v4044_v38  ;;  %v950_v34 = vadd.f32 %v946_v59, %v4046_v1  ;;  %v1203_v9 = vrot.slane %v4019_v13, %v2430_v3  ;;  %v1212_v37 = vstv %s4099_s27 }
 0x173   :  { %v1188_v36 = vrot.slane %v1183_v58, %v2430_v3  ;;  %v1192_v49 = vrot.slane %v1183_v58, %v2433_v4  ;;  %v1207_v24 = vrot.slane %v4019_v13, %v2433_v4  ;;  %v1560_v2 = vsel %vm257_vm15, %v1557_v45, %v1559_v15 }
 0x174   :  { %v4152_v44 = vadd.f32 %v718_v43, %v715_v23  ;;  %v4154_v48 = vadd.f32 %v719_v60, %v716_v40  ;;  %v964_v38 = vadd.f32 %v957_v63, %v949_v14  ;;  %v965_v1 = vadd.f32 %v961_v61, %v950_v34 }
 0x175   :  { %v1195_v42 = vadd.f32 %v1188_v36, %v4070_v25  ;;  %v1196_v51 = vadd.f32 %v1192_v49, %v4072_v46  ;;  %v1213_v18 = vmul.f32 %v1212_v37, %v488_v50  ;;  %v1561_v22 = vsel %vm257_vm15, %v1559_v15, %v1557_v45  ;;  %v1567_v49 = vpop.permute.xlu1 %1566 }
 0x176   :  { %v1214_v57 = vmul.f32 %v1212_v37, %v489_v62  ;;  %v1562_v13 = vsel %vm2778_vm3, %v1560_v2, 0.0  ;;  %v1563_v52 = vsel %vm3077_vm12, %v1561_v22, 0.0  ;;  %v1738_v6 = vmul.f32 %v2349_v28, %v687_v39  ;;  %v491_v39 = vpop.permute.xlu0 %490 }
 0x177   :  { %v4167_v43 = vadd.f32 %v967_v53, %v964_v38  ;;  %v4169_v25 = vadd.f32 %v968_v16, %v965_v1  ;;  %v1210_v46 = vadd.f32 %v1203_v9, %v1195_v42  ;;  %v1211_v50 = vadd.f32 %v1207_v24, %v1196_v51 }
 0x178   :  { %v1743_v62 = vrot.slane %v1738_v6, %v2430_v3  ;;  %v1747_v10 = vrot.slane %v1738_v6, %v2433_v4  ;;  %v1757_v5 = vrot.slane %v4030_v35, %v2430_v3  ;;  %v1761_v60 = vrot.slane %v4030_v35, %v2433_v4 }
 0x179   :  { %v4181_v54 = vadd.f32 %v1213_v18, %v1210_v46  ;;  %v1766_v33 = vmul.f32 %v1562_v13, %v717_v21  ;;  %v1767_v63 = vmul.f32 %v1563_v52, %v717_v21  ;;  %v1956_v61 = vmul.f32 %v2349_v28, %v936_v7 }
 0x17a   :  { %v4183_v30 = vadd.f32 %v1214_v57, %v1211_v50  ;;  %v1750_v59 = vadd.f32 %v1743_v62, %v4090_v32  ;;  %v1751_v53 = vadd.f32 %v1747_v10, %v4081_v31  ;;  %v1975_v15 = vrot.slane %v4032_v17, %v2430_v3  ;;  %v501_v10 = vpop.permute.xlu1 %500 }
 0x17b   :  { %v1961_v35 = vrot.slane %v1956_v61, %v2430_v3  ;;  %v1965_v45 = vrot.slane %v1956_v61, %v2433_v4  ;;  %v1979_v23 = vrot.slane %v4032_v17, %v2433_v4  ;;  %v2174_v21 = vmul.f32 %v2349_v28, %v1182_v29 }
 0x17c   :  { %v1764_v7 = vadd.f32 %v1757_v5, %v1750_v59  ;;  %v1765_v40 = vadd.f32 %v1761_v60, %v1751_v53  ;;  %v1984_v16 = vmul.f32 %v1562_v13, %v4128_v11  ;;  %v1985_v32 = vmul.f32 %v1563_v52, %v4128_v11  ;;  %v1565_v11 = vpop.permute.xlu0 %1564 }
 0x17d   :  { %v1968_v31 = vadd.f32 %v1961_v35, %v4097_v47  ;;  %v1969_v58 = vadd.f32 %v1965_v45, %v4106_v19  ;;  %v2179_v14 = vrot.slane %v2174_v21, %v2430_v3  ;;  %v2183_v34 = vrot.slane %v2174_v21, %v2433_v4 }
 0x17e   :  { %v2193_v17 = vrot.slane %v4038_v0, %v2430_v3  ;;  %v2197_v29 = vrot.slane %v4038_v0, %v2433_v4  ;;  %v2202_v9 = vmul.f32 %v1562_v13, %v1212_v37  ;;  %v2203_v36 = vmul.f32 %v1563_v52, %v1212_v37 }
 0x17f   :  { %v1982_v24 = vadd.f32 %v1975_v15, %v1968_v31  ;;  %v1983_v47 = vadd.f32 %v1979_v23, %v1969_v58  ;;  %v2186_v19 = vadd.f32 %v2179_v14, %v4115_v56  ;;  %v2187_v2 = vadd.f32 %v2183_v34, %v4117_v20  ;;  %v1575_v58 = vpop.permute.xlu1 %1574 }
 0x180   :  { %v494_v38 = vsel %vm268_vm11, %v491_v39, %v493_v8  ;;  %v495_v3 = vsel %vm268_vm11, %v493_v8, %v491_v39  ;;  %v722_v1 = vstv %s4171_s7  ;;  %v971_v42 = vstv %s4179_s26  ;;  %v499_v5 = vpop.permute.xlu0 %498 }
 0x181   :  { %v1768_v4 = vadd.f32 %v1766_v33, %v1764_v7  ;;  %v1769_v0 = vadd.f32 %v1767_v63, %v1765_v40  ;;  %v2200_v37 = vadd.f32 %v2193_v17, %v2186_v19  ;;  %v2201_v51 = vadd.f32 %v2197_v29, %v2187_v2 }
 0x182   :  { %v497_v18 = vsel %vm133_vm14, %v495_v3, 0.0  ;;  %v723_v56 = vmul.f32 %v722_v1, %v494_v38  ;;  %v972_v22 = vmul.f32 %v971_v42, %v494_v38  ;;  %v1217_v20 = vstv %s4189_s22 }
 0x183   :  { %v1986_v57 = vadd.f32 %v1984_v16, %v1982_v24  ;;  %v1987_v13 = vadd.f32 %v1985_v32, %v1983_v47  ;;  %v724_v52 = vmul.f32 %v722_v1, %v497_v18  ;;  %v973_v28 = vmul.f32 %v971_v42, %v497_v18 }
 0x184   :  { %v2204_v6 = vadd.f32 %v2202_v9, %v2200_v37  ;;  %v2205_v46 = vadd.f32 %v2203_v36, %v2201_v51  ;;  %v1218_v50 = vmul.f32 %v1217_v20, %v494_v38  ;;  %v1219_v62 = vmul.f32 %v1217_v20, %v497_v18 }
 0x185   :  { %v725_v60 = vadd.f32 %v723_v56, %v4152_v44  ;;  %v974_v8 = vadd.f32 %v972_v22, %v4167_v43  ;;  %v1568_v39 = vsel %vm268_vm11, %v1565_v11, %v1567_v49  ;;  %v1569_v33 = vsel %vm268_vm11, %v1567_v49, %v1565_v11 }
 0x186   :  { %v726_v63 = vadd.f32 %v724_v52, %v4154_v48  ;;  %v975_v61 = vadd.f32 %v973_v28, %v4169_v25  ;;  %v1571_v59 = vsel %vm133_vm14, %v1569_v33, 0.0  ;;  %v1770_v53 = vmul.f32 %v1568_v39, %v722_v1 }
 0x187   :  { %v1771_v15 = vmul.f32 %v1571_v59, %v722_v1  ;;  %v1988_v35 = vmul.f32 %v1568_v39, %v971_v42  ;;  %v1989_v44 = vmul.f32 %v1571_v59, %v971_v42  ;;  %v2206_v45 = vmul.f32 %v1568_v39, %v1217_v20 }
 0x188   :  { %v1220_v43 = vadd.f32 %v1218_v50, %v4181_v54  ;;  %v1221_v23 = vadd.f32 %v1219_v62, %v4183_v30  ;;  %v1772_v21 = vadd.f32 %v1770_v53, %v1768_v4  ;;  %v502_v48 = vsel %vm277_vm1, %v499_v5, %v501_v10  ;;  %v1573_v30 = vpop.permute.xlu0 %1572 }
 0x189   :  { %v1773_v25 = vadd.f32 %v1771_v15, %v1769_v0  ;;  %v1990_v7 = vadd.f32 %v1988_v35, %v1986_v57  ;;  %v1991_v12 = vadd.f32 %v1989_v44, %v1987_v13  ;;  %v2207_v40 = vmul.f32 %v1571_v59, %v1217_v20 }
 0x18a   :  { %v2208_v16 = vadd.f32 %v2206_v45, %v2204_v6  ;;  %v503_v32 = vsel %vm277_vm1, %v501_v10, %v499_v5  ;;  %v504_v31 = vsel %vm2852_vm7, %v502_v48, 0.0  ;;  %v727_v54 = vstv %s4213_s29 }
 0x18b   :  { %v4769_v14 = vlaneseq  ;;  %v505_v17 = vsel %vm3203_vm0, %v503_v32, 0.0  ;;  %v728_v29 = vmul.f32 %v727_v54, %v504_v31  ;;  %v976_v9 = vstv %s4218_s11 }
 0x18c   :  { %v1222_v36 = vstv %s4220_s14  ;;  %v729_v49 = vmul.f32 %v727_v54, %v505_v17  ;;  %v977_v11 = vmul.f32 %v976_v9, %v504_v31  ;;  %v978_v24 = vmul.f32 %v976_v9, %v505_v17 }
 0x18d   :  { %vm4242_vm3 = vcmp.lt.s32.totalorder %v4769_v14, 256  ;;  %v1223_v47 = vmul.f32 %v1222_v36, %v504_v31  ;;  %v730_v19 = vadd.f32 %v728_v29, %v725_v60  ;;  %v1224_v2 = vmul.f32 %v1222_v36, %v505_v17 }
 0x18e   :  { %v1576_v38 = vsel %vm277_vm1, %v1573_v30, %v1575_v58  ;;  %v1577_v3 = vsel %vm277_vm1, %v1575_v58, %v1573_v30  ;;  %v731_v1 = vadd.f32 %v729_v49, %v726_v63  ;;  %v979_v42 = vadd.f32 %v977_v11, %v974_v8 }
 0x18f   :  { %v980_v4 = vadd.f32 %v978_v24, %v975_v61  ;;  %v1225_v0 = vadd.f32 %v1223_v47, %v1220_v43  ;;  %v2209_v37 = vadd.f32 %v2207_v40, %v2205_v46  ;;  %v1226_v51 = vadd.f32 %v1224_v2, %v1221_v23 }
 0x190   :  { %v1578_v18 = vsel %vm2852_vm7, %v1576_v38, 0.0  ;;  %v1579_v56 = vsel %vm3203_vm0, %v1577_v3, 0.0  ;;  %v734_v22 = vcombine.low %v730_v19, %v731_v1 }
 0x191   :  { %v983_v20 = vcombine.low %v979_v42, %v980_v4  ;;  %v1774_v57 = vmul.f32 %v1578_v18, %v727_v54  ;;  %v1775_v13 = vmul.f32 %v1579_v56, %v727_v54  ;;  %v1229_v52 = vcombine.low %v1225_v0, %v1226_v51 }
 0x192   :  { %v1992_v28 = vmul.f32 %v1578_v18, %v976_v9  ;;  %v1993_v26 = vmul.f32 %v1579_v56, %v976_v9  ;;  %v2210_v6 = vmul.f32 %v1578_v18, %v1222_v36  ;;  %v741_v50 = vrot.slane %v734_v22, %v2680_v41 }
 0x193   :  { %v990_v62 = vrot.slane %v983_v20, %v2680_v41  ;;  %v1776_v46 = vadd.f32 %v1774_v57, %v1772_v21  ;;  %v1777_v10 = vadd.f32 %v1775_v13, %v1773_v25  ;;  %v1236_v55 = vrot.slane %v1229_v52, %v2680_v41 }
 0x194   :  { %v1994_v5 = vadd.f32 %v1992_v28, %v1990_v7  ;;  %v1995_v60 = vadd.f32 %v1993_v26, %v1991_v12  ;;  %v2211_v27 = vmul.f32 %v1579_v56, %v1222_v36  ;;  %v748_v8 = vrot.slane %v741_v50, %v2680_v41 }
 0x195   :  { %v997_v39 = vrot.slane %v990_v62, %v2680_v41  ;;  %v1780_v33 = vcombine.low %v1776_v46, %v1777_v10  ;;  %v2212_v63 = vadd.f32 %v2210_v6, %v2208_v16  ;;  %v1243_v61 = vrot.slane %v1236_v55, %v2680_v41 }
 0x196   :  { %v1998_v59 = vcombine.low %v1994_v5, %v1995_v60  ;;  %v2213_v53 = vadd.f32 %v2211_v27, %v2209_v37  ;;  %754 = vst.msk [vmem:[%s4772_s1] ss:$4 sm:$0x3] %vm4242_vm3, %v748_v8 }
 0x197   :  { %2328 = vst.msk [vmem:[%s4772_s1 + $0x1] ss:$4 sm:$0x3] %vm4242_vm3, %v997_v39  ;;  %v1787_v15 = vrot.slane %v1780_v33, %v2680_v41  ;;  %2329 = vst.msk [vmem:[%s4772_s1 + $0x2] ss:$4 sm:$0x3] %vm4242_vm3, %v1243_v61 }
 0x198   :  { %v2005_v35 = vrot.slane %v1998_v59, %v2680_v41  ;;  %v2216_v44 = vcombine.low %v2212_v63, %v2213_v53 }
 0x199   :  { %v1794_v45 = vrot.slane %v1787_v15, %v2680_v41 }
 0x19a   :  { %v2012_v43 = vrot.slane %v2005_v35, %v2680_v41  ;;  %v2223_v23 = vrot.slane %v2216_v44, %v2680_v41 }
 0x19b   :  { %2333 = vst.msk [vmem:[%s4772_s1 + $0x8] ss:$4 sm:$0x3] %vm4242_vm3, %v1794_v45 }
 0x19c   :  { %2334 = vst.msk [vmem:[%s4772_s1 + $0x9] ss:$4 sm:$0x3] %vm4242_vm3, %v2012_v43  ;;  %v2230_v21 = vrot.slane %v2223_v23, %v2680_v41 }
 0x19e   :  { %2335 = vst.msk [vmem:[%s4772_s1 + $0xa] ss:$4 sm:$0x3] %vm4242_vm3, %v2230_v21 }
 0x19f   :  { %2238 = vsyncpa [#allocation3], 1 }
 0x1a0   :  { %2239 = vsyncpa [#allocation5], 1 }

</bundles_post_ra>
